<compile_context>
chip_gen: v7x
topology: tpu7x:2x2x1
jax: 0.10.0
libtpu: 0.0.40
codegen_flags: <defaults>
</compile_context>

<pallas_src>
import jax
import jax.numpy as jnp
from jax import lax
from jax.experimental import pallas as pl
from jax.experimental.pallas import tpu as pltpu

LANE = 128
COMPUTE_DTYPE = jnp.bfloat16      # MXU operand dtype; accumulation / gate math stay f32
VMEM_LIMIT = 48 * 1024 * 1024     # fits v7x (64 MiB physical), > v5e's 16 MiB default scoped


def _round_up(x, m):
    return ((x + m - 1) // m) * m


def _pad_axis(x, axis, new_size):
    pad = new_size - x.shape[axis]
    if pad == 0:
        return x
    widths = [(0, 0)] * x.ndim
    widths[axis] = (0, pad)
    return jnp.pad(x, widths)


def _pick_row_tile(M, cap=512):
    for t in (512, 256, 128, 64, 32, 16, 8):
        if t <= cap and t <= M and M % t == 0:
            return t
    return M                      # full-extent fallback (always a legal block)


def _pick_lane_tile(N, cap=1024):
    if N <= cap:
        return N
    for t in range(cap - cap % 128, 127, -128):   # N is always a multiple of 128 here
        if N % t == 0:
            return t
    return N


def _pick_time_chunk(T, cap=8):
    for t in range(min(cap, T), 0, -1):
        if T % t == 0:
            return t
    return 1


# ---------------------------------------------------------------------------
# Generic bias-matmul kernel: out = x @ wT + b   (tiled over M and N)
# ---------------------------------------------------------------------------
def matmul_bias_kernel(x_ref, wT_ref, b_ref, o_ref):
    o_ref[...] = (
        jnp.dot(x_ref[...], wT_ref[...], preferred_element_type=jnp.float32)
        + b_ref[...]
    ).astype(o_ref.dtype)


def matmul_bias(x, wT, b, out_dtype=jnp.float32):
    """out = x @ wT + b.  M/N tiled; K (<= E+Hp or Hp) kept whole."""
    M, K = x.shape
    N = wT.shape[1]
    tm = _pick_row_tile(M)
    tn = _pick_lane_tile(N)
    return pl.pallas_call(
        matmul_bias_kernel,
        out_shape=jax.ShapeDtypeStruct((M, N), out_dtype),
        grid_spec=pltpu.PrefetchScalarGridSpec(
            num_scalar_prefetch=0,
            grid=(M // tm, N // tn),
            in_specs=[
                pl.BlockSpec((tm, K), lambda i, j: (i, 0)),
                pl.BlockSpec((K, tn), lambda i, j: (0, j)),
                pl.BlockSpec((1, tn), lambda i, j: (0, j)),
            ],
            out_specs=pl.BlockSpec((tm, tn), lambda i, j: (i, j)),
        ),
        compiler_params=pltpu.CompilerParams(
            dimension_semantics=("parallel", "parallel"),
            vmem_limit_bytes=VMEM_LIMIT),
    )(x, wT, b)


# ---------------------------------------------------------------------------
# GRU recurrence kernels (time-chunked grid, h carried in VMEM scratch)
#   gi (input-side gates incl. b_ih and decoder context) is precomputed; only
#   gh = h @ whhT + bhh runs on the serial path.  Gate order: r, z, n.
# ---------------------------------------------------------------------------
def _gru_cell(gi, h, whhT_ref, bhh_ref, Hp):
    # h is carried in f32; cast to bf16 only as the MXU operand.
    gh = (
        jnp.dot(h.astype(whhT_ref.dtype), whhT_ref[...],
                preferred_element_type=jnp.float32)
        + bhh_ref[...]
    )
    r = jax.nn.sigmoid(gi[:, :Hp] + gh[:, :Hp])
    z = jax.nn.sigmoid(gi[:, Hp:2 * Hp] + gh[:, Hp:2 * Hp])
    n = jnp.tanh(gi[:, 2 * Hp:] + r * gh[:, 2 * Hp:])
    return (1.0 - z) * n + z * h


def gru_scan_last_kernel(xg_ref, h0_ref, whhT_ref, bhh_ref, hT_ref, h_scr):
    """Encoder scan: only the final hidden state is materialized."""
    @pl.when(pl.program_id(1) == 0)
    def _init():
        h_scr[...] = h0_ref[...]

    Tt = xg_ref.shape[0]
    Hp = h_scr.shape[1]

    def step(t, carry):
        h_scr[...] = _gru_cell(xg_ref[t], h_scr[...], whhT_ref, bhh_ref, Hp)
        return carry

    # Chunk is short (<= 8 steps): full unroll of the chunk = partial unroll of T.
    lax.fori_loop(0, Tt, step, 0, unroll=True)
    hT_ref[...] = h_scr[...]


def gru_scan_all_kernel(xg_ref, h0_ref, whhT_ref, bhh_ref, hseq_ref, hT_ref, h_scr):
    """Decoder scan: emits the hidden sequence (bf16) chunk by chunk."""
    @pl.when(pl.program_id(1) == 0)
    def _init():
        h_scr[...] = h0_ref[...]

    Tt = xg_ref.shape[0]
    Hp = h_scr.shape[1]

    def step(t, carry):
        h_new = _gru_cell(xg_ref[t], h_scr[...], whhT_ref, bhh_ref, Hp)
        h_scr[...] = h_new
        hseq_ref[t] = h_new.astype(hseq_ref.dtype)   # bf16 store: halves vocab-head bytes
        return carry

    lax.fori_loop(0, Tt, step, 0, unroll=True)
    hT_ref[...] = h_scr[...]


def gru_scan(xg, h0, whhT, bhh, collect_seq):
    T, B, G = xg.shape
    Hp = h0.shape[1]
    # v7x: split the batch across the two TensorCores when each block keeps >= 8 sublanes.
    n_bb = 2 if B % 16 == 0 else 1
    Bblk = B // n_bb
    Tt = _pick_time_chunk(T)

    in_specs = [
        pl.BlockSpec((Tt, Bblk, G), lambda nb, c: (c, nb, 0)),    # streamed per chunk
        pl.BlockSpec((Bblk, Hp), lambda nb, c: (nb, 0)),
        # Loop-invariant blocks: constant index map -> fetched once by the pipeline
        # (VMEM still reserves the default two buffers, which fits the 48 MiB budget).
        pl.BlockSpec((Hp, G), lambda nb, c: (0, 0)),
        pl.BlockSpec((1, G), lambda nb, c: (0, 0)),
    ]
    scratch = [pltpu.VMEM((Bblk, Hp), jnp.float32)]
    cp = pltpu.CompilerParams(
        dimension_semantics=("parallel", "arbitrary"),
        vmem_limit_bytes=VMEM_LIMIT)

    if collect_seq:
        out_shape = (jax.ShapeDtypeStruct((T, B, Hp), COMPUTE_DTYPE),
                     jax.ShapeDtypeStruct((B, Hp), jnp.float32))
        out_specs = (pl.BlockSpec((Tt, Bblk, Hp), lambda nb, c: (c, nb, 0)),
                     pl.BlockSpec((Bblk, Hp), lambda nb, c: (nb, 0)))
        kernel = gru_scan_all_kernel
    else:
        out_shape = jax.ShapeDtypeStruct((B, Hp), jnp.float32)
        out_specs = pl.BlockSpec((Bblk, Hp), lambda nb, c: (nb, 0))
        kernel = gru_scan_last_kernel

    return pl.pallas_call(
        kernel,
        out_shape=out_shape,
        grid_spec=pltpu.PrefetchScalarGridSpec(
            num_scalar_prefetch=0,
            grid=(n_bb, T // Tt),
            in_specs=in_specs,
            out_specs=out_specs,
            scratch_shapes=scratch),
        compiler_params=cp,
    )(xg, h0, whhT, bhh)


# ---------------------------------------------------------------------------
# EncoderDecoder.forward
# ---------------------------------------------------------------------------
def encoder_decoder_forward(params, enc_X, dec_X):
    B, Te = enc_X.shape
    Td = dec_X.shape[1]
    V, E = params["enc_emb"].shape
    H = params["enc_w_hh"].shape[1]
    Hp = _round_up(H, LANE)
    Vp = _round_up(V, LANE)
    G = 3 * Hp
    f32 = jnp.float32
    cd = COMPUTE_DTYPE

    # ----- 128-lane padded / transposed weight views (PyTorch gate order r, z, n) -----
    # Padding is mathematically inert: padded hidden lanes stay exactly zero through the
    # GRU update (h0 pad = 0, padded weight rows/cols = 0) -- do not pad with non-zeros.
    def gate_pad_T(w, in_dim, in_pad):
        # w: (3H, in_dim)  ->  (in_pad, 3*Hp), each gate block padded H -> Hp
        w3 = w.reshape(3, H, in_dim)
        w3 = _pad_axis(w3, 1, Hp)
        w3 = _pad_axis(w3, 2, in_pad)
        return jnp.transpose(w3, (2, 0, 1)).reshape(in_pad, G).astype(cd)

    def gate_pad_bias(b):
        return _pad_axis(b.reshape(3, H), 1, Hp).reshape(1, G).astype(f32)

    enc_wihT = gate_pad_T(params["enc_w_ih"], E, E)               # (E, 3Hp)
    enc_whhT = gate_pad_T(params["enc_w_hh"], H, Hp)              # (Hp, 3Hp)
    enc_bih = gate_pad_bias(params["enc_b_ih"])
    enc_bhh = gate_pad_bias(params["enc_b_hh"])

    dec_w_ih = params["dec_w_ih"]                                 # (3H, E+H)
    dec_wihT = jnp.concatenate(
        [gate_pad_T(dec_w_ih[:, :E], E, E),                       # emb part  (E, 3Hp)
         gate_pad_T(dec_w_ih[:, E:], H, Hp)], axis=0)             # ctx part  (Hp, 3Hp)
    dec_whhT = gate_pad_T(params["dec_w_hh"], H, Hp)
    dec_bih = gate_pad_bias(params["dec_b_ih"])
    dec_bhh = gate_pad_bias(params["dec_b_hh"])

    wdT = _pad_axis(_pad_axis(params["dense_w"], 0, Vp), 1, Hp).T.astype(cd)  # (Hp, Vp)
    bd = _pad_axis(params["dense_b"], 0, Vp).reshape(1, Vp).astype(f32)

    # ---------------- encoder ----------------
    # TODO(synk): embedding gather stays in plain JAX (no clean Pallas gather);
    # indexing with X.T yields the time-major layout directly (no transpose op).
    enc_emb_t = params["enc_emb"][enc_X.T].astype(cd)             # (Te, B, E)
    xg_enc = matmul_bias(enc_emb_t.reshape(Te * B, E), enc_wihT, enc_bih)
    xg_enc = xg_enc.reshape(Te, B, G)
    h0 = jnp.zeros((B, Hp), f32)
    enc_hT = gru_scan(xg_enc, h0, enc_whhT, enc_bhh, collect_seq=False)   # (B, Hp)

    # decoder.init_state(enc_outputs) -> encoder final hidden state
    dec_h0 = enc_hT

    # ---------------- decoder ----------------
    dec_emb_t = params["dec_emb"][dec_X.T].astype(cd)             # (Td, B, E)
    # Context folded into the big parallel input-gate matmul (one concat in the
    # pipelined parallel stage) -> no per-step ctx add on the serial recurrence.
    ctx = jnp.broadcast_to(dec_h0.astype(cd)[None], (Td, B, Hp))
    dec_in = jnp.concatenate([dec_emb_t, ctx], axis=-1)           # (Td, B, E+Hp)
    xg_dec = matmul_bias(dec_in.reshape(Td * B, E + Hp), dec_wihT, dec_bih)
    xg_dec = xg_dec.reshape(Td, B, G)

    hseq, dec_hT = gru_scan(xg_dec, dec_h0, dec_whhT, dec_bhh, collect_seq=True)

    # Vocab head: transpose the small (Hp-wide, bf16) hidden sequence instead of the
    # logits so the big matmul writes (B, Td, Vp) directly -> no logits transpose.
    hseq_bm = jnp.transpose(hseq, (1, 0, 2)).reshape(B * Td, Hp)
    logits = matmul_bias(hseq_bm, wdT, bd).reshape(B, Td, Vp)[:, :, :V]
    state = dec_hT[:, :H][None]                                   # (1, B, H)
    return logits, state


# ---------------------------------------------------------------------------
# Parameters (PyTorch layout / init convention)
# ---------------------------------------------------------------------------
def make_params(key, vocab, embed, hidden):
    ks = jax.random.split(key, 12)
    s = 1.0 / jnp.sqrt(hidden)
    u = lambda k, shape: jax.random.uniform(k, shape, jnp.float32, -s, s)
    return {
        "enc_emb": jax.random.normal(ks[0], (vocab, embed), jnp.float32) * 0.1,
        "enc_w_ih": u(ks[1], (3 * hidden, embed)),
        "enc_w_hh": u(ks[2], (3 * hidden, hidden)),
        "enc_b_ih": u(ks[3], (3 * hidden,)),
        "enc_b_hh": u(ks[4], (3 * hidden,)),
        "dec_emb": jax.random.normal(ks[5], (vocab, embed), jnp.float32) * 0.1,
        "dec_w_ih": u(ks[6], (3 * hidden, embed + hidden)),
        "dec_w_hh": u(ks[7], (3 * hidden, hidden)),
        "dec_b_ih": u(ks[8], (3 * hidden,)),
        "dec_b_hh": u(ks[9], (3 * hidden,)),
        "dense_w": u(ks[10], (vocab, hidden)),
        "dense_b": u(ks[11], (vocab,)),
    }


if __name__ == "__main__":
    VOCAB, EMBED, HIDDEN = 32, 32, 32
    B, T_ENC, T_DEC = 8, 8, 8

    key = jax.random.PRNGKey(0)
    k_p, k_e, k_d = jax.random.split(key, 3)
    params = make_params(k_p, VOCAB, EMBED, HIDDEN)
    enc_X = jax.random.randint(k_e, (B, T_ENC), 0, VOCAB, dtype=jnp.int32)
    dec_X = jax.random.randint(k_d, (B, T_DEC), 0, VOCAB, dtype=jnp.int32)

    output, state = jax.jit(encoder_decoder_forward)(params, enc_X, dec_X)
    jax.block_until_ready((output, state))

    assert output.shape == (B, T_DEC, VOCAB), output.shape
    assert state.shape == (1, B, HIDDEN), state.shape
    assert jnp.all(jnp.isfinite(output)) and jnp.all(jnp.isfinite(state))
    print("KERNEL_OK")
</pallas_src>

<mosaic_0001>
module attributes {stable_mosaic.version = 11 : i64} {
  func.func @matmul_bias_kernel(%arg0: i32, %arg1: i32, %arg2: memref<64x32xbf16, #tpu.memory_space<vmem>>, %arg3: memref<32x384xbf16, #tpu.memory_space<vmem>>, %arg4: memref<1x384xf32, #tpu.memory_space<vmem>>, %arg5: memref<64x384xf32, #tpu.memory_space<vmem>>) attributes {dimension_semantics = [#tpu.dimension_semantics<parallel>, #tpu.dimension_semantics<parallel>], iteration_bounds = array<i64: 1, 1>, scalar_prefetch = 0 : i64, scratch_operands = 0 : i64, tpu.core_type = #tpu.core_type<tc>, window_params = [{transform_indices = @transform_0, window_bounds = array<i64: 64, 32>}, {transform_indices = @transform_1, window_bounds = array<i64: 32, 384>}, {transform_indices = @transform_2, window_bounds = array<i64: 1, 384>}, {transform_indices = @transform_3, window_bounds = array<i64: 64, 384>}]} {
    %c0 = arith.constant 0 : index
    %c0_0 = arith.constant 0 : index
    %0 = vector.load %arg2[%c0, %c0_0] : memref<64x32xbf16, #tpu.memory_space<vmem>>, vector<64x32xbf16>
    %c0_1 = arith.constant 0 : index
    %c0_2 = arith.constant 0 : index
    %1 = vector.load %arg3[%c0_1, %c0_2] : memref<32x384xbf16, #tpu.memory_space<vmem>>, vector<32x384xbf16>
    %cst = arith.constant dense<0.000000e+00> : vector<64x384xf32>
    %2 = tpu.matmul %0, %1, %cst {dimension_numbers = #tpu.dot_dimension_numbers<[1], [0], [0], [1], [0, 0, 1, 1], [], []>} : vector<64x32xbf16>, vector<32x384xbf16>, vector<64x384xf32> -> vector<64x384xf32>
    %c0_3 = arith.constant 0 : index
    %c0_4 = arith.constant 0 : index
    %3 = vector.load %arg4[%c0_3, %c0_4] : memref<1x384xf32, #tpu.memory_space<vmem>>, vector<1x384xf32>
    %4 = vector.broadcast %3 : vector<1x384xf32> to vector<64x384xf32>
    %5 = arith.addf %2, %4 : vector<64x384xf32>
    %c0_5 = arith.constant 0 : index
    %c0_6 = arith.constant 0 : index
    %6 = vector.load %arg5[%c0_5, %c0_6] : memref<64x384xf32, #tpu.memory_space<vmem>>, vector<64x384xf32>
    tpu.vector_store %arg5[%c0_5, %c0_6], %5 {strides = array<i32>} : memref<64x384xf32, #tpu.memory_space<vmem>>, vector<64x384xf32>,
    return
  }
  func.func @transform_0(%arg0: i32, %arg1: i32) -> (i32, i32) {
    %c0_i32 = arith.constant 0 : i32
    %c0_i32_0 = arith.constant 0 : i32
    return %arg0, %c0_i32 : i32, i32
  }
  func.func @transform_1(%arg0: i32, %arg1: i32) -> (i32, i32) {
    %c0_i32 = arith.constant 0 : i32
    %c0_i32_0 = arith.constant 0 : i32
    return %c0_i32, %arg1 : i32, i32
  }
  func.func @transform_2(%arg0: i32, %arg1: i32) -> (i32, i32) {
    %c0_i32 = arith.constant 0 : i32
    %c0_i32_0 = arith.constant 0 : i32
    return %c0_i32, %arg1 : i32, i32
  }
  func.func @transform_3(%arg0: i32, %arg1: i32) -> (i32, i32) {
    %c0_i32 = arith.constant 0 : i32
    return %arg0, %arg1 : i32, i32
  }
}

module attributes {stable_mosaic.version = 11 : i64} {
  func.func @gru_scan_last_kernel(%arg0: i32, %arg1: i32, %arg2: memref<8x8x384xf32, #tpu.memory_space<vmem>>, %arg3: memref<8x128xf32, #tpu.memory_space<vmem>>, %arg4: memref<128x384xbf16, #tpu.memory_space<vmem>>, %arg5: memref<1x384xf32, #tpu.memory_space<vmem>>, %arg6: memref<8x128xf32, #tpu.memory_space<vmem>>, %arg7: memref<8x128xf32, #tpu.memory_space<vmem>>) attributes {dimension_semantics = [#tpu.dimension_semantics<parallel>, #tpu.dimension_semantics<arbitrary>], iteration_bounds = array<i64: 1, 1>, scalar_prefetch = 0 : i64, scratch_operands = 1 : i64, tpu.core_type = #tpu.core_type<tc>, window_params = [{transform_indices = @transform_0, window_bounds = array<i64: 8, 8, 384>}, {transform_indices = @transform_1, window_bounds = array<i64: 8, 128>}, {pipeline_mode = #tpu.pipeline_mode<synchronous>, transform_indices = @transform_2, window_bounds = array<i64: 128, 384>}, {pipeline_mode = #tpu.pipeline_mode<synchronous>, transform_indices = @transform_3, window_bounds = array<i64: 1, 384>}, {transform_indices = @transform_4, window_bounds = array<i64: 8, 128>}]} {
    %c0_i32 = arith.constant 0 : i32
    %0 = arith.cmpi eq, %arg1, %c0_i32 : i32
    %1 = arith.extui %0 : i1 to i32
    %c0_i32_0 = arith.constant 0 : i32
    %2 = arith.cmpi ne, %1, %c0_i32_0 : i32
    scf.if %2 {
      %c0_116 = arith.constant 0 : index
      %c0_117 = arith.constant 0 : index
      %301 = vector.load %arg3[%c0_116, %c0_117] : memref<8x128xf32, #tpu.memory_space<vmem>>, vector<8x128xf32>
      %c0_118 = arith.constant 0 : index
      %c0_119 = arith.constant 0 : index
      %302 = vector.load %arg7[%c0_118, %c0_119] : memref<8x128xf32, #tpu.memory_space<vmem>>, vector<8x128xf32>
      tpu.vector_store %arg7[%c0_118, %c0_119], %301 {strides = array<i32>} : memref<8x128xf32, #tpu.memory_space<vmem>>, vector<8x128xf32>,
    } else {
    }
    %c0_i32_1 = arith.constant 0 : i32
    %3 = arith.index_cast %c0_i32_1 : i32 to index
    %c0 = arith.constant 0 : index
    %c0_2 = arith.constant 0 : index
    %4 = vector.load %arg2[%3, %c0, %c0_2] : memref<8x8x384xf32, #tpu.memory_space<vmem>>, vector<1x8x384xf32>
    %5 = vector.shape_cast %4 : vector<1x8x384xf32> to vector<8x384xf32>
    %c0_3 = arith.constant 0 : index
    %c0_4 = arith.constant 0 : index
    %6 = vector.load %arg7[%c0_3, %c0_4] : memref<8x128xf32, #tpu.memory_space<vmem>>, vector<8x128xf32>
    %7 = arith.truncf %6 : vector<8x128xf32> to vector<8x128xbf16>
    %c0_5 = arith.constant 0 : index
    %c0_6 = arith.constant 0 : index
    %8 = vector.load %arg4[%c0_5, %c0_6] : memref<128x384xbf16, #tpu.memory_space<vmem>>, vector<128x384xbf16>
    %cst = arith.constant dense<0.000000e+00> : vector<8x384xf32>
    %9 = tpu.matmul %7, %8, %cst {dimension_numbers = #tpu.dot_dimension_numbers<[1], [0], [0], [1], [0, 0, 1, 1], [], []>} : vector<8x128xbf16>, vector<128x384xbf16>, vector<8x384xf32> -> vector<8x384xf32>
    %c0_7 = arith.constant 0 : index
    %c0_8 = arith.constant 0 : index
    %10 = vector.load %arg5[%c0_7, %c0_8] : memref<1x384xf32, #tpu.memory_space<vmem>>, vector<1x384xf32>
    %11 = vector.broadcast %10 : vector<1x384xf32> to vector<8x384xf32>
    %12 = arith.addf %9, %11 : vector<8x384xf32>
    %13 = vector.extract_strided_slice %5 {offsets = [0, 0], sizes = [8, 128], strides = [1, 1]} : vector<8x384xf32> to vector<8x128xf32>
    %14 = vector.extract_strided_slice %12 {offsets = [0, 0], sizes = [8, 128], strides = [1, 1]} : vector<8x384xf32> to vector<8x128xf32>
    %15 = arith.addf %13, %14 : vector<8x128xf32>
    %16 = arith.negf %15 : vector<8x128xf32>
    %17 = math.exp %16 : vector<8x128xf32>
    %cst_9 = arith.constant 1.000000e+00 : f32
    %18 = vector.broadcast %cst_9 : f32 to vector<8x128xf32>
    %19 = arith.addf %18, %17 : vector<8x128xf32>
    %20 = arith.divf %18, %19 : vector<8x128xf32>
    %21 = vector.extract_strided_slice %5 {offsets = [0, 128], sizes = [8, 128], strides = [1, 1]} : vector<8x384xf32> to vector<8x128xf32>
    %22 = vector.extract_strided_slice %12 {offsets = [0, 128], sizes = [8, 128], strides = [1, 1]} : vector<8x384xf32> to vector<8x128xf32>
    %23 = arith.addf %21, %22 : vector<8x128xf32>
    %24 = arith.negf %23 : vector<8x128xf32>
    %25 = math.exp %24 : vector<8x128xf32>
    %cst_10 = arith.constant 1.000000e+00 : f32
    %26 = vector.broadcast %cst_10 : f32 to vector<8x128xf32>
    %27 = arith.addf %26, %25 : vector<8x128xf32>
    %28 = arith.divf %26, %27 : vector<8x128xf32>
    %29 = vector.extract_strided_slice %5 {offsets = [0, 256], sizes = [8, 128], strides = [1, 1]} : vector<8x384xf32> to vector<8x128xf32>
    %30 = vector.extract_strided_slice %12 {offsets = [0, 256], sizes = [8, 128], strides = [1, 1]} : vector<8x384xf32> to vector<8x128xf32>
    %31 = arith.mulf %20, %30 : vector<8x128xf32>
    %32 = arith.addf %29, %31 : vector<8x128xf32>
    %33 = math.tanh %32 : vector<8x128xf32>
    %cst_11 = arith.constant 1.000000e+00 : f32
    %34 = vector.broadcast %cst_11 : f32 to vector<8x128xf32>
    %35 = arith.subf %34, %28 : vector<8x128xf32>
    %36 = arith.mulf %35, %33 : vector<8x128xf32>
    %37 = arith.mulf %28, %6 : vector<8x128xf32>
    %38 = arith.addf %36, %37 : vector<8x128xf32>
    %c0_12 = arith.constant 0 : index
    %c0_13 = arith.constant 0 : index
    %39 = vector.load %arg7[%c0_12, %c0_13] : memref<8x128xf32, #tpu.memory_space<vmem>>, vector<8x128xf32>
    tpu.vector_store %arg7[%c0_12, %c0_13], %38 {strides = array<i32>} : memref<8x128xf32, #tpu.memory_space<vmem>>, vector<8x128xf32>,
    %c1_i32 = arith.constant 1 : i32
    %40 = arith.index_cast %c1_i32 : i32 to index
    %c0_14 = arith.constant 0 : index
    %c0_15 = arith.constant 0 : index
    %41 = vector.load %arg2[%40, %c0_14, %c0_15] : memref<8x8x384xf32, #tpu.memory_space<vmem>>, vector<1x8x384xf32>
    %42 = vector.shape_cast %41 : vector<1x8x384xf32> to vector<8x384xf32>
    %c0_16 = arith.constant 0 : index
    %c0_17 = arith.constant 0 : index
    %43 = vector.load %arg7[%c0_16, %c0_17] : memref<8x128xf32, #tpu.memory_space<vmem>>, vector<8x128xf32>
    %44 = arith.truncf %43 : vector<8x128xf32> to vector<8x128xbf16>
    %c0_18 = arith.constant 0 : index
    %c0_19 = arith.constant 0 : index
    %45 = vector.load %arg4[%c0_18, %c0_19] : memref<128x384xbf16, #tpu.memory_space<vmem>>, vector<128x384xbf16>
    %cst_20 = arith.constant dense<0.000000e+00> : vector<8x384xf32>
    %46 = tpu.matmul %44, %45, %cst_20 {dimension_numbers = #tpu.dot_dimension_numbers<[1], [0], [0], [1], [0, 0, 1, 1], [], []>} : vector<8x128xbf16>, vector<128x384xbf16>, vector<8x384xf32> -> vector<8x384xf32>
    %c0_21 = arith.constant 0 : index
    %c0_22 = arith.constant 0 : index
    %47 = vector.load %arg5[%c0_21, %c0_22] : memref<1x384xf32, #tpu.memory_space<vmem>>, vector<1x384xf32>
    %48 = vector.broadcast %47 : vector<1x384xf32> to vector<8x384xf32>
    %49 = arith.addf %46, %48 : vector<8x384xf32>
    %50 = vector.extract_strided_slice %42 {offsets = [0, 0], sizes = [8, 128], strides = [1, 1]} : vector<8x384xf32> to vector<8x128xf32>
    %51 = vector.extract_strided_slice %49 {offsets = [0, 0], sizes = [8, 128], strides = [1, 1]} : vector<8x384xf32> to vector<8x128xf32>
    %52 = arith.addf %50, %51 : vector<8x128xf32>
    %53 = arith.negf %52 : vector<8x128xf32>
    %54 = math.exp %53 : vector<8x128xf32>
    %cst_23 = arith.constant 1.000000e+00 : f32
    %55 = vector.broadcast %cst_23 : f32 to vector<8x128xf32>
    %56 = arith.addf %55, %54 : vector<8x128xf32>
    %57 = arith.divf %55, %56 : vector<8x128xf32>
    %58 = vector.extract_strided_slice %42 {offsets = [0, 128], sizes = [8, 128], strides = [1, 1]} : vector<8x384xf32> to vector<8x128xf32>
    %59 = vector.extract_strided_slice %49 {offsets = [0, 128], sizes = [8, 128], strides = [1, 1]} : vector<8x384xf32> to vector<8x128xf32>
    %60 = arith.addf %58, %59 : vector<8x128xf32>
    %61 = arith.negf %60 : vector<8x128xf32>
    %62 = math.exp %61 : vector<8x128xf32>
    %cst_24 = arith.constant 1.000000e+00 : f32
    %63 = vector.broadcast %cst_24 : f32 to vector<8x128xf32>
    %64 = arith.addf %63, %62 : vector<8x128xf32>
    %65 = arith.divf %63, %64 : vector<8x128xf32>
    %66 = vector.extract_strided_slice %42 {offsets = [0, 256], sizes = [8, 128], strides = [1, 1]} : vector<8x384xf32> to vector<8x128xf32>
    %67 = vector.extract_strided_slice %49 {offsets = [0, 256], sizes = [8, 128], strides = [1, 1]} : vector<8x384xf32> to vector<8x128xf32>
    %68 = arith.mulf %57, %67 : vector<8x128xf32>
    %69 = arith.addf %66, %68 : vector<8x128xf32>
    %70 = math.tanh %69 : vector<8x128xf32>
    %cst_25 = arith.constant 1.000000e+00 : f32
    %71 = vector.broadcast %cst_25 : f32 to vector<8x128xf32>
    %72 = arith.subf %71, %65 : vector<8x128xf32>
    %73 = arith.mulf %72, %70 : vector<8x128xf32>
    %74 = arith.mulf %65, %43 : vector<8x128xf32>
    %75 = arith.addf %73, %74 : vector<8x128xf32>
    %c0_26 = arith.constant 0 : index
    %c0_27 = arith.constant 0 : index
    %76 = vector.load %arg7[%c0_26, %c0_27] : memref<8x128xf32, #tpu.memory_space<vmem>>, vector<8x128xf32>
    tpu.vector_store %arg7[%c0_26, %c0_27], %75 {strides = array<i32>} : memref<8x128xf32, #tpu.memory_space<vmem>>, vector<8x128xf32>,
    %c2_i32 = arith.constant 2 : i32
    %77 = arith.index_cast %c2_i32 : i32 to index
    %c0_28 = arith.constant 0 : index
    %c0_29 = arith.constant 0 : index
    %78 = vector.load %arg2[%77, %c0_28, %c0_29] : memref<8x8x384xf32, #tpu.memory_space<vmem>>, vector<1x8x384xf32>
    %79 = vector.shape_cast %78 : vector<1x8x384xf32> to vector<8x384xf32>
    %c0_30 = arith.constant 0 : index
    %c0_31 = arith.constant 0 : index
    %80 = vector.load %arg7[%c0_30, %c0_31] : memref<8x128xf32, #tpu.memory_space<vmem>>, vector<8x128xf32>
    %81 = arith.truncf %80 : vector<8x128xf32> to vector<8x128xbf16>
    %c0_32 = arith.constant 0 : index
    %c0_33 = arith.constant 0 : index
    %82 = vector.load %arg4[%c0_32, %c0_33] : memref<128x384xbf16, #tpu.memory_space<vmem>>, vector<128x384xbf16>
    %cst_34 = arith.constant dense<0.000000e+00> : vector<8x384xf32>
    %83 = tpu.matmul %81, %82, %cst_34 {dimension_numbers = #tpu.dot_dimension_numbers<[1], [0], [0], [1], [0, 0, 1, 1], [], []>} : vector<8x128xbf16>, vector<128x384xbf16>, vector<8x384xf32> -> vector<8x384xf32>
    %c0_35 = arith.constant 0 : index
    %c0_36 = arith.constant 0 : index
    %84 = vector.load %arg5[%c0_35, %c0_36] : memref<1x384xf32, #tpu.memory_space<vmem>>, vector<1x384xf32>
    %85 = vector.broadcast %84 : vector<1x384xf32> to vector<8x384xf32>
    %86 = arith.addf %83, %85 : vector<8x384xf32>
    %87 = vector.extract_strided_slice %79 {offsets = [0, 0], sizes = [8, 128], strides = [1, 1]} : vector<8x384xf32> to vector<8x128xf32>
    %88 = vector.extract_strided_slice %86 {offsets = [0, 0], sizes = [8, 128], strides = [1, 1]} : vector<8x384xf32> to vector<8x128xf32>
    %89 = arith.addf %87, %88 : vector<8x128xf32>
    %90 = arith.negf %89 : vector<8x128xf32>
    %91 = math.exp %90 : vector<8x128xf32>
    %cst_37 = arith.constant 1.000000e+00 : f32
    %92 = vector.broadcast %cst_37 : f32 to vector<8x128xf32>
    %93 = arith.addf %92, %91 : vector<8x128xf32>
    %94 = arith.divf %92, %93 : vector<8x128xf32>
    %95 = vector.extract_strided_slice %79 {offsets = [0, 128], sizes = [8, 128], strides = [1, 1]} : vector<8x384xf32> to vector<8x128xf32>
    %96 = vector.extract_strided_slice %86 {offsets = [0, 128], sizes = [8, 128], strides = [1, 1]} : vector<8x384xf32> to vector<8x128xf32>
    %97 = arith.addf %95, %96 : vector<8x128xf32>
    %98 = arith.negf %97 : vector<8x128xf32>
    %99 = math.exp %98 : vector<8x128xf32>
    %cst_38 = arith.constant 1.000000e+00 : f32
    %100 = vector.broadcast %cst_38 : f32 to vector<8x128xf32>
    %101 = arith.addf %100, %99 : vector<8x128xf32>
    %102 = arith.divf %100, %101 : vector<8x128xf32>
    %103 = vector.extract_strided_slice %79 {offsets = [0, 256], sizes = [8, 128], strides = [1, 1]} : vector<8x384xf32> to vector<8x128xf32>
    %104 = vector.extract_strided_slice %86 {offsets = [0, 256], sizes = [8, 128], strides = [1, 1]} : vector<8x384xf32> to vector<8x128xf32>
    %105 = arith.mulf %94, %104 : vector<8x128xf32>
    %106 = arith.addf %103, %105 : vector<8x128xf32>
    %107 = math.tanh %106 : vector<8x128xf32>
    %cst_39 = arith.constant 1.000000e+00 : f32
    %108 = vector.broadcast %cst_39 : f32 to vector<8x128xf32>
    %109 = arith.subf %108, %102 : vector<8x128xf32>
    %110 = arith.mulf %109, %107 : vector<8x128xf32>
    %111 = arith.mulf %102, %80 : vector<8x128xf32>
    %112 = arith.addf %110, %111 : vector<8x128xf32>
    %c0_40 = arith.constant 0 : index
    %c0_41 = arith.constant 0 : index
    %113 = vector.load %arg7[%c0_40, %c0_41] : memref<8x128xf32, #tpu.memory_space<vmem>>, vector<8x128xf32>
    tpu.vector_store %arg7[%c0_40, %c0_41], %112 {strides = array<i32>} : memref<8x128xf32, #tpu.memory_space<vmem>>, vector<8x128xf32>,
    %c3_i32 = arith.constant 3 : i32
    %114 = arith.index_cast %c3_i32 : i32 to index
    %c0_42 = arith.constant 0 : index
    %c0_43 = arith.constant 0 : index
    %115 = vector.load %arg2[%114, %c0_42, %c0_43] : memref<8x8x384xf32, #tpu.memory_space<vmem>>, vector<1x8x384xf32>
    %116 = vector.shape_cast %115 : vector<1x8x384xf32> to vector<8x384xf32>
    %c0_44 = arith.constant 0 : index
    %c0_45 = arith.constant 0 : index
    %117 = vector.load %arg7[%c0_44, %c0_45] : memref<8x128xf32, #tpu.memory_space<vmem>>, vector<8x128xf32>
    %118 = arith.truncf %117 : vector<8x128xf32> to vector<8x128xbf16>
    %c0_46 = arith.constant 0 : index
    %c0_47 = arith.constant 0 : index
    %119 = vector.load %arg4[%c0_46, %c0_47] : memref<128x384xbf16, #tpu.memory_space<vmem>>, vector<128x384xbf16>
    %cst_48 = arith.constant dense<0.000000e+00> : vector<8x384xf32>
    %120 = tpu.matmul %118, %119, %cst_48 {dimension_numbers = #tpu.dot_dimension_numbers<[1], [0], [0], [1], [0, 0, 1, 1], [], []>} : vector<8x128xbf16>, vector<128x384xbf16>, vector<8x384xf32> -> vector<8x384xf32>
    %c0_49 = arith.constant 0 : index
    %c0_50 = arith.constant 0 : index
    %121 = vector.load %arg5[%c0_49, %c0_50] : memref<1x384xf32, #tpu.memory_space<vmem>>, vector<1x384xf32>
    %122 = vector.broadcast %121 : vector<1x384xf32> to vector<8x384xf32>
    %123 = arith.addf %120, %122 : vector<8x384xf32>
    %124 = vector.extract_strided_slice %116 {offsets = [0, 0], sizes = [8, 128], strides = [1, 1]} : vector<8x384xf32> to vector<8x128xf32>
    %125 = vector.extract_strided_slice %123 {offsets = [0, 0], sizes = [8, 128], strides = [1, 1]} : vector<8x384xf32> to vector<8x128xf32>
    %126 = arith.addf %124, %125 : vector<8x128xf32>
    %127 = arith.negf %126 : vector<8x128xf32>
    %128 = math.exp %127 : vector<8x128xf32>
    %cst_51 = arith.constant 1.000000e+00 : f32
    %129 = vector.broadcast %cst_51 : f32 to vector<8x128xf32>
    %130 = arith.addf %129, %128 : vector<8x128xf32>
    %131 = arith.divf %129, %130 : vector<8x128xf32>
    %132 = vector.extract_strided_slice %116 {offsets = [0, 128], sizes = [8, 128], strides = [1, 1]} : vector<8x384xf32> to vector<8x128xf32>
    %133 = vector.extract_strided_slice %123 {offsets = [0, 128], sizes = [8, 128], strides = [1, 1]} : vector<8x384xf32> to vector<8x128xf32>
    %134 = arith.addf %132, %133 : vector<8x128xf32>
    %135 = arith.negf %134 : vector<8x128xf32>
    %136 = math.exp %135 : vector<8x128xf32>
    %cst_52 = arith.constant 1.000000e+00 : f32
    %137 = vector.broadcast %cst_52 : f32 to vector<8x128xf32>
    %138 = arith.addf %137, %136 : vector<8x128xf32>
    %139 = arith.divf %137, %138 : vector<8x128xf32>
    %140 = vector.extract_strided_slice %116 {offsets = [0, 256], sizes = [8, 128], strides = [1, 1]} : vector<8x384xf32> to vector<8x128xf32>
    %141 = vector.extract_strided_slice %123 {offsets = [0, 256], sizes = [8, 128], strides = [1, 1]} : vector<8x384xf32> to vector<8x128xf32>
    %142 = arith.mulf %131, %141 : vector<8x128xf32>
    %143 = arith.addf %140, %142 : vector<8x128xf32>
    %144 = math.tanh %143 : vector<8x128xf32>
    %cst_53 = arith.constant 1.000000e+00 : f32
    %145 = vector.broadcast %cst_53 : f32 to vector<8x128xf32>
    %146 = arith.subf %145, %139 : vector<8x128xf32>
    %147 = arith.mulf %146, %144 : vector<8x128xf32>
    %148 = arith.mulf %139, %117 : vector<8x128xf32>
    %149 = arith.addf %147, %148 : vector<8x128xf32>
    %c0_54 = arith.constant 0 : index
    %c0_55 = arith.constant 0 : index
    %150 = vector.load %arg7[%c0_54, %c0_55] : memref<8x128xf32, #tpu.memory_space<vmem>>, vector<8x128xf32>
    tpu.vector_store %arg7[%c0_54, %c0_55], %149 {strides = array<i32>} : memref<8x128xf32, #tpu.memory_space<vmem>>, vector<8x128xf32>,
    %c4_i32 = arith.constant 4 : i32
    %151 = arith.index_cast %c4_i32 : i32 to index
    %c0_56 = arith.constant 0 : index
    %c0_57 = arith.constant 0 : index
    %152 = vector.load %arg2[%151, %c0_56, %c0_57] : memref<8x8x384xf32, #tpu.memory_space<vmem>>, vector<1x8x384xf32>
    %153 = vector.shape_cast %152 : vector<1x8x384xf32> to vector<8x384xf32>
    %c0_58 = arith.constant 0 : index
    %c0_59 = arith.constant 0 : index
    %154 = vector.load %arg7[%c0_58, %c0_59] : memref<8x128xf32, #tpu.memory_space<vmem>>, vector<8x128xf32>
    %155 = arith.truncf %154 : vector<8x128xf32> to vector<8x128xbf16>
    %c0_60 = arith.constant 0 : index
    %c0_61 = arith.constant 0 : index
    %156 = vector.load %arg4[%c0_60, %c0_61] : memref<128x384xbf16, #tpu.memory_space<vmem>>, vector<128x384xbf16>
    %cst_62 = arith.constant dense<0.000000e+00> : vector<8x384xf32>
    %157 = tpu.matmul %155, %156, %cst_62 {dimension_numbers = #tpu.dot_dimension_numbers<[1], [0], [0], [1], [0, 0, 1, 1], [], []>} : vector<8x128xbf16>, vector<128x384xbf16>, vector<8x384xf32> -> vector<8x384xf32>
    %c0_63 = arith.constant 0 : index
    %c0_64 = arith.constant 0 : index
    %158 = vector.load %arg5[%c0_63, %c0_64] : memref<1x384xf32, #tpu.memory_space<vmem>>, vector<1x384xf32>
    %159 = vector.broadcast %158 : vector<1x384xf32> to vector<8x384xf32>
    %160 = arith.addf %157, %159 : vector<8x384xf32>
    %161 = vector.extract_strided_slice %153 {offsets = [0, 0], sizes = [8, 128], strides = [1, 1]} : vector<8x384xf32> to vector<8x128xf32>
    %162 = vector.extract_strided_slice %160 {offsets = [0, 0], sizes = [8, 128], strides = [1, 1]} : vector<8x384xf32> to vector<8x128xf32>
    %163 = arith.addf %161, %162 : vector<8x128xf32>
    %164 = arith.negf %163 : vector<8x128xf32>
    %165 = math.exp %164 : vector<8x128xf32>
    %cst_65 = arith.constant 1.000000e+00 : f32
    %166 = vector.broadcast %cst_65 : f32 to vector<8x128xf32>
    %167 = arith.addf %166, %165 : vector<8x128xf32>
    %168 = arith.divf %166, %167 : vector<8x128xf32>
    %169 = vector.extract_strided_slice %153 {offsets = [0, 128], sizes = [8, 128], strides = [1, 1]} : vector<8x384xf32> to vector<8x128xf32>
    %170 = vector.extract_strided_slice %160 {offsets = [0, 128], sizes = [8, 128], strides = [1, 1]} : vector<8x384xf32> to vector<8x128xf32>
    %171 = arith.addf %169, %170 : vector<8x128xf32>
    %172 = arith.negf %171 : vector<8x128xf32>
    %173 = math.exp %172 : vector<8x128xf32>
    %cst_66 = arith.constant 1.000000e+00 : f32
    %174 = vector.broadcast %cst_66 : f32 to vector<8x128xf32>
    %175 = arith.addf %174, %173 : vector<8x128xf32>
    %176 = arith.divf %174, %175 : vector<8x128xf32>
    %177 = vector.extract_strided_slice %153 {offsets = [0, 256], sizes = [8, 128], strides = [1, 1]} : vector<8x384xf32> to vector<8x128xf32>
    %178 = vector.extract_strided_slice %160 {offsets = [0, 256], sizes = [8, 128], strides = [1, 1]} : vector<8x384xf32> to vector<8x128xf32>
    %179 = arith.mulf %168, %178 : vector<8x128xf32>
    %180 = arith.addf %177, %179 : vector<8x128xf32>
    %181 = math.tanh %180 : vector<8x128xf32>
    %cst_67 = arith.constant 1.000000e+00 : f32
    %182 = vector.broadcast %cst_67 : f32 to vector<8x128xf32>
    %183 = arith.subf %182, %176 : vector<8x128xf32>
    %184 = arith.mulf %183, %181 : vector<8x128xf32>
    %185 = arith.mulf %176, %154 : vector<8x128xf32>
    %186 = arith.addf %184, %185 : vector<8x128xf32>
    %c0_68 = arith.constant 0 : index
    %c0_69 = arith.constant 0 : index
    %187 = vector.load %arg7[%c0_68, %c0_69] : memref<8x128xf32, #tpu.memory_space<vmem>>, vector<8x128xf32>
    tpu.vector_store %arg7[%c0_68, %c0_69], %186 {strides = array<i32>} : memref<8x128xf32, #tpu.memory_space<vmem>>, vector<8x128xf32>,
    %c5_i32 = arith.constant 5 : i32
    %188 = arith.index_cast %c5_i32 : i32 to index
    %c0_70 = arith.constant 0 : index
    %c0_71 = arith.constant 0 : index
    %189 = vector.load %arg2[%188, %c0_70, %c0_71] : memref<8x8x384xf32, #tpu.memory_space<vmem>>, vector<1x8x384xf32>
    %190 = vector.shape_cast %189 : vector<1x8x384xf32> to vector<8x384xf32>
    %c0_72 = arith.constant 0 : index
    %c0_73 = arith.constant 0 : index
    %191 = vector.load %arg7[%c0_72, %c0_73] : memref<8x128xf32, #tpu.memory_space<vmem>>, vector<8x128xf32>
    %192 = arith.truncf %191 : vector<8x128xf32> to vector<8x128xbf16>
    %c0_74 = arith.constant 0 : index
    %c0_75 = arith.constant 0 : index
    %193 = vector.load %arg4[%c0_74, %c0_75] : memref<128x384xbf16, #tpu.memory_space<vmem>>, vector<128x384xbf16>
    %cst_76 = arith.constant dense<0.000000e+00> : vector<8x384xf32>
    %194 = tpu.matmul %192, %193, %cst_76 {dimension_numbers = #tpu.dot_dimension_numbers<[1], [0], [0], [1], [0, 0, 1, 1], [], []>} : vector<8x128xbf16>, vector<128x384xbf16>, vector<8x384xf32> -> vector<8x384xf32>
    %c0_77 = arith.constant 0 : index
    %c0_78 = arith.constant 0 : index
    %195 = vector.load %arg5[%c0_77, %c0_78] : memref<1x384xf32, #tpu.memory_space<vmem>>, vector<1x384xf32>
    %196 = vector.broadcast %195 : vector<1x384xf32> to vector<8x384xf32>
    %197 = arith.addf %194, %196 : vector<8x384xf32>
    %198 = vector.extract_strided_slice %190 {offsets = [0, 0], sizes = [8, 128], strides = [1, 1]} : vector<8x384xf32> to vector<8x128xf32>
    %199 = vector.extract_strided_slice %197 {offsets = [0, 0], sizes = [8, 128], strides = [1, 1]} : vector<8x384xf32> to vector<8x128xf32>
    %200 = arith.addf %198, %199 : vector<8x128xf32>
    %201 = arith.negf %200 : vector<8x128xf32>
    %202 = math.exp %201 : vector<8x128xf32>
    %cst_79 = arith.constant 1.000000e+00 : f32
    %203 = vector.broadcast %cst_79 : f32 to vector<8x128xf32>
    %204 = arith.addf %203, %202 : vector<8x128xf32>
    %205 = arith.divf %203, %204 : vector<8x128xf32>
    %206 = vector.extract_strided_slice %190 {offsets = [0, 128], sizes = [8, 128], strides = [1, 1]} : vector<8x384xf32> to vector<8x128xf32>
    %207 = vector.extract_strided_slice %197 {offsets = [0, 128], sizes = [8, 128], strides = [1, 1]} : vector<8x384xf32> to vector<8x128xf32>
    %208 = arith.addf %206, %207 : vector<8x128xf32>
    %209 = arith.negf %208 : vector<8x128xf32>
    %210 = math.exp %209 : vector<8x128xf32>
    %cst_80 = arith.constant 1.000000e+00 : f32
    %211 = vector.broadcast %cst_80 : f32 to vector<8x128xf32>
    %212 = arith.addf %211, %210 : vector<8x128xf32>
    %213 = arith.divf %211, %212 : vector<8x128xf32>
    %214 = vector.extract_strided_slice %190 {offsets = [0, 256], sizes = [8, 128], strides = [1, 1]} : vector<8x384xf32> to vector<8x128xf32>
    %215 = vector.extract_strided_slice %197 {offsets = [0, 256], sizes = [8, 128], strides = [1, 1]} : vector<8x384xf32> to vector<8x128xf32>
    %216 = arith.mulf %205, %215 : vector<8x128xf32>
    %217 = arith.addf %214, %216 : vector<8x128xf32>
    %218 = math.tanh %217 : vector<8x128xf32>
    %cst_81 = arith.constant 1.000000e+00 : f32
    %219 = vector.broadcast %cst_81 : f32 to vector<8x128xf32>
    %220 = arith.subf %219, %213 : vector<8x128xf32>
    %221 = arith.mulf %220, %218 : vector<8x128xf32>
    %222 = arith.mulf %213, %191 : vector<8x128xf32>
    %223 = arith.addf %221, %222 : vector<8x128xf32>
    %c0_82 = arith.constant 0 : index
    %c0_83 = arith.constant 0 : index
    %224 = vector.load %arg7[%c0_82, %c0_83] : memref<8x128xf32, #tpu.memory_space<vmem>>, vector<8x128xf32>
    tpu.vector_store %arg7[%c0_82, %c0_83], %223 {strides = array<i32>} : memref<8x128xf32, #tpu.memory_space<vmem>>, vector<8x128xf32>,
    %c6_i32 = arith.constant 6 : i32
    %225 = arith.index_cast %c6_i32 : i32 to index
    %c0_84 = arith.constant 0 : index
    %c0_85 = arith.constant 0 : index
    %226 = vector.load %arg2[%225, %c0_84, %c0_85] : memref<8x8x384xf32, #tpu.memory_space<vmem>>, vector<1x8x384xf32>
    %227 = vector.shape_cast %226 : vector<1x8x384xf32> to vector<8x384xf32>
    %c0_86 = arith.constant 0 : index
    %c0_87 = arith.constant 0 : index
    %228 = vector.load %arg7[%c0_86, %c0_87] : memref<8x128xf32, #tpu.memory_space<vmem>>, vector<8x128xf32>
    %229 = arith.truncf %228 : vector<8x128xf32> to vector<8x128xbf16>
    %c0_88 = arith.constant 0 : index
    %c0_89 = arith.constant 0 : index
    %230 = vector.load %arg4[%c0_88, %c0_89] : memref<128x384xbf16, #tpu.memory_space<vmem>>, vector<128x384xbf16>
    %cst_90 = arith.constant dense<0.000000e+00> : vector<8x384xf32>
    %231 = tpu.matmul %229, %230, %cst_90 {dimension_numbers = #tpu.dot_dimension_numbers<[1], [0], [0], [1], [0, 0, 1, 1], [], []>} : vector<8x128xbf16>, vector<128x384xbf16>, vector<8x384xf32> -> vector<8x384xf32>
    %c0_91 = arith.constant 0 : index
    %c0_92 = arith.constant 0 : index
    %232 = vector.load %arg5[%c0_91, %c0_92] : memref<1x384xf32, #tpu.memory_space<vmem>>, vector<1x384xf32>
    %233 = vector.broadcast %232 : vector<1x384xf32> to vector<8x384xf32>
    %234 = arith.addf %231, %233 : vector<8x384xf32>
    %235 = vector.extract_strided_slice %227 {offsets = [0, 0], sizes = [8, 128], strides = [1, 1]} : vector<8x384xf32> to vector<8x128xf32>
    %236 = vector.extract_strided_slice %234 {offsets = [0, 0], sizes = [8, 128], strides = [1, 1]} : vector<8x384xf32> to vector<8x128xf32>
    %237 = arith.addf %235, %236 : vector<8x128xf32>
    %238 = arith.negf %237 : vector<8x128xf32>
    %239 = math.exp %238 : vector<8x128xf32>
    %cst_93 = arith.constant 1.000000e+00 : f32
    %240 = vector.broadcast %cst_93 : f32 to vector<8x128xf32>
    %241 = arith.addf %240, %239 : vector<8x128xf32>
    %242 = arith.divf %240, %241 : vector<8x128xf32>
    %243 = vector.extract_strided_slice %227 {offsets = [0, 128], sizes = [8, 128], strides = [1, 1]} : vector<8x384xf32> to vector<8x128xf32>
    %244 = vector.extract_strided_slice %234 {offsets = [0, 128], sizes = [8, 128], strides = [1, 1]} : vector<8x384xf32> to vector<8x128xf32>
    %245 = arith.addf %243, %244 : vector<8x128xf32>
    %246 = arith.negf %245 : vector<8x128xf32>
    %247 = math.exp %246 : vector<8x128xf32>
    %cst_94 = arith.constant 1.000000e+00 : f32
    %248 = vector.broadcast %cst_94 : f32 to vector<8x128xf32>
    %249 = arith.addf %248, %247 : vector<8x128xf32>
    %250 = arith.divf %248, %249 : vector<8x128xf32>
    %251 = vector.extract_strided_slice %227 {offsets = [0, 256], sizes = [8, 128], strides = [1, 1]} : vector<8x384xf32> to vector<8x128xf32>
    %252 = vector.extract_strided_slice %234 {offsets = [0, 256], sizes = [8, 128], strides = [1, 1]} : vector<8x384xf32> to vector<8x128xf32>
    %253 = arith.mulf %242, %252 : vector<8x128xf32>
    %254 = arith.addf %251, %253 : vector<8x128xf32>
    %255 = math.tanh %254 : vector<8x128xf32>
    %cst_95 = arith.constant 1.000000e+00 : f32
    %256 = vector.broadcast %cst_95 : f32 to vector<8x128xf32>
    %257 = arith.subf %256, %250 : vector<8x128xf32>
    %258 = arith.mulf %257, %255 : vector<8x128xf32>
    %259 = arith.mulf %250, %228 : vector<8x128xf32>
    %260 = arith.addf %258, %259 : vector<8x128xf32>
    %c0_96 = arith.constant 0 : index
    %c0_97 = arith.constant 0 : index
    %261 = vector.load %arg7[%c0_96, %c0_97] : memref<8x128xf32, #tpu.memory_space<vmem>>, vector<8x128xf32>
    tpu.vector_store %arg7[%c0_96, %c0_97], %260 {strides = array<i32>} : memref<8x128xf32, #tpu.memory_space<vmem>>, vector<8x128xf32>,
    %c7_i32 = arith.constant 7 : i32
    %262 = arith.index_cast %c7_i32 : i32 to index
    %c0_98 = arith.constant 0 : index
    %c0_99 = arith.constant 0 : index
    %263 = vector.load %arg2[%262, %c0_98, %c0_99] : memref<8x8x384xf32, #tpu.memory_space<vmem>>, vector<1x8x384xf32>
    %264 = vector.shape_cast %263 : vector<1x8x384xf32> to vector<8x384xf32>
    %c0_100 = arith.constant 0 : index
    %c0_101 = arith.constant 0 : index
    %265 = vector.load %arg7[%c0_100, %c0_101] : memref<8x128xf32, #tpu.memory_space<vmem>>, vector<8x128xf32>
    %266 = arith.truncf %265 : vector<8x128xf32> to vector<8x128xbf16>
    %c0_102 = arith.constant 0 : index
    %c0_103 = arith.constant 0 : index
    %267 = vector.load %arg4[%c0_102, %c0_103] : memref<128x384xbf16, #tpu.memory_space<vmem>>, vector<128x384xbf16>
    %cst_104 = arith.constant dense<0.000000e+00> : vector<8x384xf32>
    %268 = tpu.matmul %266, %267, %cst_104 {dimension_numbers = #tpu.dot_dimension_numbers<[1], [0], [0], [1], [0, 0, 1, 1], [], []>} : vector<8x128xbf16>, vector<128x384xbf16>, vector<8x384xf32> -> vector<8x384xf32>
    %c0_105 = arith.constant 0 : index
    %c0_106 = arith.constant 0 : index
    %269 = vector.load %arg5[%c0_105, %c0_106] : memref<1x384xf32, #tpu.memory_space<vmem>>, vector<1x384xf32>
    %270 = vector.broadcast %269 : vector<1x384xf32> to vector<8x384xf32>
    %271 = arith.addf %268, %270 : vector<8x384xf32>
    %272 = vector.extract_strided_slice %264 {offsets = [0, 0], sizes = [8, 128], strides = [1, 1]} : vector<8x384xf32> to vector<8x128xf32>
    %273 = vector.extract_strided_slice %271 {offsets = [0, 0], sizes = [8, 128], strides = [1, 1]} : vector<8x384xf32> to vector<8x128xf32>
    %274 = arith.addf %272, %273 : vector<8x128xf32>
    %275 = arith.negf %274 : vector<8x128xf32>
    %276 = math.exp %275 : vector<8x128xf32>
    %cst_107 = arith.constant 1.000000e+00 : f32
    %277 = vector.broadcast %cst_107 : f32 to vector<8x128xf32>
    %278 = arith.addf %277, %276 : vector<8x128xf32>
    %279 = arith.divf %277, %278 : vector<8x128xf32>
    %280 = vector.extract_strided_slice %264 {offsets = [0, 128], sizes = [8, 128], strides = [1, 1]} : vector<8x384xf32> to vector<8x128xf32>
    %281 = vector.extract_strided_slice %271 {offsets = [0, 128], sizes = [8, 128], strides = [1, 1]} : vector<8x384xf32> to vector<8x128xf32>
    %282 = arith.addf %280, %281 : vector<8x128xf32>
    %283 = arith.negf %282 : vector<8x128xf32>
    %284 = math.exp %283 : vector<8x128xf32>
    %cst_108 = arith.constant 1.000000e+00 : f32
    %285 = vector.broadcast %cst_108 : f32 to vector<8x128xf32>
    %286 = arith.addf %285, %284 : vector<8x128xf32>
    %287 = arith.divf %285, %286 : vector<8x128xf32>
    %288 = vector.extract_strided_slice %264 {offsets = [0, 256], sizes = [8, 128], strides = [1, 1]} : vector<8x384xf32> to vector<8x128xf32>
    %289 = vector.extract_strided_slice %271 {offsets = [0, 256], sizes = [8, 128], strides = [1, 1]} : vector<8x384xf32> to vector<8x128xf32>
    %290 = arith.mulf %279, %289 : vector<8x128xf32>
    %291 = arith.addf %288, %290 : vector<8x128xf32>
    %292 = math.tanh %291 : vector<8x128xf32>
    %cst_109 = arith.constant 1.000000e+00 : f32
    %293 = vector.broadcast %cst_109 : f32 to vector<8x128xf32>
    %294 = arith.subf %293, %287 : vector<8x128xf32>
    %295 = arith.mulf %294, %292 : vector<8x128xf32>
    %296 = arith.mulf %287, %265 : vector<8x128xf32>
    %297 = arith.addf %295, %296 : vector<8x128xf32>
    %c0_110 = arith.constant 0 : index
    %c0_111 = arith.constant 0 : index
    %298 = vector.load %arg7[%c0_110, %c0_111] : memref<8x128xf32, #tpu.memory_space<vmem>>, vector<8x128xf32>
    tpu.vector_store %arg7[%c0_110, %c0_111], %297 {strides = array<i32>} : memref<8x128xf32, #tpu.memory_space<vmem>>, vector<8x128xf32>,
    %c8_i32 = arith.constant 8 : i32
    %c0_112 = arith.constant 0 : index
    %c0_113 = arith.constant 0 : index
    %299 = vector.load %arg7[%c0_112, %c0_113] : memref<8x128xf32, #tpu.memory_space<vmem>>, vector<8x128xf32>
    %c0_114 = arith.constant 0 : index
    %c0_115 = arith.constant 0 : index
    %300 = vector.load %arg6[%c0_114, %c0_115] : memref<8x128xf32, #tpu.memory_space<vmem>>, vector<8x128xf32>
    tpu.vector_store %arg6[%c0_114, %c0_115], %299 {strides = array<i32>} : memref<8x128xf32, #tpu.memory_space<vmem>>, vector<8x128xf32>,
    return
  }
  func.func @transform_0(%arg0: i32, %arg1: i32) -> (i32, i32, i32) {
    %c0_i32 = arith.constant 0 : i32
    %c0_i32_0 = arith.constant 0 : i32
    return %arg1, %arg0, %c0_i32 : i32, i32, i32
  }
  func.func @transform_1(%arg0: i32, %arg1: i32) -> (i32, i32) {
    %c0_i32 = arith.constant 0 : i32
    %c0_i32_0 = arith.constant 0 : i32
    return %arg0, %c0_i32 : i32, i32
  }
  func.func @transform_2(%arg0: i32, %arg1: i32) -> (i32, i32) {
    %c0_i32 = arith.constant 0 : i32
    %c0_i32_0 = arith.constant 0 : i32
    %c0_i32_1 = arith.constant 0 : i32
    return %c0_i32, %c0_i32_0 : i32, i32
  }
  func.func @transform_3(%arg0: i32, %arg1: i32) -> (i32, i32) {
    %c0_i32 = arith.constant 0 : i32
    %c0_i32_0 = arith.constant 0 : i32
    %c0_i32_1 = arith.constant 0 : i32
    return %c0_i32, %c0_i32_0 : i32, i32
  }
  func.func @transform_4(%arg0: i32, %arg1: i32) -> (i32, i32) {
    %c0_i32 = arith.constant 0 : i32
    %c0_i32_0 = arith.constant 0 : i32
    return %arg0, %c0_i32 : i32, i32
  }
}

module attributes {stable_mosaic.version = 11 : i64} {
  func.func @matmul_bias_kernel(%arg0: i32, %arg1: i32, %arg2: memref<64x160xbf16, #tpu.memory_space<vmem>>, %arg3: memref<160x384xbf16, #tpu.memory_space<vmem>>, %arg4: memref<1x384xf32, #tpu.memory_space<vmem>>, %arg5: memref<64x384xf32, #tpu.memory_space<vmem>>) attributes {dimension_semantics = [#tpu.dimension_semantics<parallel>, #tpu.dimension_semantics<parallel>], iteration_bounds = array<i64: 1, 1>, scalar_prefetch = 0 : i64, scratch_operands = 0 : i64, tpu.core_type = #tpu.core_type<tc>, window_params = [{transform_indices = @transform_0, window_bounds = array<i64: 64, 160>}, {transform_indices = @transform_1, window_bounds = array<i64: 160, 384>}, {transform_indices = @transform_2, window_bounds = array<i64: 1, 384>}, {transform_indices = @transform_3, window_bounds = array<i64: 64, 384>}]} {
    %c0 = arith.constant 0 : index
    %c0_0 = arith.constant 0 : index
    %0 = vector.load %arg2[%c0, %c0_0] : memref<64x160xbf16, #tpu.memory_space<vmem>>, vector<64x160xbf16>
    %c0_1 = arith.constant 0 : index
    %c0_2 = arith.constant 0 : index
    %1 = vector.load %arg3[%c0_1, %c0_2] : memref<160x384xbf16, #tpu.memory_space<vmem>>, vector<160x384xbf16>
    %cst = arith.constant dense<0.000000e+00> : vector<64x384xf32>
    %2 = tpu.matmul %0, %1, %cst {dimension_numbers = #tpu.dot_dimension_numbers<[1], [0], [0], [1], [0, 0, 1, 1], [], []>} : vector<64x160xbf16>, vector<160x384xbf16>, vector<64x384xf32> -> vector<64x384xf32>
    %c0_3 = arith.constant 0 : index
    %c0_4 = arith.constant 0 : index
    %3 = vector.load %arg4[%c0_3, %c0_4] : memref<1x384xf32, #tpu.memory_space<vmem>>, vector<1x384xf32>
    %4 = vector.broadcast %3 : vector<1x384xf32> to vector<64x384xf32>
    %5 = arith.addf %2, %4 : vector<64x384xf32>
    %c0_5 = arith.constant 0 : index
    %c0_6 = arith.constant 0 : index
    %6 = vector.load %arg5[%c0_5, %c0_6] : memref<64x384xf32, #tpu.memory_space<vmem>>, vector<64x384xf32>
    tpu.vector_store %arg5[%c0_5, %c0_6], %5 {strides = array<i32>} : memref<64x384xf32, #tpu.memory_space<vmem>>, vector<64x384xf32>,
    return
  }
  func.func @transform_0(%arg0: i32, %arg1: i32) -> (i32, i32) {
    %c0_i32 = arith.constant 0 : i32
    %c0_i32_0 = arith.constant 0 : i32
    return %arg0, %c0_i32 : i32, i32
  }
  func.func @transform_1(%arg0: i32, %arg1: i32) -> (i32, i32) {
    %c0_i32 = arith.constant 0 : i32
    %c0_i32_0 = arith.constant 0 : i32
    return %c0_i32, %arg1 : i32, i32
  }
  func.func @transform_2(%arg0: i32, %arg1: i32) -> (i32, i32) {
    %c0_i32 = arith.constant 0 : i32
    %c0_i32_0 = arith.constant 0 : i32
    return %c0_i32, %arg1 : i32, i32
  }
  func.func @transform_3(%arg0: i32, %arg1: i32) -> (i32, i32) {
    %c0_i32 = arith.constant 0 : i32
    return %arg0, %arg1 : i32, i32
  }
}

module attributes {stable_mosaic.version = 11 : i64} {
  func.func @gru_scan_all_kernel(%arg0: i32, %arg1: i32, %arg2: memref<8x8x384xf32, #tpu.memory_space<vmem>>, %arg3: memref<8x128xf32, #tpu.memory_space<vmem>>, %arg4: memref<128x384xbf16, #tpu.memory_space<vmem>>, %arg5: memref<1x384xf32, #tpu.memory_space<vmem>>, %arg6: memref<8x8x128xbf16, #tpu.memory_space<vmem>>, %arg7: memref<8x128xf32, #tpu.memory_space<vmem>>, %arg8: memref<8x128xf32, #tpu.memory_space<vmem>>) attributes {dimension_semantics = [#tpu.dimension_semantics<parallel>, #tpu.dimension_semantics<arbitrary>], iteration_bounds = array<i64: 1, 1>, scalar_prefetch = 0 : i64, scratch_operands = 1 : i64, tpu.core_type = #tpu.core_type<tc>, window_params = [{transform_indices = @transform_0, window_bounds = array<i64: 8, 8, 384>}, {transform_indices = @transform_1, window_bounds = array<i64: 8, 128>}, {pipeline_mode = #tpu.pipeline_mode<synchronous>, transform_indices = @transform_2, window_bounds = array<i64: 128, 384>}, {pipeline_mode = #tpu.pipeline_mode<synchronous>, transform_indices = @transform_3, window_bounds = array<i64: 1, 384>}, {transform_indices = @transform_4, window_bounds = array<i64: 8, 8, 128>}, {transform_indices = @transform_5, window_bounds = array<i64: 8, 128>}]} {
    %c0_i32 = arith.constant 0 : i32
    %0 = arith.cmpi eq, %arg1, %c0_i32 : i32
    %1 = arith.extui %0 : i1 to i32
    %c0_i32_0 = arith.constant 0 : i32
    %2 = arith.cmpi ne, %1, %c0_i32_0 : i32
    scf.if %2 {
      %c0_132 = arith.constant 0 : index
      %c0_133 = arith.constant 0 : index
      %341 = vector.load %arg3[%c0_132, %c0_133] : memref<8x128xf32, #tpu.memory_space<vmem>>, vector<8x128xf32>
      %c0_134 = arith.constant 0 : index
      %c0_135 = arith.constant 0 : index
      %342 = vector.load %arg8[%c0_134, %c0_135] : memref<8x128xf32, #tpu.memory_space<vmem>>, vector<8x128xf32>
      tpu.vector_store %arg8[%c0_134, %c0_135], %341 {strides = array<i32>} : memref<8x128xf32, #tpu.memory_space<vmem>>, vector<8x128xf32>,
    } else {
    }
    %c0_i32_1 = arith.constant 0 : i32
    %3 = arith.index_cast %c0_i32_1 : i32 to index
    %c0 = arith.constant 0 : index
    %c0_2 = arith.constant 0 : index
    %4 = vector.load %arg2[%3, %c0, %c0_2] : memref<8x8x384xf32, #tpu.memory_space<vmem>>, vector<1x8x384xf32>
    %5 = vector.shape_cast %4 : vector<1x8x384xf32> to vector<8x384xf32>
    %c0_3 = arith.constant 0 : index
    %c0_4 = arith.constant 0 : index
    %6 = vector.load %arg8[%c0_3, %c0_4] : memref<8x128xf32, #tpu.memory_space<vmem>>, vector<8x128xf32>
    %7 = arith.truncf %6 : vector<8x128xf32> to vector<8x128xbf16>
    %c0_5 = arith.constant 0 : index
    %c0_6 = arith.constant 0 : index
    %8 = vector.load %arg4[%c0_5, %c0_6] : memref<128x384xbf16, #tpu.memory_space<vmem>>, vector<128x384xbf16>
    %cst = arith.constant dense<0.000000e+00> : vector<8x384xf32>
    %9 = tpu.matmul %7, %8, %cst {dimension_numbers = #tpu.dot_dimension_numbers<[1], [0], [0], [1], [0, 0, 1, 1], [], []>} : vector<8x128xbf16>, vector<128x384xbf16>, vector<8x384xf32> -> vector<8x384xf32>
    %c0_7 = arith.constant 0 : index
    %c0_8 = arith.constant 0 : index
    %10 = vector.load %arg5[%c0_7, %c0_8] : memref<1x384xf32, #tpu.memory_space<vmem>>, vector<1x384xf32>
    %11 = vector.broadcast %10 : vector<1x384xf32> to vector<8x384xf32>
    %12 = arith.addf %9, %11 : vector<8x384xf32>
    %13 = vector.extract_strided_slice %5 {offsets = [0, 0], sizes = [8, 128], strides = [1, 1]} : vector<8x384xf32> to vector<8x128xf32>
    %14 = vector.extract_strided_slice %12 {offsets = [0, 0], sizes = [8, 128], strides = [1, 1]} : vector<8x384xf32> to vector<8x128xf32>
    %15 = arith.addf %13, %14 : vector<8x128xf32>
    %16 = arith.negf %15 : vector<8x128xf32>
    %17 = math.exp %16 : vector<8x128xf32>
    %cst_9 = arith.constant 1.000000e+00 : f32
    %18 = vector.broadcast %cst_9 : f32 to vector<8x128xf32>
    %19 = arith.addf %18, %17 : vector<8x128xf32>
    %20 = arith.divf %18, %19 : vector<8x128xf32>
    %21 = vector.extract_strided_slice %5 {offsets = [0, 128], sizes = [8, 128], strides = [1, 1]} : vector<8x384xf32> to vector<8x128xf32>
    %22 = vector.extract_strided_slice %12 {offsets = [0, 128], sizes = [8, 128], strides = [1, 1]} : vector<8x384xf32> to vector<8x128xf32>
    %23 = arith.addf %21, %22 : vector<8x128xf32>
    %24 = arith.negf %23 : vector<8x128xf32>
    %25 = math.exp %24 : vector<8x128xf32>
    %cst_10 = arith.constant 1.000000e+00 : f32
    %26 = vector.broadcast %cst_10 : f32 to vector<8x128xf32>
    %27 = arith.addf %26, %25 : vector<8x128xf32>
    %28 = arith.divf %26, %27 : vector<8x128xf32>
    %29 = vector.extract_strided_slice %5 {offsets = [0, 256], sizes = [8, 128], strides = [1, 1]} : vector<8x384xf32> to vector<8x128xf32>
    %30 = vector.extract_strided_slice %12 {offsets = [0, 256], sizes = [8, 128], strides = [1, 1]} : vector<8x384xf32> to vector<8x128xf32>
    %31 = arith.mulf %20, %30 : vector<8x128xf32>
    %32 = arith.addf %29, %31 : vector<8x128xf32>
    %33 = math.tanh %32 : vector<8x128xf32>
    %cst_11 = arith.constant 1.000000e+00 : f32
    %34 = vector.broadcast %cst_11 : f32 to vector<8x128xf32>
    %35 = arith.subf %34, %28 : vector<8x128xf32>
    %36 = arith.mulf %35, %33 : vector<8x128xf32>
    %37 = arith.mulf %28, %6 : vector<8x128xf32>
    %38 = arith.addf %36, %37 : vector<8x128xf32>
    %c0_12 = arith.constant 0 : index
    %c0_13 = arith.constant 0 : index
    %39 = vector.load %arg8[%c0_12, %c0_13] : memref<8x128xf32, #tpu.memory_space<vmem>>, vector<8x128xf32>
    tpu.vector_store %arg8[%c0_12, %c0_13], %38 {strides = array<i32>} : memref<8x128xf32, #tpu.memory_space<vmem>>, vector<8x128xf32>,
    %40 = arith.truncf %38 : vector<8x128xf32> to vector<8x128xbf16>
    %41 = arith.index_cast %c0_i32_1 : i32 to index
    %c0_14 = arith.constant 0 : index
    %c0_15 = arith.constant 0 : index
    %42 = vector.load %arg6[%41, %c0_14, %c0_15] : memref<8x8x128xbf16, #tpu.memory_space<vmem>>, vector<1x8x128xbf16>
    %43 = vector.shape_cast %42 : vector<1x8x128xbf16> to vector<8x128xbf16>
    %44 = vector.shape_cast %40 : vector<8x128xbf16> to vector<1x8x128xbf16>
    tpu.vector_store %arg6[%41, %c0_14, %c0_15], %44 {strides = array<i32>} : memref<8x8x128xbf16, #tpu.memory_space<vmem>>, vector<1x8x128xbf16>,
    %c1_i32 = arith.constant 1 : i32
    %45 = arith.index_cast %c1_i32 : i32 to index
    %c0_16 = arith.constant 0 : index
    %c0_17 = arith.constant 0 : index
    %46 = vector.load %arg2[%45, %c0_16, %c0_17] : memref<8x8x384xf32, #tpu.memory_space<vmem>>, vector<1x8x384xf32>
    %47 = vector.shape_cast %46 : vector<1x8x384xf32> to vector<8x384xf32>
    %c0_18 = arith.constant 0 : index
    %c0_19 = arith.constant 0 : index
    %48 = vector.load %arg8[%c0_18, %c0_19] : memref<8x128xf32, #tpu.memory_space<vmem>>, vector<8x128xf32>
    %49 = arith.truncf %48 : vector<8x128xf32> to vector<8x128xbf16>
    %c0_20 = arith.constant 0 : index
    %c0_21 = arith.constant 0 : index
    %50 = vector.load %arg4[%c0_20, %c0_21] : memref<128x384xbf16, #tpu.memory_space<vmem>>, vector<128x384xbf16>
    %cst_22 = arith.constant dense<0.000000e+00> : vector<8x384xf32>
    %51 = tpu.matmul %49, %50, %cst_22 {dimension_numbers = #tpu.dot_dimension_numbers<[1], [0], [0], [1], [0, 0, 1, 1], [], []>} : vector<8x128xbf16>, vector<128x384xbf16>, vector<8x384xf32> -> vector<8x384xf32>
    %c0_23 = arith.constant 0 : index
    %c0_24 = arith.constant 0 : index
    %52 = vector.load %arg5[%c0_23, %c0_24] : memref<1x384xf32, #tpu.memory_space<vmem>>, vector<1x384xf32>
    %53 = vector.broadcast %52 : vector<1x384xf32> to vector<8x384xf32>
    %54 = arith.addf %51, %53 : vector<8x384xf32>
    %55 = vector.extract_strided_slice %47 {offsets = [0, 0], sizes = [8, 128], strides = [1, 1]} : vector<8x384xf32> to vector<8x128xf32>
    %56 = vector.extract_strided_slice %54 {offsets = [0, 0], sizes = [8, 128], strides = [1, 1]} : vector<8x384xf32> to vector<8x128xf32>
    %57 = arith.addf %55, %56 : vector<8x128xf32>
    %58 = arith.negf %57 : vector<8x128xf32>
    %59 = math.exp %58 : vector<8x128xf32>
    %cst_25 = arith.constant 1.000000e+00 : f32
    %60 = vector.broadcast %cst_25 : f32 to vector<8x128xf32>
    %61 = arith.addf %60, %59 : vector<8x128xf32>
    %62 = arith.divf %60, %61 : vector<8x128xf32>
    %63 = vector.extract_strided_slice %47 {offsets = [0, 128], sizes = [8, 128], strides = [1, 1]} : vector<8x384xf32> to vector<8x128xf32>
    %64 = vector.extract_strided_slice %54 {offsets = [0, 128], sizes = [8, 128], strides = [1, 1]} : vector<8x384xf32> to vector<8x128xf32>
    %65 = arith.addf %63, %64 : vector<8x128xf32>
    %66 = arith.negf %65 : vector<8x128xf32>
    %67 = math.exp %66 : vector<8x128xf32>
    %cst_26 = arith.constant 1.000000e+00 : f32
    %68 = vector.broadcast %cst_26 : f32 to vector<8x128xf32>
    %69 = arith.addf %68, %67 : vector<8x128xf32>
    %70 = arith.divf %68, %69 : vector<8x128xf32>
    %71 = vector.extract_strided_slice %47 {offsets = [0, 256], sizes = [8, 128], strides = [1, 1]} : vector<8x384xf32> to vector<8x128xf32>
    %72 = vector.extract_strided_slice %54 {offsets = [0, 256], sizes = [8, 128], strides = [1, 1]} : vector<8x384xf32> to vector<8x128xf32>
    %73 = arith.mulf %62, %72 : vector<8x128xf32>
    %74 = arith.addf %71, %73 : vector<8x128xf32>
    %75 = math.tanh %74 : vector<8x128xf32>
    %cst_27 = arith.constant 1.000000e+00 : f32
    %76 = vector.broadcast %cst_27 : f32 to vector<8x128xf32>
    %77 = arith.subf %76, %70 : vector<8x128xf32>
    %78 = arith.mulf %77, %75 : vector<8x128xf32>
    %79 = arith.mulf %70, %48 : vector<8x128xf32>
    %80 = arith.addf %78, %79 : vector<8x128xf32>
    %c0_28 = arith.constant 0 : index
    %c0_29 = arith.constant 0 : index
    %81 = vector.load %arg8[%c0_28, %c0_29] : memref<8x128xf32, #tpu.memory_space<vmem>>, vector<8x128xf32>
    tpu.vector_store %arg8[%c0_28, %c0_29], %80 {strides = array<i32>} : memref<8x128xf32, #tpu.memory_space<vmem>>, vector<8x128xf32>,
    %82 = arith.truncf %80 : vector<8x128xf32> to vector<8x128xbf16>
    %83 = arith.index_cast %c1_i32 : i32 to index
    %c0_30 = arith.constant 0 : index
    %c0_31 = arith.constant 0 : index
    %84 = vector.load %arg6[%83, %c0_30, %c0_31] : memref<8x8x128xbf16, #tpu.memory_space<vmem>>, vector<1x8x128xbf16>
    %85 = vector.shape_cast %84 : vector<1x8x128xbf16> to vector<8x128xbf16>
    %86 = vector.shape_cast %82 : vector<8x128xbf16> to vector<1x8x128xbf16>
    tpu.vector_store %arg6[%83, %c0_30, %c0_31], %86 {strides = array<i32>} : memref<8x8x128xbf16, #tpu.memory_space<vmem>>, vector<1x8x128xbf16>,
    %c2_i32 = arith.constant 2 : i32
    %87 = arith.index_cast %c2_i32 : i32 to index
    %c0_32 = arith.constant 0 : index
    %c0_33 = arith.constant 0 : index
    %88 = vector.load %arg2[%87, %c0_32, %c0_33] : memref<8x8x384xf32, #tpu.memory_space<vmem>>, vector<1x8x384xf32>
    %89 = vector.shape_cast %88 : vector<1x8x384xf32> to vector<8x384xf32>
    %c0_34 = arith.constant 0 : index
    %c0_35 = arith.constant 0 : index
    %90 = vector.load %arg8[%c0_34, %c0_35] : memref<8x128xf32, #tpu.memory_space<vmem>>, vector<8x128xf32>
    %91 = arith.truncf %90 : vector<8x128xf32> to vector<8x128xbf16>
    %c0_36 = arith.constant 0 : index
    %c0_37 = arith.constant 0 : index
    %92 = vector.load %arg4[%c0_36, %c0_37] : memref<128x384xbf16, #tpu.memory_space<vmem>>, vector<128x384xbf16>
    %cst_38 = arith.constant dense<0.000000e+00> : vector<8x384xf32>
    %93 = tpu.matmul %91, %92, %cst_38 {dimension_numbers = #tpu.dot_dimension_numbers<[1], [0], [0], [1], [0, 0, 1, 1], [], []>} : vector<8x128xbf16>, vector<128x384xbf16>, vector<8x384xf32> -> vector<8x384xf32>
    %c0_39 = arith.constant 0 : index
    %c0_40 = arith.constant 0 : index
    %94 = vector.load %arg5[%c0_39, %c0_40] : memref<1x384xf32, #tpu.memory_space<vmem>>, vector<1x384xf32>
    %95 = vector.broadcast %94 : vector<1x384xf32> to vector<8x384xf32>
    %96 = arith.addf %93, %95 : vector<8x384xf32>
    %97 = vector.extract_strided_slice %89 {offsets = [0, 0], sizes = [8, 128], strides = [1, 1]} : vector<8x384xf32> to vector<8x128xf32>
    %98 = vector.extract_strided_slice %96 {offsets = [0, 0], sizes = [8, 128], strides = [1, 1]} : vector<8x384xf32> to vector<8x128xf32>
    %99 = arith.addf %97, %98 : vector<8x128xf32>
    %100 = arith.negf %99 : vector<8x128xf32>
    %101 = math.exp %100 : vector<8x128xf32>
    %cst_41 = arith.constant 1.000000e+00 : f32
    %102 = vector.broadcast %cst_41 : f32 to vector<8x128xf32>
    %103 = arith.addf %102, %101 : vector<8x128xf32>
    %104 = arith.divf %102, %103 : vector<8x128xf32>
    %105 = vector.extract_strided_slice %89 {offsets = [0, 128], sizes = [8, 128], strides = [1, 1]} : vector<8x384xf32> to vector<8x128xf32>
    %106 = vector.extract_strided_slice %96 {offsets = [0, 128], sizes = [8, 128], strides = [1, 1]} : vector<8x384xf32> to vector<8x128xf32>
    %107 = arith.addf %105, %106 : vector<8x128xf32>
    %108 = arith.negf %107 : vector<8x128xf32>
    %109 = math.exp %108 : vector<8x128xf32>
    %cst_42 = arith.constant 1.000000e+00 : f32
    %110 = vector.broadcast %cst_42 : f32 to vector<8x128xf32>
    %111 = arith.addf %110, %109 : vector<8x128xf32>
    %112 = arith.divf %110, %111 : vector<8x128xf32>
    %113 = vector.extract_strided_slice %89 {offsets = [0, 256], sizes = [8, 128], strides = [1, 1]} : vector<8x384xf32> to vector<8x128xf32>
    %114 = vector.extract_strided_slice %96 {offsets = [0, 256], sizes = [8, 128], strides = [1, 1]} : vector<8x384xf32> to vector<8x128xf32>
    %115 = arith.mulf %104, %114 : vector<8x128xf32>
    %116 = arith.addf %113, %115 : vector<8x128xf32>
    %117 = math.tanh %116 : vector<8x128xf32>
    %cst_43 = arith.constant 1.000000e+00 : f32
    %118 = vector.broadcast %cst_43 : f32 to vector<8x128xf32>
    %119 = arith.subf %118, %112 : vector<8x128xf32>
    %120 = arith.mulf %119, %117 : vector<8x128xf32>
    %121 = arith.mulf %112, %90 : vector<8x128xf32>
    %122 = arith.addf %120, %121 : vector<8x128xf32>
    %c0_44 = arith.constant 0 : index
    %c0_45 = arith.constant 0 : index
    %123 = vector.load %arg8[%c0_44, %c0_45] : memref<8x128xf32, #tpu.memory_space<vmem>>, vector<8x128xf32>
    tpu.vector_store %arg8[%c0_44, %c0_45], %122 {strides = array<i32>} : memref<8x128xf32, #tpu.memory_space<vmem>>, vector<8x128xf32>,
    %124 = arith.truncf %122 : vector<8x128xf32> to vector<8x128xbf16>
    %125 = arith.index_cast %c2_i32 : i32 to index
    %c0_46 = arith.constant 0 : index
    %c0_47 = arith.constant 0 : index
    %126 = vector.load %arg6[%125, %c0_46, %c0_47] : memref<8x8x128xbf16, #tpu.memory_space<vmem>>, vector<1x8x128xbf16>
    %127 = vector.shape_cast %126 : vector<1x8x128xbf16> to vector<8x128xbf16>
    %128 = vector.shape_cast %124 : vector<8x128xbf16> to vector<1x8x128xbf16>
    tpu.vector_store %arg6[%125, %c0_46, %c0_47], %128 {strides = array<i32>} : memref<8x8x128xbf16, #tpu.memory_space<vmem>>, vector<1x8x128xbf16>,
    %c3_i32 = arith.constant 3 : i32
    %129 = arith.index_cast %c3_i32 : i32 to index
    %c0_48 = arith.constant 0 : index
    %c0_49 = arith.constant 0 : index
    %130 = vector.load %arg2[%129, %c0_48, %c0_49] : memref<8x8x384xf32, #tpu.memory_space<vmem>>, vector<1x8x384xf32>
    %131 = vector.shape_cast %130 : vector<1x8x384xf32> to vector<8x384xf32>
    %c0_50 = arith.constant 0 : index
    %c0_51 = arith.constant 0 : index
    %132 = vector.load %arg8[%c0_50, %c0_51] : memref<8x128xf32, #tpu.memory_space<vmem>>, vector<8x128xf32>
    %133 = arith.truncf %132 : vector<8x128xf32> to vector<8x128xbf16>
    %c0_52 = arith.constant 0 : index
    %c0_53 = arith.constant 0 : index
    %134 = vector.load %arg4[%c0_52, %c0_53] : memref<128x384xbf16, #tpu.memory_space<vmem>>, vector<128x384xbf16>
    %cst_54 = arith.constant dense<0.000000e+00> : vector<8x384xf32>
    %135 = tpu.matmul %133, %134, %cst_54 {dimension_numbers = #tpu.dot_dimension_numbers<[1], [0], [0], [1], [0, 0, 1, 1], [], []>} : vector<8x128xbf16>, vector<128x384xbf16>, vector<8x384xf32> -> vector<8x384xf32>
    %c0_55 = arith.constant 0 : index
    %c0_56 = arith.constant 0 : index
    %136 = vector.load %arg5[%c0_55, %c0_56] : memref<1x384xf32, #tpu.memory_space<vmem>>, vector<1x384xf32>
    %137 = vector.broadcast %136 : vector<1x384xf32> to vector<8x384xf32>
    %138 = arith.addf %135, %137 : vector<8x384xf32>
    %139 = vector.extract_strided_slice %131 {offsets = [0, 0], sizes = [8, 128], strides = [1, 1]} : vector<8x384xf32> to vector<8x128xf32>
    %140 = vector.extract_strided_slice %138 {offsets = [0, 0], sizes = [8, 128], strides = [1, 1]} : vector<8x384xf32> to vector<8x128xf32>
    %141 = arith.addf %139, %140 : vector<8x128xf32>
    %142 = arith.negf %141 : vector<8x128xf32>
    %143 = math.exp %142 : vector<8x128xf32>
    %cst_57 = arith.constant 1.000000e+00 : f32
    %144 = vector.broadcast %cst_57 : f32 to vector<8x128xf32>
    %145 = arith.addf %144, %143 : vector<8x128xf32>
    %146 = arith.divf %144, %145 : vector<8x128xf32>
    %147 = vector.extract_strided_slice %131 {offsets = [0, 128], sizes = [8, 128], strides = [1, 1]} : vector<8x384xf32> to vector<8x128xf32>
    %148 = vector.extract_strided_slice %138 {offsets = [0, 128], sizes = [8, 128], strides = [1, 1]} : vector<8x384xf32> to vector<8x128xf32>
    %149 = arith.addf %147, %148 : vector<8x128xf32>
    %150 = arith.negf %149 : vector<8x128xf32>
    %151 = math.exp %150 : vector<8x128xf32>
    %cst_58 = arith.constant 1.000000e+00 : f32
    %152 = vector.broadcast %cst_58 : f32 to vector<8x128xf32>
    %153 = arith.addf %152, %151 : vector<8x128xf32>
    %154 = arith.divf %152, %153 : vector<8x128xf32>
    %155 = vector.extract_strided_slice %131 {offsets = [0, 256], sizes = [8, 128], strides = [1, 1]} : vector<8x384xf32> to vector<8x128xf32>
    %156 = vector.extract_strided_slice %138 {offsets = [0, 256], sizes = [8, 128], strides = [1, 1]} : vector<8x384xf32> to vector<8x128xf32>
    %157 = arith.mulf %146, %156 : vector<8x128xf32>
    %158 = arith.addf %155, %157 : vector<8x128xf32>
    %159 = math.tanh %158 : vector<8x128xf32>
    %cst_59 = arith.constant 1.000000e+00 : f32
    %160 = vector.broadcast %cst_59 : f32 to vector<8x128xf32>
    %161 = arith.subf %160, %154 : vector<8x128xf32>
    %162 = arith.mulf %161, %159 : vector<8x128xf32>
    %163 = arith.mulf %154, %132 : vector<8x128xf32>
    %164 = arith.addf %162, %163 : vector<8x128xf32>
    %c0_60 = arith.constant 0 : index
    %c0_61 = arith.constant 0 : index
    %165 = vector.load %arg8[%c0_60, %c0_61] : memref<8x128xf32, #tpu.memory_space<vmem>>, vector<8x128xf32>
    tpu.vector_store %arg8[%c0_60, %c0_61], %164 {strides = array<i32>} : memref<8x128xf32, #tpu.memory_space<vmem>>, vector<8x128xf32>,
    %166 = arith.truncf %164 : vector<8x128xf32> to vector<8x128xbf16>
    %167 = arith.index_cast %c3_i32 : i32 to index
    %c0_62 = arith.constant 0 : index
    %c0_63 = arith.constant 0 : index
    %168 = vector.load %arg6[%167, %c0_62, %c0_63] : memref<8x8x128xbf16, #tpu.memory_space<vmem>>, vector<1x8x128xbf16>
    %169 = vector.shape_cast %168 : vector<1x8x128xbf16> to vector<8x128xbf16>
    %170 = vector.shape_cast %166 : vector<8x128xbf16> to vector<1x8x128xbf16>
    tpu.vector_store %arg6[%167, %c0_62, %c0_63], %170 {strides = array<i32>} : memref<8x8x128xbf16, #tpu.memory_space<vmem>>, vector<1x8x128xbf16>,
    %c4_i32 = arith.constant 4 : i32
    %171 = arith.index_cast %c4_i32 : i32 to index
    %c0_64 = arith.constant 0 : index
    %c0_65 = arith.constant 0 : index
    %172 = vector.load %arg2[%171, %c0_64, %c0_65] : memref<8x8x384xf32, #tpu.memory_space<vmem>>, vector<1x8x384xf32>
    %173 = vector.shape_cast %172 : vector<1x8x384xf32> to vector<8x384xf32>
    %c0_66 = arith.constant 0 : index
    %c0_67 = arith.constant 0 : index
    %174 = vector.load %arg8[%c0_66, %c0_67] : memref<8x128xf32, #tpu.memory_space<vmem>>, vector<8x128xf32>
    %175 = arith.truncf %174 : vector<8x128xf32> to vector<8x128xbf16>
    %c0_68 = arith.constant 0 : index
    %c0_69 = arith.constant 0 : index
    %176 = vector.load %arg4[%c0_68, %c0_69] : memref<128x384xbf16, #tpu.memory_space<vmem>>, vector<128x384xbf16>
    %cst_70 = arith.constant dense<0.000000e+00> : vector<8x384xf32>
    %177 = tpu.matmul %175, %176, %cst_70 {dimension_numbers = #tpu.dot_dimension_numbers<[1], [0], [0], [1], [0, 0, 1, 1], [], []>} : vector<8x128xbf16>, vector<128x384xbf16>, vector<8x384xf32> -> vector<8x384xf32>
    %c0_71 = arith.constant 0 : index
    %c0_72 = arith.constant 0 : index
    %178 = vector.load %arg5[%c0_71, %c0_72] : memref<1x384xf32, #tpu.memory_space<vmem>>, vector<1x384xf32>
    %179 = vector.broadcast %178 : vector<1x384xf32> to vector<8x384xf32>
    %180 = arith.addf %177, %179 : vector<8x384xf32>
    %181 = vector.extract_strided_slice %173 {offsets = [0, 0], sizes = [8, 128], strides = [1, 1]} : vector<8x384xf32> to vector<8x128xf32>
    %182 = vector.extract_strided_slice %180 {offsets = [0, 0], sizes = [8, 128], strides = [1, 1]} : vector<8x384xf32> to vector<8x128xf32>
    %183 = arith.addf %181, %182 : vector<8x128xf32>
    %184 = arith.negf %183 : vector<8x128xf32>
    %185 = math.exp %184 : vector<8x128xf32>
    %cst_73 = arith.constant 1.000000e+00 : f32
    %186 = vector.broadcast %cst_73 : f32 to vector<8x128xf32>
    %187 = arith.addf %186, %185 : vector<8x128xf32>
    %188 = arith.divf %186, %187 : vector<8x128xf32>
    %189 = vector.extract_strided_slice %173 {offsets = [0, 128], sizes = [8, 128], strides = [1, 1]} : vector<8x384xf32> to vector<8x128xf32>
    %190 = vector.extract_strided_slice %180 {offsets = [0, 128], sizes = [8, 128], strides = [1, 1]} : vector<8x384xf32> to vector<8x128xf32>
    %191 = arith.addf %189, %190 : vector<8x128xf32>
    %192 = arith.negf %191 : vector<8x128xf32>
    %193 = math.exp %192 : vector<8x128xf32>
    %cst_74 = arith.constant 1.000000e+00 : f32
    %194 = vector.broadcast %cst_74 : f32 to vector<8x128xf32>
    %195 = arith.addf %194, %193 : vector<8x128xf32>
    %196 = arith.divf %194, %195 : vector<8x128xf32>
    %197 = vector.extract_strided_slice %173 {offsets = [0, 256], sizes = [8, 128], strides = [1, 1]} : vector<8x384xf32> to vector<8x128xf32>
    %198 = vector.extract_strided_slice %180 {offsets = [0, 256], sizes = [8, 128], strides = [1, 1]} : vector<8x384xf32> to vector<8x128xf32>
    %199 = arith.mulf %188, %198 : vector<8x128xf32>
    %200 = arith.addf %197, %199 : vector<8x128xf32>
    %201 = math.tanh %200 : vector<8x128xf32>
    %cst_75 = arith.constant 1.000000e+00 : f32
    %202 = vector.broadcast %cst_75 : f32 to vector<8x128xf32>
    %203 = arith.subf %202, %196 : vector<8x128xf32>
    %204 = arith.mulf %203, %201 : vector<8x128xf32>
    %205 = arith.mulf %196, %174 : vector<8x128xf32>
    %206 = arith.addf %204, %205 : vector<8x128xf32>
    %c0_76 = arith.constant 0 : index
    %c0_77 = arith.constant 0 : index
    %207 = vector.load %arg8[%c0_76, %c0_77] : memref<8x128xf32, #tpu.memory_space<vmem>>, vector<8x128xf32>
    tpu.vector_store %arg8[%c0_76, %c0_77], %206 {strides = array<i32>} : memref<8x128xf32, #tpu.memory_space<vmem>>, vector<8x128xf32>,
    %208 = arith.truncf %206 : vector<8x128xf32> to vector<8x128xbf16>
    %209 = arith.index_cast %c4_i32 : i32 to index
    %c0_78 = arith.constant 0 : index
    %c0_79 = arith.constant 0 : index
    %210 = vector.load %arg6[%209, %c0_78, %c0_79] : memref<8x8x128xbf16, #tpu.memory_space<vmem>>, vector<1x8x128xbf16>
    %211 = vector.shape_cast %210 : vector<1x8x128xbf16> to vector<8x128xbf16>
    %212 = vector.shape_cast %208 : vector<8x128xbf16> to vector<1x8x128xbf16>
    tpu.vector_store %arg6[%209, %c0_78, %c0_79], %212 {strides = array<i32>} : memref<8x8x128xbf16, #tpu.memory_space<vmem>>, vector<1x8x128xbf16>,
    %c5_i32 = arith.constant 5 : i32
    %213 = arith.index_cast %c5_i32 : i32 to index
    %c0_80 = arith.constant 0 : index
    %c0_81 = arith.constant 0 : index
    %214 = vector.load %arg2[%213, %c0_80, %c0_81] : memref<8x8x384xf32, #tpu.memory_space<vmem>>, vector<1x8x384xf32>
    %215 = vector.shape_cast %214 : vector<1x8x384xf32> to vector<8x384xf32>
    %c0_82 = arith.constant 0 : index
    %c0_83 = arith.constant 0 : index
    %216 = vector.load %arg8[%c0_82, %c0_83] : memref<8x128xf32, #tpu.memory_space<vmem>>, vector<8x128xf32>
    %217 = arith.truncf %216 : vector<8x128xf32> to vector<8x128xbf16>
    %c0_84 = arith.constant 0 : index
    %c0_85 = arith.constant 0 : index
    %218 = vector.load %arg4[%c0_84, %c0_85] : memref<128x384xbf16, #tpu.memory_space<vmem>>, vector<128x384xbf16>
    %cst_86 = arith.constant dense<0.000000e+00> : vector<8x384xf32>
    %219 = tpu.matmul %217, %218, %cst_86 {dimension_numbers = #tpu.dot_dimension_numbers<[1], [0], [0], [1], [0, 0, 1, 1], [], []>} : vector<8x128xbf16>, vector<128x384xbf16>, vector<8x384xf32> -> vector<8x384xf32>
    %c0_87 = arith.constant 0 : index
    %c0_88 = arith.constant 0 : index
    %220 = vector.load %arg5[%c0_87, %c0_88] : memref<1x384xf32, #tpu.memory_space<vmem>>, vector<1x384xf32>
    %221 = vector.broadcast %220 : vector<1x384xf32> to vector<8x384xf32>
    %222 = arith.addf %219, %221 : vector<8x384xf32>
    %223 = vector.extract_strided_slice %215 {offsets = [0, 0], sizes = [8, 128], strides = [1, 1]} : vector<8x384xf32> to vector<8x128xf32>
    %224 = vector.extract_strided_slice %222 {offsets = [0, 0], sizes = [8, 128], strides = [1, 1]} : vector<8x384xf32> to vector<8x128xf32>
    %225 = arith.addf %223, %224 : vector<8x128xf32>
    %226 = arith.negf %225 : vector<8x128xf32>
    %227 = math.exp %226 : vector<8x128xf32>
    %cst_89 = arith.constant 1.000000e+00 : f32
    %228 = vector.broadcast %cst_89 : f32 to vector<8x128xf32>
    %229 = arith.addf %228, %227 : vector<8x128xf32>
    %230 = arith.divf %228, %229 : vector<8x128xf32>
    %231 = vector.extract_strided_slice %215 {offsets = [0, 128], sizes = [8, 128], strides = [1, 1]} : vector<8x384xf32> to vector<8x128xf32>
    %232 = vector.extract_strided_slice %222 {offsets = [0, 128], sizes = [8, 128], strides = [1, 1]} : vector<8x384xf32> to vector<8x128xf32>
    %233 = arith.addf %231, %232 : vector<8x128xf32>
    %234 = arith.negf %233 : vector<8x128xf32>
    %235 = math.exp %234 : vector<8x128xf32>
    %cst_90 = arith.constant 1.000000e+00 : f32
    %236 = vector.broadcast %cst_90 : f32 to vector<8x128xf32>
    %237 = arith.addf %236, %235 : vector<8x128xf32>
    %238 = arith.divf %236, %237 : vector<8x128xf32>
    %239 = vector.extract_strided_slice %215 {offsets = [0, 256], sizes = [8, 128], strides = [1, 1]} : vector<8x384xf32> to vector<8x128xf32>
    %240 = vector.extract_strided_slice %222 {offsets = [0, 256], sizes = [8, 128], strides = [1, 1]} : vector<8x384xf32> to vector<8x128xf32>
    %241 = arith.mulf %230, %240 : vector<8x128xf32>
    %242 = arith.addf %239, %241 : vector<8x128xf32>
    %243 = math.tanh %242 : vector<8x128xf32>
    %cst_91 = arith.constant 1.000000e+00 : f32
    %244 = vector.broadcast %cst_91 : f32 to vector<8x128xf32>
    %245 = arith.subf %244, %238 : vector<8x128xf32>
    %246 = arith.mulf %245, %243 : vector<8x128xf32>
    %247 = arith.mulf %238, %216 : vector<8x128xf32>
    %248 = arith.addf %246, %247 : vector<8x128xf32>
    %c0_92 = arith.constant 0 : index
    %c0_93 = arith.constant 0 : index
    %249 = vector.load %arg8[%c0_92, %c0_93] : memref<8x128xf32, #tpu.memory_space<vmem>>, vector<8x128xf32>
    tpu.vector_store %arg8[%c0_92, %c0_93], %248 {strides = array<i32>} : memref<8x128xf32, #tpu.memory_space<vmem>>, vector<8x128xf32>,
    %250 = arith.truncf %248 : vector<8x128xf32> to vector<8x128xbf16>
    %251 = arith.index_cast %c5_i32 : i32 to index
    %c0_94 = arith.constant 0 : index
    %c0_95 = arith.constant 0 : index
    %252 = vector.load %arg6[%251, %c0_94, %c0_95] : memref<8x8x128xbf16, #tpu.memory_space<vmem>>, vector<1x8x128xbf16>
    %253 = vector.shape_cast %252 : vector<1x8x128xbf16> to vector<8x128xbf16>
    %254 = vector.shape_cast %250 : vector<8x128xbf16> to vector<1x8x128xbf16>
    tpu.vector_store %arg6[%251, %c0_94, %c0_95], %254 {strides = array<i32>} : memref<8x8x128xbf16, #tpu.memory_space<vmem>>, vector<1x8x128xbf16>,
    %c6_i32 = arith.constant 6 : i32
    %255 = arith.index_cast %c6_i32 : i32 to index
    %c0_96 = arith.constant 0 : index
    %c0_97 = arith.constant 0 : index
    %256 = vector.load %arg2[%255, %c0_96, %c0_97] : memref<8x8x384xf32, #tpu.memory_space<vmem>>, vector<1x8x384xf32>
    %257 = vector.shape_cast %256 : vector<1x8x384xf32> to vector<8x384xf32>
    %c0_98 = arith.constant 0 : index
    %c0_99 = arith.constant 0 : index
    %258 = vector.load %arg8[%c0_98, %c0_99] : memref<8x128xf32, #tpu.memory_space<vmem>>, vector<8x128xf32>
    %259 = arith.truncf %258 : vector<8x128xf32> to vector<8x128xbf16>
    %c0_100 = arith.constant 0 : index
    %c0_101 = arith.constant 0 : index
    %260 = vector.load %arg4[%c0_100, %c0_101] : memref<128x384xbf16, #tpu.memory_space<vmem>>, vector<128x384xbf16>
    %cst_102 = arith.constant dense<0.000000e+00> : vector<8x384xf32>
    %261 = tpu.matmul %259, %260, %cst_102 {dimension_numbers = #tpu.dot_dimension_numbers<[1], [0], [0], [1], [0, 0, 1, 1], [], []>} : vector<8x128xbf16>, vector<128x384xbf16>, vector<8x384xf32> -> vector<8x384xf32>
    %c0_103 = arith.constant 0 : index
    %c0_104 = arith.constant 0 : index
    %262 = vector.load %arg5[%c0_103, %c0_104] : memref<1x384xf32, #tpu.memory_space<vmem>>, vector<1x384xf32>
    %263 = vector.broadcast %262 : vector<1x384xf32> to vector<8x384xf32>
    %264 = arith.addf %261, %263 : vector<8x384xf32>
    %265 = vector.extract_strided_slice %257 {offsets = [0, 0], sizes = [8, 128], strides = [1, 1]} : vector<8x384xf32> to vector<8x128xf32>
    %266 = vector.extract_strided_slice %264 {offsets = [0, 0], sizes = [8, 128], strides = [1, 1]} : vector<8x384xf32> to vector<8x128xf32>
    %267 = arith.addf %265, %266 : vector<8x128xf32>
    %268 = arith.negf %267 : vector<8x128xf32>
    %269 = math.exp %268 : vector<8x128xf32>
    %cst_105 = arith.constant 1.000000e+00 : f32
    %270 = vector.broadcast %cst_105 : f32 to vector<8x128xf32>
    %271 = arith.addf %270, %269 : vector<8x128xf32>
    %272 = arith.divf %270, %271 : vector<8x128xf32>
    %273 = vector.extract_strided_slice %257 {offsets = [0, 128], sizes = [8, 128], strides = [1, 1]} : vector<8x384xf32> to vector<8x128xf32>
    %274 = vector.extract_strided_slice %264 {offsets = [0, 128], sizes = [8, 128], strides = [1, 1]} : vector<8x384xf32> to vector<8x128xf32>
    %275 = arith.addf %273, %274 : vector<8x128xf32>
    %276 = arith.negf %275 : vector<8x128xf32>
    %277 = math.exp %276 : vector<8x128xf32>
    %cst_106 = arith.constant 1.000000e+00 : f32
    %278 = vector.broadcast %cst_106 : f32 to vector<8x128xf32>
    %279 = arith.addf %278, %277 : vector<8x128xf32>
    %280 = arith.divf %278, %279 : vector<8x128xf32>
    %281 = vector.extract_strided_slice %257 {offsets = [0, 256], sizes = [8, 128], strides = [1, 1]} : vector<8x384xf32> to vector<8x128xf32>
    %282 = vector.extract_strided_slice %264 {offsets = [0, 256], sizes = [8, 128], strides = [1, 1]} : vector<8x384xf32> to vector<8x128xf32>
    %283 = arith.mulf %272, %282 : vector<8x128xf32>
    %284 = arith.addf %281, %283 : vector<8x128xf32>
    %285 = math.tanh %284 : vector<8x128xf32>
    %cst_107 = arith.constant 1.000000e+00 : f32
    %286 = vector.broadcast %cst_107 : f32 to vector<8x128xf32>
    %287 = arith.subf %286, %280 : vector<8x128xf32>
    %288 = arith.mulf %287, %285 : vector<8x128xf32>
    %289 = arith.mulf %280, %258 : vector<8x128xf32>
    %290 = arith.addf %288, %289 : vector<8x128xf32>
    %c0_108 = arith.constant 0 : index
    %c0_109 = arith.constant 0 : index
    %291 = vector.load %arg8[%c0_108, %c0_109] : memref<8x128xf32, #tpu.memory_space<vmem>>, vector<8x128xf32>
    tpu.vector_store %arg8[%c0_108, %c0_109], %290 {strides = array<i32>} : memref<8x128xf32, #tpu.memory_space<vmem>>, vector<8x128xf32>,
    %292 = arith.truncf %290 : vector<8x128xf32> to vector<8x128xbf16>
    %293 = arith.index_cast %c6_i32 : i32 to index
    %c0_110 = arith.constant 0 : index
    %c0_111 = arith.constant 0 : index
    %294 = vector.load %arg6[%293, %c0_110, %c0_111] : memref<8x8x128xbf16, #tpu.memory_space<vmem>>, vector<1x8x128xbf16>
    %295 = vector.shape_cast %294 : vector<1x8x128xbf16> to vector<8x128xbf16>
    %296 = vector.shape_cast %292 : vector<8x128xbf16> to vector<1x8x128xbf16>
    tpu.vector_store %arg6[%293, %c0_110, %c0_111], %296 {strides = array<i32>} : memref<8x8x128xbf16, #tpu.memory_space<vmem>>, vector<1x8x128xbf16>,
    %c7_i32 = arith.constant 7 : i32
    %297 = arith.index_cast %c7_i32 : i32 to index
    %c0_112 = arith.constant 0 : index
    %c0_113 = arith.constant 0 : index
    %298 = vector.load %arg2[%297, %c0_112, %c0_113] : memref<8x8x384xf32, #tpu.memory_space<vmem>>, vector<1x8x384xf32>
    %299 = vector.shape_cast %298 : vector<1x8x384xf32> to vector<8x384xf32>
    %c0_114 = arith.constant 0 : index
    %c0_115 = arith.constant 0 : index
    %300 = vector.load %arg8[%c0_114, %c0_115] : memref<8x128xf32, #tpu.memory_space<vmem>>, vector<8x128xf32>
    %301 = arith.truncf %300 : vector<8x128xf32> to vector<8x128xbf16>
    %c0_116 = arith.constant 0 : index
    %c0_117 = arith.constant 0 : index
    %302 = vector.load %arg4[%c0_116, %c0_117] : memref<128x384xbf16, #tpu.memory_space<vmem>>, vector<128x384xbf16>
    %cst_118 = arith.constant dense<0.000000e+00> : vector<8x384xf32>
    %303 = tpu.matmul %301, %302, %cst_118 {dimension_numbers = #tpu.dot_dimension_numbers<[1], [0], [0], [1], [0, 0, 1, 1], [], []>} : vector<8x128xbf16>, vector<128x384xbf16>, vector<8x384xf32> -> vector<8x384xf32>
    %c0_119 = arith.constant 0 : index
    %c0_120 = arith.constant 0 : index
    %304 = vector.load %arg5[%c0_119, %c0_120] : memref<1x384xf32, #tpu.memory_space<vmem>>, vector<1x384xf32>
    %305 = vector.broadcast %304 : vector<1x384xf32> to vector<8x384xf32>
    %306 = arith.addf %303, %305 : vector<8x384xf32>
    %307 = vector.extract_strided_slice %299 {offsets = [0, 0], sizes = [8, 128], strides = [1, 1]} : vector<8x384xf32> to vector<8x128xf32>
    %308 = vector.extract_strided_slice %306 {offsets = [0, 0], sizes = [8, 128], strides = [1, 1]} : vector<8x384xf32> to vector<8x128xf32>
    %309 = arith.addf %307, %308 : vector<8x128xf32>
    %310 = arith.negf %309 : vector<8x128xf32>
    %311 = math.exp %310 : vector<8x128xf32>
    %cst_121 = arith.constant 1.000000e+00 : f32
    %312 = vector.broadcast %cst_121 : f32 to vector<8x128xf32>
    %313 = arith.addf %312, %311 : vector<8x128xf32>
    %314 = arith.divf %312, %313 : vector<8x128xf32>
    %315 = vector.extract_strided_slice %299 {offsets = [0, 128], sizes = [8, 128], strides = [1, 1]} : vector<8x384xf32> to vector<8x128xf32>
    %316 = vector.extract_strided_slice %306 {offsets = [0, 128], sizes = [8, 128], strides = [1, 1]} : vector<8x384xf32> to vector<8x128xf32>
    %317 = arith.addf %315, %316 : vector<8x128xf32>
    %318 = arith.negf %317 : vector<8x128xf32>
    %319 = math.exp %318 : vector<8x128xf32>
    %cst_122 = arith.constant 1.000000e+00 : f32
    %320 = vector.broadcast %cst_122 : f32 to vector<8x128xf32>
    %321 = arith.addf %320, %319 : vector<8x128xf32>
    %322 = arith.divf %320, %321 : vector<8x128xf32>
    %323 = vector.extract_strided_slice %299 {offsets = [0, 256], sizes = [8, 128], strides = [1, 1]} : vector<8x384xf32> to vector<8x128xf32>
    %324 = vector.extract_strided_slice %306 {offsets = [0, 256], sizes = [8, 128], strides = [1, 1]} : vector<8x384xf32> to vector<8x128xf32>
    %325 = arith.mulf %314, %324 : vector<8x128xf32>
    %326 = arith.addf %323, %325 : vector<8x128xf32>
    %327 = math.tanh %326 : vector<8x128xf32>
    %cst_123 = arith.constant 1.000000e+00 : f32
    %328 = vector.broadcast %cst_123 : f32 to vector<8x128xf32>
    %329 = arith.subf %328, %322 : vector<8x128xf32>
    %330 = arith.mulf %329, %327 : vector<8x128xf32>
    %331 = arith.mulf %322, %300 : vector<8x128xf32>
    %332 = arith.addf %330, %331 : vector<8x128xf32>
    %c0_124 = arith.constant 0 : index
    %c0_125 = arith.constant 0 : index
    %333 = vector.load %arg8[%c0_124, %c0_125] : memref<8x128xf32, #tpu.memory_space<vmem>>, vector<8x128xf32>
    tpu.vector_store %arg8[%c0_124, %c0_125], %332 {strides = array<i32>} : memref<8x128xf32, #tpu.memory_space<vmem>>, vector<8x128xf32>,
    %334 = arith.truncf %332 : vector<8x128xf32> to vector<8x128xbf16>
    %335 = arith.index_cast %c7_i32 : i32 to index
    %c0_126 = arith.constant 0 : index
    %c0_127 = arith.constant 0 : index
    %336 = vector.load %arg6[%335, %c0_126, %c0_127] : memref<8x8x128xbf16, #tpu.memory_space<vmem>>, vector<1x8x128xbf16>
    %337 = vector.shape_cast %336 : vector<1x8x128xbf16> to vector<8x128xbf16>
    %338 = vector.shape_cast %334 : vector<8x128xbf16> to vector<1x8x128xbf16>
    tpu.vector_store %arg6[%335, %c0_126, %c0_127], %338 {strides = array<i32>} : memref<8x8x128xbf16, #tpu.memory_space<vmem>>, vector<1x8x128xbf16>,
    %c8_i32 = arith.constant 8 : i32
    %c0_128 = arith.constant 0 : index
    %c0_129 = arith.constant 0 : index
    %339 = vector.load %arg8[%c0_128, %c0_129] : memref<8x128xf32, #tpu.memory_space<vmem>>, vector<8x128xf32>
    %c0_130 = arith.constant 0 : index
    %c0_131 = arith.constant 0 : index
    %340 = vector.load %arg7[%c0_130, %c0_131] : memref<8x128xf32, #tpu.memory_space<vmem>>, vector<8x128xf32>
    tpu.vector_store %arg7[%c0_130, %c0_131], %339 {strides = array<i32>} : memref<8x128xf32, #tpu.memory_space<vmem>>, vector<8x128xf32>,
    return
  }
  func.func @transform_0(%arg0: i32, %arg1: i32) -> (i32, i32, i32) {
    %c0_i32 = arith.constant 0 : i32
    %c0_i32_0 = arith.constant 0 : i32
    return %arg1, %arg0, %c0_i32 : i32, i32, i32
  }
  func.func @transform_1(%arg0: i32, %arg1: i32) -> (i32, i32) {
    %c0_i32 = arith.constant 0 : i32
    %c0_i32_0 = arith.constant 0 : i32
    return %arg0, %c0_i32 : i32, i32
  }
  func.func @transform_2(%arg0: i32, %arg1: i32) -> (i32, i32) {
    %c0_i32 = arith.constant 0 : i32
    %c0_i32_0 = arith.constant 0 : i32
    %c0_i32_1 = arith.constant 0 : i32
    return %c0_i32, %c0_i32_0 : i32, i32
  }
  func.func @transform_3(%arg0: i32, %arg1: i32) -> (i32, i32) {
    %c0_i32 = arith.constant 0 : i32
    %c0_i32_0 = arith.constant 0 : i32
    %c0_i32_1 = arith.constant 0 : i32
    return %c0_i32, %c0_i32_0 : i32, i32
  }
  func.func @transform_4(%arg0: i32, %arg1: i32) -> (i32, i32, i32) {
    %c0_i32 = arith.constant 0 : i32
    %c0_i32_0 = arith.constant 0 : i32
    return %arg1, %arg0, %c0_i32 : i32, i32, i32
  }
  func.func @transform_5(%arg0: i32, %arg1: i32) -> (i32, i32) {
    %c0_i32 = arith.constant 0 : i32
    %c0_i32_0 = arith.constant 0 : i32
    return %arg0, %c0_i32 : i32, i32
  }
}

module attributes {stable_mosaic.version = 11 : i64} {
  func.func @matmul_bias_kernel(%arg0: i32, %arg1: i32, %arg2: memref<64x128xbf16, #tpu.memory_space<vmem>>, %arg3: memref<128x128xbf16, #tpu.memory_space<vmem>>, %arg4: memref<1x128xf32, #tpu.memory_space<vmem>>, %arg5: memref<64x128xf32, #tpu.memory_space<vmem>>) attributes {dimension_semantics = [#tpu.dimension_semantics<parallel>, #tpu.dimension_semantics<parallel>], iteration_bounds = array<i64: 1, 1>, scalar_prefetch = 0 : i64, scratch_operands = 0 : i64, tpu.core_type = #tpu.core_type<tc>, window_params = [{transform_indices = @transform_0, window_bounds = array<i64: 64, 128>}, {transform_indices = @transform_1, window_bounds = array<i64: 128, 128>}, {transform_indices = @transform_2, window_bounds = array<i64: 1, 128>}, {transform_indices = @transform_3, window_bounds = array<i64: 64, 128>}]} {
    %c0 = arith.constant 0 : index
    %c0_0 = arith.constant 0 : index
    %0 = vector.load %arg2[%c0, %c0_0] : memref<64x128xbf16, #tpu.memory_space<vmem>>, vector<64x128xbf16>
    %c0_1 = arith.constant 0 : index
    %c0_2 = arith.constant 0 : index
    %1 = vector.load %arg3[%c0_1, %c0_2] : memref<128x128xbf16, #tpu.memory_space<vmem>>, vector<128x128xbf16>
    %cst = arith.constant dense<0.000000e+00> : vector<64x128xf32>
    %2 = tpu.matmul %0, %1, %cst {dimension_numbers = #tpu.dot_dimension_numbers<[1], [0], [0], [1], [0, 0, 1, 1], [], []>} : vector<64x128xbf16>, vector<128x128xbf16>, vector<64x128xf32> -> vector<64x128xf32>
    %c0_3 = arith.constant 0 : index
    %c0_4 = arith.constant 0 : index
    %3 = vector.load %arg4[%c0_3, %c0_4] : memref<1x128xf32, #tpu.memory_space<vmem>>, vector<1x128xf32>
    %4 = vector.broadcast %3 : vector<1x128xf32> to vector<64x128xf32>
    %5 = arith.addf %2, %4 : vector<64x128xf32>
    %c0_5 = arith.constant 0 : index
    %c0_6 = arith.constant 0 : index
    %6 = vector.load %arg5[%c0_5, %c0_6] : memref<64x128xf32, #tpu.memory_space<vmem>>, vector<64x128xf32>
    tpu.vector_store %arg5[%c0_5, %c0_6], %5 {strides = array<i32>} : memref<64x128xf32, #tpu.memory_space<vmem>>, vector<64x128xf32>,
    return
  }
  func.func @transform_0(%arg0: i32, %arg1: i32) -> (i32, i32) {
    %c0_i32 = arith.constant 0 : i32
    %c0_i32_0 = arith.constant 0 : i32
    return %arg0, %c0_i32 : i32, i32
  }
  func.func @transform_1(%arg0: i32, %arg1: i32) -> (i32, i32) {
    %c0_i32 = arith.constant 0 : i32
    %c0_i32_0 = arith.constant 0 : i32
    return %c0_i32, %arg1 : i32, i32
  }
  func.func @transform_2(%arg0: i32, %arg1: i32) -> (i32, i32) {
    %c0_i32 = arith.constant 0 : i32
    %c0_i32_0 = arith.constant 0 : i32
    return %c0_i32, %arg1 : i32, i32
  }
  func.func @transform_3(%arg0: i32, %arg1: i32) -> (i32, i32) {
    %c0_i32 = arith.constant 0 : i32
    return %arg0, %arg1 : i32, i32
  }
}

</mosaic_0001>

<bundles_post_ra>
// kernel: encoder_decoder_forward.5
= control target key start
LH: loop header
LB: loop body
LE: loop exit
PB: predicated region body
PF: predicated region fallthrough
CT: control target
= control target key end

     0   :  { %v332_v1 = vmov 0   ;;  %vm100_vm0 = vcmask 261120   ;;  %v33_v11 = vlaneseq  ;;  %s486_s1 = inlined_call_operand.vmem [shape: bf16[32,384], index: 1, kind: input, shape index: {}]   ;;  %s487_s0 = inlined_call_operand.vmem [shape: bf16[64,32], index: 0, kind: input, shape index: {}]   ;;  %s488_s2 = inlined_call_operand.vmem [shape: f32[1,384], index: 2, kind: input, shape index: {}]   ;;  %s489_s3 = inlined_call_operand.vmem [shape: f32[64,384], index: 3, kind: output, shape index: {}]  }
   0x1   :  { %v320_v0 = vld [vmem:[%s486_s1 + $0x4] ss:$12 sps:$4 sm:$0xff]   ;;  %145 = vmatprep.mubr.bf16.mxu0 %v332_v1  ;;  %175 = vmatprep.mubr.bf16.mxu1 %v332_v1  ;;  %v322_v2 = vld [vmem:[%s486_s1] ss:$12 sps:$4 sm:$0xff]   ;;  %v323_v3 = vld [vmem:[%s486_s1 + $0x1c] ss:$12 sps:$4 sm:$0xff]  }
   0x2   :  { %113 = vmatprep.subr.bf16.mxu0 %v320_v0  ;;  %315 = vmatprep.subr.bf16.mxu1 %v320_v0  ;;  %v325_v4 = vld [vmem:[%s486_s1 + $0x18] ss:$12 sps:$4 sm:$0xff]   ;;  %v328_v6 = vld [vmem:[%s486_s1 + $0x8] ss:$12 sps:$4 sm:$0xff]   ;;  %v329_v8 = vld [vmem:[%s486_s1 + $0x20] ss:$12 sps:$4 sm:$0xff]  }
   0x3   :  { %114 = vmatpush1.bf16.msra.mxu0 %v322_v2  ;;  %317 = vmatpush1.bf16.msra.mxu1 %v322_v2  ;;  %v326_v5 = vld [vmem:[%s487_s0] sm:$0xff]   ;;  %v327_v7 = vld [vmem:[%s487_s0 + $0x18] sm:$0xff]   ;;  %v330_v9 = vld [vmem:[%s487_s0 + $0x8] sm:$0xff]   ;;  %v34_v12 = vshrl.u32 %v33_v11, 7 }
   0x4   :  { %115 = vmatprep.subr.bf16.mxu0 %v323_v3  ;;  %316 = vmatprep.subr.bf16.mxu1 %v323_v3  ;;  %v331_v10 = vld [vmem:[%s487_s0 + $0x10] sm:$0xff]   ;;  %v31_v14 = vld [vmem:[%s488_s2] sm:$0x7] }
   0x5   :  { %v35_v13 = vsub.s32 0, %v34_v12  ;;  %v39_v15 = vsub.s32 1, %v34_v12  ;;  %v43_v24 = vsub.s32 2, %v34_v12 }
   0x7   :  { %116 = vmatpush1.bf16.msra.mxu0 %v325_v4  ;;  %318 = vmatpush1.bf16.msra.mxu1 %v325_v4  ;;  %v394_v16 = vrot.slane %v31_v14, %v35_v13  ;;  %v396_v17 = vrot.slane %v31_v14, %v39_v15  ;;  %v44_v35 = vrot.slane %v31_v14, %v43_v24 }
   0x8   :  { %303 = vmatprep.subr.bf16.mxu1 %v328_v6 }
   0xa   :  { %289 = vmatmul.mubr.msk.bf16.vlgmr.msra.gmra.mrb[0].mxu0 %vm100_vm0, %v326_v5  ;;  %292 = vmatmul.mubr.msk.bf16.vlgmr.msra.gmra.mrb[0].mxu1 %vm100_vm0, %v327_v7 }
   0xb   :  { %304 = vmatpush3.bf16.msra.mxu1 %v328_v6  ;;  %155 = vmatprep.mubr.bf16.mxu0 %v332_v1 }
   0xc   :  { %305 = vmatprep.subr.bf16.mxu1 %v329_v8  ;;  %307 = vmatprep.mubr.msk.bf16.mxu1 %vm100_vm0, %v326_v5 }
   0xf   :  { %306 = vmatpush3.bf16.msra.mxu1 %v329_v8 }
  0x12   :  { %290 = vmatmul.mubr.msk.bf16.gmra.mrb[4].mxu0 %vm100_vm0, %v330_v9  ;;  %308 = vmatmul.mubr.msk.bf16.vlgmr.msra.gmra.mrb[4].mxu1 %vm100_vm0, %v330_v9 }
  0x13   :  { %165 = vmatprep.mubr.bf16.mxu0 %v332_v1  ;;  %311 = vmatprep.mubr.msk.bf16.mxu1 %vm100_vm0, %v331_v10 }
  0x1a   :  { %291 = vmatmul.mubr.msk.bf16.gmra.mrb[8].mxu0 %vm100_vm0, %v331_v10  ;;  %312 = vmatmul.mubr.msk.bf16.gmra.mrb[8].mxu1 %vm100_vm0, %v327_v7 }
  0xdd   :  { %v147_v18 = vpop.f32.mrb[0].mxu0  ;;  %v177_v19 = vpop.f32.mrb[0].mxu1 }
  0xde   :  { %v148_v20 = vadd.f32 %v147_v18, %v394_v16  ;;  %v178_v21 = vadd.f32 %v177_v19, %v394_v16  ;;  %v149_v22 = vpop.f32.mrb[1].mxu0  ;;  %v179_v23 = vpop.f32.mrb[1].mxu1 }
  0xdf   :  { %v150_v25 = vadd.f32 %v149_v22, %v396_v17  ;;  %v180_v26 = vadd.f32 %v179_v23, %v396_v17  ;;  %v151_v27 = vpop.f32.mrb[2].mxu0  ;;  %v181_v28 = vpop.f32.mrb[2].mxu1 }
  0xe0   :  { %251 = vst [vmem:[%s489_s3] sm:$0xff] %v148_v20  ;;  %269 = vst [vmem:[%s489_s3 + $0x90] sm:$0xff] %v178_v21  ;;  %v152_v29 = vadd.f32 %v151_v27, %v394_v16  ;;  %v182_v30 = vadd.f32 %v181_v28, %v394_v16  ;;  %v153_v31 = vpop.f32.mrb[3].mxu0  ;;  %v183_v32 = vpop.f32.mrb[3].mxu1 }
  0xe1   :  { %252 = vst [vmem:[%s489_s3 + $0x8] sm:$0xff] %v150_v25  ;;  %270 = vst [vmem:[%s489_s3 + $0x98] sm:$0xff] %v180_v26  ;;  %v154_v33 = vadd.f32 %v153_v31, %v396_v17  ;;  %v184_v34 = vadd.f32 %v183_v32, %v396_v17 }
  0xe2   :  { %254 = vst [vmem:[%s489_s3 + $0x18] sm:$0xff] %v152_v29  ;;  %272 = vst [vmem:[%s489_s3 + $0xa8] sm:$0xff] %v182_v30 }
  0xe3   :  { %255 = vst [vmem:[%s489_s3 + $0x20] sm:$0xff] %v154_v33  ;;  %273 = vst [vmem:[%s489_s3 + $0xb0] sm:$0xff] %v184_v34 }
  0xe5   :  { %v157_v36 = vpop.f32.mrb[4].mxu0  ;;  %v309_v37 = vpop.f32.mrb[4].mxu1 }
  0xe6   :  { %v158_v38 = vadd.f32 %v157_v36, %v394_v16  ;;  %v229_v39 = vadd.f32 %v309_v37, %v44_v35  ;;  %v159_v40 = vpop.f32.mrb[5].mxu0  ;;  %v220_v41 = vpop.f32.mrb[5].mxu1 }
  0xe7   :  { %v160_v42 = vadd.f32 %v159_v40, %v396_v17  ;;  %v221_v43 = vadd.f32 %v220_v41, %v44_v35  ;;  %v161_v44 = vpop.f32.mrb[6].mxu0  ;;  %v310_v45 = vpop.f32.mrb[6].mxu1 }
  0xe8   :  { %257 = vst [vmem:[%s489_s3 + $0x30] sm:$0xff] %v158_v38  ;;  %259 = vst [vmem:[%s489_s3 + $0x40] sm:$0xff] %v229_v39  ;;  %v162_v46 = vadd.f32 %v161_v44, %v394_v16  ;;  %v232_v47 = vadd.f32 %v310_v45, %v44_v35  ;;  %v163_v48 = vpop.f32.mrb[7].mxu0  ;;  %v223_v49 = vpop.f32.mrb[7].mxu1 }
  0xe9   :  { %258 = vst [vmem:[%s489_s3 + $0x38] sm:$0xff] %v160_v42  ;;  %253 = vst [vmem:[%s489_s3 + $0x10] sm:$0xff] %v221_v43  ;;  %v164_v50 = vadd.f32 %v163_v48, %v396_v17  ;;  %v224_v51 = vadd.f32 %v223_v49, %v44_v35 }
  0xea   :  { %260 = vst [vmem:[%s489_s3 + $0x48] sm:$0xff] %v162_v46  ;;  %262 = vst [vmem:[%s489_s3 + $0x58] sm:$0xff] %v232_v47 }
  0xeb   :  { %261 = vst [vmem:[%s489_s3 + $0x50] sm:$0xff] %v164_v50  ;;  %256 = vst [vmem:[%s489_s3 + $0x28] sm:$0xff] %v224_v51 }
  0xed   :  { %v167_v52 = vpop.f32.mrb[8].mxu0  ;;  %v313_v53 = vpop.f32.mrb[8].mxu1 }
  0xee   :  { %v168_v54 = vadd.f32 %v167_v52, %v394_v16  ;;  %v245_v55 = vadd.f32 %v313_v53, %v44_v35  ;;  %v169_v56 = vpop.f32.mrb[9].mxu0  ;;  %v236_v57 = vpop.f32.mrb[9].mxu1 }
  0xef   :  { %v170_v58 = vadd.f32 %v169_v56, %v396_v17  ;;  %v237_v59 = vadd.f32 %v236_v57, %v44_v35  ;;  %v171_v60 = vpop.f32.mrb[10].mxu0  ;;  %v314_v61 = vpop.f32.mrb[10].mxu1 }
  0xf0   :  { %263 = vst [vmem:[%s489_s3 + $0x60] sm:$0xff] %v168_v54  ;;  %271 = vst [vmem:[%s489_s3 + $0xa0] sm:$0xff] %v245_v55  ;;  %v172_v62 = vadd.f32 %v171_v60, %v394_v16  ;;  %v248_v63 = vadd.f32 %v314_v61, %v44_v35  ;;  %v173_v0 = vpop.f32.mrb[11].mxu0  ;;  %v239_v1 = vpop.f32.mrb[11].mxu1 }
  0xf1   :  { %264 = vst [vmem:[%s489_s3 + $0x68] sm:$0xff] %v170_v58  ;;  %265 = vst [vmem:[%s489_s3 + $0x70] sm:$0xff] %v237_v59  ;;  %v174_v2 = vadd.f32 %v173_v0, %v396_v17  ;;  %v240_v3 = vadd.f32 %v239_v1, %v44_v35 }
  0xf2   :  { %266 = vst [vmem:[%s489_s3 + $0x78] sm:$0xff] %v172_v62  ;;  %274 = vst [vmem:[%s489_s3 + $0xb8] sm:$0xff] %v248_v63 }
  0xf3   :  { %267 = vst [vmem:[%s489_s3 + $0x80] sm:$0xff] %v174_v2  ;;  %268 = vst [vmem:[%s489_s3 + $0x88] sm:$0xff] %v240_v3 }

// kernel: encoder_decoder_forward.7
= control target key start
LH: loop header
LB: loop body
LE: loop exit
PB: predicated region body
PF: predicated region fallthrough
CT: control target
= control target key end

     0   :  { %v554_v0 = vmov 0   ;;  %vm276_vm0 = vcmask 261120   ;;  %v65_v39 = vlaneseq  ;;  %s812_s1 = inlined_call_operand.vmem [shape: bf16[160,384], index: 1, kind: input, shape index: {}]   ;;  %s813_s0 = inlined_call_operand.vmem [shape: bf16[64,160], index: 0, kind: input, shape index: {}]   ;;  %s814_s2 = inlined_call_operand.vmem [shape: f32[1,384], index: 2, kind: input, shape index: {}]   ;;  %s815_s3 = inlined_call_operand.vmem [shape: f32[64,384], index: 3, kind: output, shape index: {}]  }
   0x1   :  { %362 = vmatprep.subr.bf16.mxu1 %v554_v0  ;;  %v502_v1 = vld [vmem:[%s812_s1 + $0x4] ss:$12 sps:$4 sm:$0xff]   ;;  %v504_v2 = vld [vmem:[%s812_s1 + $0x8] ss:$12 sps:$4 sm:$0xff]   ;;  %v505_v3 = vld [vmem:[%s812_s1] ss:$12 sps:$4 sm:$0xff]  }
   0x2   :  { %289 = vmatprep.subr.bf16.mxu0 %v502_v1  ;;  %363 = vmatpush1.bf16.msra.mxu1 %v504_v2  ;;  %v506_v4 = vld [vmem:[%s812_s1 + $0x1c] ss:$12 sps:$4 sm:$0xff]   ;;  %v508_v5 = vld [vmem:[%s812_s1 + $0x20] ss:$12 sps:$4 sm:$0xff]   ;;  %v509_v6 = vld [vmem:[%s812_s1 + $0x18] ss:$12 sps:$4 sm:$0xff]  }
   0x3   :  { %290 = vmatpush1.bf16.msra.mxu0 %v505_v3  ;;  %364 = vmatprep.subr.bf16.mxu1 %v554_v0  ;;  %v510_v7 = vld [vmem:[%s812_s1 + $0x34] ss:$12 sps:$4 sm:$0xff]   ;;  %v512_v8 = vld [vmem:[%s812_s1 + $0x38] ss:$12 sps:$4 sm:$0xff]   ;;  %v513_v9 = vld [vmem:[%s812_s1 + $0x30] ss:$12 sps:$4 sm:$0xff]  }
   0x4   :  { %291 = vmatprep.subr.bf16.mxu0 %v506_v4  ;;  %v514_v10 = vld [vmem:[%s812_s1 + $0x4c] ss:$12 sps:$4 sm:$0xff]   ;;  %v516_v11 = vld [vmem:[%s812_s1 + $0x50] ss:$12 sps:$4 sm:$0xff]   ;;  %v517_v12 = vld [vmem:[%s812_s1 + $0x48] ss:$12 sps:$4 sm:$0xff]  }
   0x5   :  { %v518_v13 = vld [vmem:[%s812_s1 + $0x64] ss:$12 sps:$4 sm:$0xff]   ;;  %v520_v14 = vld [vmem:[%s812_s1 + $0x68] ss:$12 sps:$4 sm:$0xff]   ;;  %v521_v15 = vld [vmem:[%s812_s1 + $0x60] ss:$12 sps:$4 sm:$0xff]  }
   0x6   :  { %365 = vmatpush1.bf16.msra.mxu1 %v508_v5  ;;  %v522_v16 = vld [vmem:[%s812_s1 + $0x7c] ss:$12 sps:$4 sm:$0xff]   ;;  %v524_v17 = vld [vmem:[%s812_s1 + $0x80] ss:$12 sps:$4 sm:$0xff]   ;;  %v525_v18 = vld [vmem:[%s812_s1 + $0x78] ss:$12 sps:$4 sm:$0xff]  }
   0x7   :  { %292 = vmatpush1.bf16.msra.mxu0 %v509_v6  ;;  %366 = vmatprep.subr.bf16.mxu1 %v554_v0  ;;  %v526_v19 = vld [vmem:[%s812_s1 + $0x94] ss:$12 sps:$4 sm:$0xff]   ;;  %v528_v20 = vld [vmem:[%s812_s1 + $0x98] ss:$12 sps:$4 sm:$0xff]   ;;  %v529_v21 = vld [vmem:[%s812_s1 + $0x90] ss:$12 sps:$4 sm:$0xff]  }
   0x8   :  { %293 = vmatprep.subr.bf16.mxu0 %v510_v7  ;;  %v544_v22 = vld [vmem:[%s813_s0 + $0x4] ss:$8 sps:$4 sm:$0xff]   ;;  %v532_v24 = vld [vmem:[%s812_s1 + $0xb0] ss:$12 sps:$4 sm:$0xff]   ;;  %v533_v25 = vld [vmem:[%s812_s1 + $0xa8] ss:$12 sps:$4 sm:$0xff]  }
   0x9   :  { %v530_v23 = vld [vmem:[%s812_s1 + $0xac] ss:$12 sps:$4 sm:$0xff]   ;;  %497 = vmatprep.mubr.msk.bf16.mxu1 %vm276_vm0, %v544_v22  ;;  %493 = vmatprep.mubr.msk.bf16.mxu0 %vm276_vm0, %v544_v22  ;;  %v534_v26 = vld [vmem:[%s812_s1 + $0xc4] ss:$12 sps:$4 sm:$0xff]   ;;  %v536_v27 = vld [vmem:[%s812_s1 + $0xc8] ss:$12 sps:$4 sm:$0xff]  }
   0xa   :  { %367 = vmatpush1.bf16.msra.mxu1 %v512_v8  ;;  %v537_v28 = vld [vmem:[%s812_s1 + $0xc0] ss:$12 sps:$4 sm:$0xff]   ;;  %v538_v29 = vld [vmem:[%s812_s1 + $0xdc] ss:$12 sps:$4 sm:$0xff]   ;;  %v541_v31 = vld [vmem:[%s812_s1 + $0xd8] ss:$12 sps:$4 sm:$0xff]  }
   0xb   :  { %294 = vmatpush1.bf16.msra.mxu0 %v513_v9  ;;  %368 = vmatprep.subr.bf16.mxu1 %v554_v0  ;;  %v540_v30 = vld [vmem:[%s812_s1 + $0xe0] ss:$12 sps:$4 sm:$0xff]   ;;  %v545_v33 = vld [vmem:[%s813_s0 + $0x14] ss:$8 sps:$4 sm:$0xff]   ;;  %v547_v34 = vld [vmem:[%s813_s0 + $0x10] ss:$8 sps:$4 sm:$0xff]  }
   0xc   :  { %295 = vmatprep.subr.bf16.mxu0 %v514_v10  ;;  %v542_v32 = vld [vmem:[%s813_s0] ss:$8 sps:$4 sm:$0xff]   ;;  %v548_v35 = vld [vmem:[%s813_s0 + $0x24] ss:$8 sps:$4 sm:$0xff]   ;;  %v551_v37 = vld [vmem:[%s813_s0 + $0x34] ss:$8 sps:$4 sm:$0xff]  }
   0xd   :  { %v550_v36 = vld [vmem:[%s813_s0 + $0x20] ss:$8 sps:$4 sm:$0xff]   ;;  %v553_v38 = vld [vmem:[%s813_s0 + $0x30] ss:$8 sps:$4 sm:$0xff]   ;;  %v66_v40 = vshrl.u32 %v65_v39, 7 }
   0xe   :  { %369 = vmatpush1.bf16.msra.mxu1 %v516_v11  ;;  %v63_v42 = vld [vmem:[%s814_s2] sm:$0x7] }
   0xf   :  { %296 = vmatpush1.bf16.msra.mxu0 %v517_v12  ;;  %370 = vmatprep.subr.bf16.mxu1 %v554_v0  ;;  %v75_v41 = vsub.s32 2, %v66_v40  ;;  %v67_v43 = vsub.s32 0, %v66_v40  ;;  %v71_v44 = vsub.s32 1, %v66_v40 }
  0x10   :  { %297 = vmatprep.subr.bf16.mxu0 %v518_v13 }
  0x11   :  { %v710_v45 = vrot.slane %v63_v42, %v75_v41  ;;  %v712_v46 = vrot.slane %v63_v42, %v67_v43  ;;  %v714_v47 = vrot.slane %v63_v42, %v71_v44 }
  0x12   :  { %371 = vmatpush1.bf16.msra.mxu1 %v520_v14 }
  0x13   :  { %298 = vmatpush1.bf16.msra.mxu0 %v521_v15  ;;  %372 = vmatprep.subr.bf16.mxu1 %v554_v0 }
  0x14   :  { %299 = vmatprep.subr.bf16.mxu0 %v522_v16 }
  0x16   :  { %373 = vmatpush1.bf16.msra.mxu1 %v524_v17 }
  0x17   :  { %300 = vmatpush1.bf16.msra.mxu0 %v525_v18  ;;  %374 = vmatprep.subr.bf16.mxu1 %v554_v0 }
  0x18   :  { %301 = vmatprep.subr.bf16.mxu0 %v526_v19 }
  0x1a   :  { %375 = vmatpush1.bf16.msra.mxu1 %v528_v20 }
  0x1b   :  { %302 = vmatpush1.bf16.msra.mxu0 %v529_v21  ;;  %376 = vmatprep.subr.bf16.mxu1 %v554_v0 }
  0x1c   :  { %303 = vmatprep.subr.bf16.mxu0 %v530_v23 }
  0x1e   :  { %377 = vmatpush1.bf16.msra.mxu1 %v532_v24 }
  0x1f   :  { %304 = vmatpush1.bf16.msra.mxu0 %v533_v25  ;;  %378 = vmatprep.subr.bf16.mxu1 %v554_v0 }
  0x20   :  { %305 = vmatprep.subr.bf16.mxu0 %v534_v26 }
  0x22   :  { %379 = vmatpush1.bf16.msra.mxu1 %v536_v27 }
  0x23   :  { %306 = vmatpush1.bf16.msra.mxu0 %v537_v28  ;;  %380 = vmatprep.subr.bf16.mxu1 %v554_v0 }
  0x24   :  { %307 = vmatprep.subr.bf16.mxu0 %v538_v29 }
  0x26   :  { %381 = vmatpush1.bf16.msra.mxu1 %v540_v30 }
  0x27   :  { %308 = vmatpush1.bf16.msra.mxu0 %v541_v31 }
  0x29   :  { %395 = vmatmul.mubr.bf16.vlgmr.msra.gmra.mrb[0].mxu1 %v542_v32 }
  0x2a   :  { %322 = vmatmul.mubr.bf16.vlgmr.msra.gmra.mrb[0].mxu0 %v542_v32  ;;  %498 = vmatprep.mubr.msk.bf16.mxu1 %vm276_vm0, %v545_v33 }
  0x2b   :  { %494 = vmatprep.mubr.msk.bf16.mxu0 %vm276_vm0, %v545_v33 }
  0x31   :  { %403 = vmatmul.mubr.bf16.gmra.mrb[4].mxu1 %v547_v34 }
  0x32   :  { %332 = vmatmul.mubr.bf16.gmra.mrb[4].mxu0 %v547_v34  ;;  %499 = vmatprep.mubr.msk.bf16.mxu1 %vm276_vm0, %v548_v35 }
  0x33   :  { %495 = vmatprep.mubr.msk.bf16.mxu0 %vm276_vm0, %v548_v35 }
  0x39   :  { %411 = vmatmul.mubr.bf16.gmra.mrb[8].mxu1 %v550_v36 }
  0x3a   :  { %342 = vmatmul.mubr.bf16.gmra.mrb[8].mxu0 %v550_v36  ;;  %500 = vmatprep.mubr.msk.bf16.mxu1 %vm276_vm0, %v551_v37 }
  0x3b   :  { %496 = vmatprep.mubr.msk.bf16.mxu0 %vm276_vm0, %v551_v37 }
  0x41   :  { %419 = vmatmul.mubr.bf16.gmra.mrb[12].mxu1 %v553_v38 }
  0x42   :  { %352 = vmatmul.mubr.bf16.gmra.mrb[12].mxu0 %v553_v38 }
  0xfc   :  { %v396_v48 = vpop.f32.mrb[0].mxu1 }
  0xfd   :  { %v397_v49 = vadd.f32 %v396_v48, %v710_v45  ;;  %v323_v50 = vpop.f32.mrb[0].mxu0  ;;  %v398_v51 = vpop.f32.mrb[1].mxu1 }
  0xfe   :  { %v324_v52 = vadd.f32 %v323_v50, %v712_v46  ;;  %v325_v53 = vpop.f32.mrb[1].mxu0  ;;  %v399_v54 = vpop.f32.mrb[2].mxu1 }
  0xff   :  { %429 = vst [vmem:[%s815_s3 + $0x10] sm:$0xff] %v397_v49  ;;  %v326_v55 = vadd.f32 %v325_v53, %v714_v47  ;;  %v400_v56 = vadd.f32 %v399_v54, %v710_v45  ;;  %v327_v57 = vpop.f32.mrb[2].mxu0  ;;  %v401_v58 = vpop.f32.mrb[3].mxu1 }
 0x100   :  { %427 = vst [vmem:[%s815_s3] sm:$0xff] %v324_v52  ;;  %v328_v59 = vadd.f32 %v327_v57, %v712_v46  ;;  %v329_v60 = vpop.f32.mrb[3].mxu0 }
 0x101   :  { %428 = vst [vmem:[%s815_s3 + $0x8] sm:$0xff] %v326_v55  ;;  %432 = vst [vmem:[%s815_s3 + $0x28] sm:$0xff] %v400_v56  ;;  %v330_v61 = vadd.f32 %v329_v60, %v714_v47 }
 0x102   :  { %430 = vst [vmem:[%s815_s3 + $0x18] sm:$0xff] %v328_v59 }
 0x103   :  { %431 = vst [vmem:[%s815_s3 + $0x20] sm:$0xff] %v330_v61 }
 0x104   :  { %v404_v62 = vpop.f32.mrb[4].mxu1 }
 0x105   :  { %v405_v63 = vadd.f32 %v404_v62, %v710_v45  ;;  %v333_v0 = vpop.f32.mrb[4].mxu0  ;;  %v406_v1 = vpop.f32.mrb[5].mxu1 }
 0x106   :  { %v334_v2 = vadd.f32 %v333_v0, %v712_v46  ;;  %v335_v3 = vpop.f32.mrb[5].mxu0  ;;  %v407_v4 = vpop.f32.mrb[6].mxu1 }
 0x107   :  { %435 = vst [vmem:[%s815_s3 + $0x40] sm:$0xff] %v405_v63  ;;  %v336_v5 = vadd.f32 %v335_v3, %v714_v47  ;;  %v408_v6 = vadd.f32 %v407_v4, %v710_v45  ;;  %v337_v7 = vpop.f32.mrb[6].mxu0  ;;  %v409_v8 = vpop.f32.mrb[7].mxu1 }
 0x108   :  { %433 = vst [vmem:[%s815_s3 + $0x30] sm:$0xff] %v334_v2  ;;  %v338_v9 = vadd.f32 %v337_v7, %v712_v46  ;;  %v339_v10 = vpop.f32.mrb[7].mxu0 }
 0x109   :  { %434 = vst [vmem:[%s815_s3 + $0x38] sm:$0xff] %v336_v5  ;;  %438 = vst [vmem:[%s815_s3 + $0x58] sm:$0xff] %v408_v6  ;;  %v340_v11 = vadd.f32 %v339_v10, %v714_v47 }
 0x10a   :  { %436 = vst [vmem:[%s815_s3 + $0x48] sm:$0xff] %v338_v9 }
 0x10b   :  { %437 = vst [vmem:[%s815_s3 + $0x50] sm:$0xff] %v340_v11 }
 0x10c   :  { %v412_v12 = vpop.f32.mrb[8].mxu1 }
 0x10d   :  { %v413_v13 = vadd.f32 %v412_v12, %v710_v45  ;;  %v343_v14 = vpop.f32.mrb[8].mxu0  ;;  %v414_v15 = vpop.f32.mrb[9].mxu1 }
 0x10e   :  { %v344_v16 = vadd.f32 %v343_v14, %v712_v46  ;;  %v345_v17 = vpop.f32.mrb[9].mxu0  ;;  %v415_v18 = vpop.f32.mrb[10].mxu1 }
 0x10f   :  { %441 = vst [vmem:[%s815_s3 + $0x70] sm:$0xff] %v413_v13  ;;  %v346_v19 = vadd.f32 %v345_v17, %v714_v47  ;;  %v416_v20 = vadd.f32 %v415_v18, %v710_v45  ;;  %v347_v21 = vpop.f32.mrb[10].mxu0  ;;  %v417_v22 = vpop.f32.mrb[11].mxu1 }
 0x110   :  { %439 = vst [vmem:[%s815_s3 + $0x60] sm:$0xff] %v344_v16  ;;  %v348_v23 = vadd.f32 %v347_v21, %v712_v46  ;;  %v349_v24 = vpop.f32.mrb[11].mxu0 }
 0x111   :  { %440 = vst [vmem:[%s815_s3 + $0x68] sm:$0xff] %v346_v19  ;;  %444 = vst [vmem:[%s815_s3 + $0x88] sm:$0xff] %v416_v20  ;;  %v350_v25 = vadd.f32 %v349_v24, %v714_v47 }
 0x112   :  { %442 = vst [vmem:[%s815_s3 + $0x78] sm:$0xff] %v348_v23 }
 0x113   :  { %443 = vst [vmem:[%s815_s3 + $0x80] sm:$0xff] %v350_v25 }
 0x114   :  { %v420_v26 = vpop.f32.mrb[12].mxu1 }
 0x115   :  { %v421_v27 = vadd.f32 %v420_v26, %v710_v45  ;;  %v353_v28 = vpop.f32.mrb[12].mxu0  ;;  %v422_v29 = vpop.f32.mrb[13].mxu1 }
 0x116   :  { %v354_v30 = vadd.f32 %v353_v28, %v712_v46  ;;  %v355_v31 = vpop.f32.mrb[13].mxu0  ;;  %v423_v32 = vpop.f32.mrb[14].mxu1 }
 0x117   :  { %447 = vst [vmem:[%s815_s3 + $0xa0] sm:$0xff] %v421_v27  ;;  %v356_v33 = vadd.f32 %v355_v31, %v714_v47  ;;  %v424_v34 = vadd.f32 %v423_v32, %v710_v45  ;;  %v357_v35 = vpop.f32.mrb[14].mxu0  ;;  %v425_v36 = vpop.f32.mrb[15].mxu1 }
 0x118   :  { %445 = vst [vmem:[%s815_s3 + $0x90] sm:$0xff] %v354_v30  ;;  %v358_v37 = vadd.f32 %v357_v35, %v712_v46  ;;  %v359_v38 = vpop.f32.mrb[15].mxu0 }
 0x119   :  { %446 = vst [vmem:[%s815_s3 + $0x98] sm:$0xff] %v356_v33  ;;  %450 = vst [vmem:[%s815_s3 + $0xb8] sm:$0xff] %v424_v34  ;;  %v360_v39 = vadd.f32 %v359_v38, %v714_v47 }
 0x11a   :  { %448 = vst [vmem:[%s815_s3 + $0xa8] sm:$0xff] %v358_v37 }
 0x11b   :  { %449 = vst [vmem:[%s815_s3 + $0xb0] sm:$0xff] %v360_v39 }

// kernel: encoder_decoder_forward.9
= control target key start
LH: loop header
LB: loop body
LE: loop exit
PB: predicated region body
PF: predicated region fallthrough
CT: control target
= control target key end

     0   :  { %s386_s0 = inlined_call_operand.vmem [shape: bf16[64,128], index: 0, kind: input, shape index: {}]   ;;  %s387_s1 = inlined_call_operand.vmem [shape: bf16[128,128], index: 1, kind: input, shape index: {}]   ;;  %s388_s2 = inlined_call_operand.vmem [shape: f32[1,128], index: 2, kind: input, shape index: {}]   ;;  %s389_s3 = inlined_call_operand.hbm [shape: f32[64,128], index: 3, kind: output, shape index: {}]  }
   0x1   :  { %v276_v0 = vld [vmem:[%s387_s1] sm:$0xff]   ;;  %v277_v1 = vld [vmem:[%s387_s1 + $0x8] sm:$0xff]   ;;  %v278_v2 = vld [vmem:[%s387_s1 + $0x10] sm:$0xff]  }
   0x2   :  { %233 = vmatprep.subr.bf16.mxu0 %v276_v0  ;;  %257 = vmatprep.subr.bf16.mxu1 %v276_v0  ;;  %v279_v3 = vld [vmem:[%s387_s1 + $0x18] sm:$0xff]   ;;  %v284_v4 = vld [vmem:[%s386_s0] sm:$0xff]   ;;  %v285_v5 = vld [vmem:[%s386_s0 + $0x10] sm:$0xff]  }
   0x3   :  { %234 = vmatpush3.bf16.msra.mxu0 %v276_v0  ;;  %265 = vmatpush3.bf16.msra.mxu1 %v276_v0  ;;  %v280_v6 = vld [vmem:[%s387_s1 + $0x20] sm:$0xff]  }
   0x4   :  { %235 = vmatprep.subr.bf16.mxu0 %v277_v1  ;;  %258 = vmatprep.subr.bf16.mxu1 %v277_v1 }
   0x5   :  { %249 = vmatprep.mubr.bf16.mxu0 %v284_v4 }
   0x7   :  { %236 = vmatpush3.bf16.msra.mxu0 %v277_v1  ;;  %266 = vmatpush3.bf16.msra.mxu1 %v277_v1 }
   0x8   :  { %237 = vmatprep.subr.bf16.mxu0 %v278_v2  ;;  %259 = vmatprep.subr.bf16.mxu1 %v278_v2 }
   0xb   :  { %238 = vmatpush3.bf16.msra.mxu0 %v278_v2  ;;  %267 = vmatpush3.bf16.msra.mxu1 %v278_v2 }
   0xc   :  { %239 = vmatprep.subr.bf16.mxu0 %v279_v3  ;;  %260 = vmatprep.subr.bf16.mxu1 %v279_v3 }
   0xd   :  { %8 = vsyncpa [#allocation3], 0  ;;  %253 = vmatprep.mubr.bf16.mxu1 %v285_v5  ;;  %v281_v7 = vld [vmem:[%s387_s1 + $0x28] sm:$0xff]   ;;  %v282_v8 = vld [vmem:[%s387_s1 + $0x30] sm:$0xff]  }
   0xe   :  { %v283_v9 = vld [vmem:[%s387_s1 + $0x38] sm:$0xff]   ;;  %v286_v10 = vld [vmem:[%s386_s0 + $0x8] sm:$0xff]   ;;  %v208_v12 = vld [vmem:[%s388_s2] ss:$0 sm:$0xff]  ;;  %s312_s1 = smov [#allocation2]  }
   0xf   :  { %240 = vmatpush3.bf16.msra.mxu0 %v279_v3  ;;  %268 = vmatpush3.bf16.msra.mxu1 %v279_v3  ;;  %v287_v11 = vld [vmem:[%s386_s0 + $0x18] sm:$0xff]   ;;  %s197_s11 = sshll.u32 %s312_s1, 4  ;;  %s198_s11 = int_to_ptr.vmem [resolvable:$true] %s197_s11 }
  0x10   :  { %241 = vmatprep.subr.bf16.mxu0 %v280_v6  ;;  %261 = vmatprep.subr.bf16.mxu1 %v280_v6  ;;  %s288_s0 = scalar_lea.vmem %s198_s11, 1024  ;;  %p293_p1 = scmp.lt.s32.totalorder %s198_s11, %s198_s11 }
  0x11   :  { %p289_p0 = scmp.ne.s32.totalorder %s198_s11, %s288_s0  ;;  %p294_p2 = scmp.lt.s32.totalorder %s288_s0, %s288_s0 }
  0x13   :  { %242 = vmatpush3.bf16.msra.mxu0 %v280_v6  ;;  %269 = vmatpush3.bf16.msra.mxu1 %v280_v6  ;;  %p295_p3 = por %p294_p2, %p293_p1 }
  0x14   :  { %243 = vmatprep.subr.bf16.mxu0 %v281_v7  ;;  %262 = vmatprep.subr.bf16.mxu1 %v281_v7 }
  0x15   :  { %p296_p4 = pnand %p295_p3, %p289_p0 }
  0x17   :  { %244 = vmatpush3.bf16.msra.mxu0 %v281_v7  ;;  %270 = vmatpush3.bf16.msra.mxu1 %v281_v7 }
  0x18   :  { %245 = vmatprep.subr.bf16.mxu0 %v282_v8  ;;  %263 = vmatprep.subr.bf16.mxu1 %v282_v8 }
  0x1b   :  { %246 = vmatpush3.bf16.msra.mxu0 %v282_v8  ;;  %271 = vmatpush3.bf16.msra.mxu1 %v282_v8 }
  0x1c   :  { %247 = vmatprep.subr.bf16.mxu0 %v283_v9  ;;  %264 = vmatprep.subr.bf16.mxu1 %v283_v9 }
  0x1f   :  { %248 = vmatpush3.bf16.msra.mxu0 %v283_v9  ;;  %272 = vmatpush3.bf16.msra.mxu1 %v283_v9 }
  0x22   :  { %250 = vmatmul.mubr.bf16.vlgmr.msra.gmra.mrb[0].mxu0 %v286_v10  ;;  %254 = vmatmul.mubr.bf16.vlgmr.msra.gmra.mrb[0].mxu1 %v287_v11 }
  0xf5   :  { %v251_v13 = vpop.f32.mrb[0].mxu0  ;;  %v255_v14 = vpop.f32.mrb[0].mxu1 }
  0xf6   :  { %v162_v15 = vadd.f32 %v251_v13, %v208_v12  ;;  %v178_v16 = vadd.f32 %v255_v14, %v208_v12  ;;  %v153_v17 = vpop.f32.mrb[1].mxu0  ;;  %v169_v18 = vpop.f32.mrb[1].mxu1 }
  0xf7   :  { %v154_v19 = vadd.f32 %v208_v12, %v153_v17  ;;  %v170_v20 = vadd.f32 %v208_v12, %v169_v18  ;;  %v252_v21 = vpop.f32.mrb[2].mxu0  ;;  %v256_v22 = vpop.f32.mrb[2].mxu1 }
  0xf8   :  { %186 = vst [vmem:[#allocation2 + $0x10] sm:$0xff] %v162_v15  ;;  %190 = vst [vmem:[#allocation2 + $0x30] sm:$0xff] %v178_v16  ;;  %v165_v23 = vadd.f32 %v252_v21, %v208_v12  ;;  %v181_v24 = vadd.f32 %v256_v22, %v208_v12  ;;  %v156_v25 = vpop.f32.mrb[3].mxu0  ;;  %v172_v26 = vpop.f32.mrb[3].mxu1 }
  0xf9   :  { %184 = vst [vmem:[#allocation2] sm:$0xff] %v154_v19  ;;  %188 = vst [vmem:[#allocation2 + $0x20] sm:$0xff] %v170_v20  ;;  %v157_v27 = vadd.f32 %v208_v12, %v156_v25  ;;  %v173_v28 = vadd.f32 %v208_v12, %v172_v26 }
  0xfa   :  { %187 = vst [vmem:[#allocation2 + $0x18] sm:$0xff] %v165_v23  ;;  %191 = vst [vmem:[#allocation2 + $0x38] sm:$0xff] %v181_v24 }
  0xfb   :  { %185 = vst [vmem:[#allocation2 + $0x8] sm:$0xff] %v157_v27  ;;  %189 = vst [vmem:[#allocation2 + $0x28] sm:$0xff] %v173_v28 }
  0xfc   :  { %299 = shalt.err (!%p296_p4)
}
  0xfd   :  { %s300_s13 = scalar_lea.hbm %s389_s3, 1024 }
  0xfe   :  { %p301_p5 = scmp.ne.s32.totalorder %s389_s3, %s300_s13  ;;  %p304_p6 = scmp.lt.u32.totalorder %s300_s13, %s389_s3 }
 0x100   :  { %p306_p7 = pnand %p304_p6, %p301_p5 }
 0x102   :  { %309 = shalt.err (!%p306_p7)
}
 0x103   :  { %s313_s18 = smov 128   ;;  %s314_s19 = smov 8  }
 0x104   :  { %203 = dma.vmem_to_hbm [thread:$0]  %s198_s11, 1024, %s389_s3, [#allocation3], %s313_s18, %s313_s18, %s314_s19  }
 0x105   :  { %310 = dma.done.wait [#allocation3], 1024  }
 0x106   :  { %311 = vsyncadd [#allocation3], 4294966272 }
 0x107   :  { %207 = vsyncpa [#allocation3], 1 }

// kernel: encoder_decoder_forward.6
= control target key start
LH: loop header
LB: loop body
LE: loop exit
PB: predicated region body
PF: predicated region fallthrough
CT: control target
= control target key end

     0   :  { %v2973_v1 = vmov 0.0   ;;  %v2974_v2 = vmov 0   ;;  %vm2975_vm0 = vmmov 0   ;;  %v63_v36 = vlaneseq  ;;  %s3736_s2 = inlined_call_operand.vmem [shape: bf16[128,384], index: 2, kind: input, shape index: {}]   ;;  %s3737_s1 = inlined_call_operand.vmem [shape: f32[8,128], index: 1, kind: input, shape index: {}]   ;;  %s3738_s3 = inlined_call_operand.vmem [shape: f32[1,384], index: 3, kind: input, shape index: {}]   ;;  %s3739_s0 = inlined_call_operand.vmem [shape: f32[8,8,384], index: 0, kind: input, shape index: {}]   ;;  %s3740_s4 = inlined_call_operand.vmem [shape: f32[8,128], index: 4, kind: output, shape index: {}]  }
   0x1   :  { %v3004_v0 = vld [vmem:[%s3736_s2 + $0x4] ss:$12 sps:$4 sm:$0xff]   ;;  %2618 = vmatprep.subr.bf16.mxu1 %v2973_v1  ;;  %238 = vmatprep.mubr.bf16.mxu0 %v2974_v2  ;;  %v3011_v3 = vld [vmem:[%s3736_s2] ss:$12 sps:$4 sm:$0xff]   ;;  %v3019_v4 = vld [vmem:[%s3736_s2 + $0x1c] ss:$12 sps:$4 sm:$0xff]  }
   0x2   :  { %2634 = vmatprep.mubr.msk.bf16.mxu1 %vm2975_vm0, %v2973_v1  ;;  %206 = vmatprep.subr.bf16.mxu0 %v3004_v0  ;;  %v3025_v5 = vld [vmem:[%s3736_s2 + $0x18] ss:$12 sps:$4 sm:$0xff]   ;;  %v3031_v6 = vld [vmem:[%s3736_s2 + $0x34] ss:$12 sps:$4 sm:$0xff]   ;;  %v3037_v7 = vld [vmem:[%s3736_s2 + $0x30] ss:$12 sps:$4 sm:$0xff]  }
   0x3   :  { %207 = vmatpush1.bf16.msra.mxu0 %v3011_v3  ;;  %v3043_v8 = vld [vmem:[%s3736_s2 + $0x4c] ss:$12 sps:$4 sm:$0xff]   ;;  %v2802_v9 = vld [vmem:[%s3736_s2 + $0x8] ss:$12 sps:$4 sm:$0xff]   ;;  %v3058_v11 = vld [vmem:[%s3736_s2 + $0x64] ss:$12 sps:$4 sm:$0xff]  }
   0x4   :  { %208 = vmatprep.subr.bf16.mxu0 %v3019_v4  ;;  %v3052_v10 = vld [vmem:[%s3736_s2 + $0x48] ss:$12 sps:$4 sm:$0xff]   ;;  %2619 = vmatpush3.bf16.msra.mxu1 %v2802_v9  ;;  %v2806_v12 = vld [vmem:[%s3736_s2 + $0x20] ss:$12 sps:$4 sm:$0xff]   ;;  %v2807_v15 = vld [vmem:[%s3736_s2 + $0x38] ss:$12 sps:$4 sm:$0xff]  }
   0x5   :  { %2620 = vmatprep.subr.bf16.mxu1 %v2973_v1  ;;  %v3067_v13 = vld [vmem:[%s3736_s2 + $0x60] ss:$12 sps:$4 sm:$0xff]   ;;  %v3073_v14 = vld [vmem:[%s3736_s2 + $0x7c] ss:$12 sps:$4 sm:$0xff]   ;;  %v3083_v16 = vld [vmem:[%s3736_s2 + $0x78] ss:$12 sps:$4 sm:$0xff]  }
   0x6   :  { %v3089_v17 = vld [vmem:[%s3736_s2 + $0x94] ss:$12 sps:$4 sm:$0xff]   ;;  %v2808_v18 = vld [vmem:[%s3736_s2 + $0x50] ss:$12 sps:$4 sm:$0xff]   ;;  %v3104_v20 = vld [vmem:[%s3736_s2 + $0xac] ss:$12 sps:$4 sm:$0xff]  }
   0x7   :  { %209 = vmatpush1.bf16.msra.mxu0 %v3025_v5  ;;  %v3098_v19 = vld [vmem:[%s3736_s2 + $0x90] ss:$12 sps:$4 sm:$0xff]   ;;  %v2809_v21 = vld [vmem:[%s3736_s2 + $0x68] ss:$12 sps:$4 sm:$0xff]   ;;  %v3119_v23 = vld [vmem:[%s3737_s1] sm:$0xff]  ;;  %v64_v37 = vshrl.u32 %v63_v36, 7 }
   0x8   :  { %210 = vmatprep.subr.bf16.mxu0 %v3031_v6  ;;  %2621 = vmatpush3.bf16.msra.mxu1 %v2806_v12  ;;  %v3114_v22 = vld [vmem:[%s3736_s2 + $0xa8] ss:$12 sps:$4 sm:$0xff]   ;;  %v2810_v24 = vld [vmem:[%s3736_s2 + $0x80] ss:$12 sps:$4 sm:$0xff]   ;;  %v28_v25 = vpack.c.bf16 %v3119_v23, %v3119_v23  ;;  %v2811_v26 = vld [vmem:[%s3736_s2 + $0x98] ss:$12 sps:$4 sm:$0xff]  }
   0x9   :  { %2622 = vmatprep.subr.bf16.mxu1 %v2973_v1  ;;  %v2812_v27 = vld [vmem:[%s3736_s2 + $0xb0] ss:$12 sps:$4 sm:$0xff]   ;;  %v2813_v28 = vld [vmem:[%s3736_s2 + $0x8] ss:$12 sps:$4 sm:$0xff]   ;;  %v2814_v29 = vld [vmem:[%s3736_s2 + $0x20] ss:$12 sps:$4 sm:$0xff]  }
   0xa   :  { %v2815_v30 = vld [vmem:[%s3736_s2 + $0x38] ss:$12 sps:$4 sm:$0xff]   ;;  %v2816_v31 = vld [vmem:[%s3736_s2 + $0x50] ss:$12 sps:$4 sm:$0xff]   ;;  %v2817_v32 = vld [vmem:[%s3736_s2 + $0x68] ss:$12 sps:$4 sm:$0xff]  }
   0xb   :  { %211 = vmatpush1.bf16.msra.mxu0 %v3037_v7  ;;  %v2818_v33 = vld [vmem:[%s3736_s2 + $0x80] ss:$12 sps:$4 sm:$0xff]   ;;  %v2819_v34 = vld [vmem:[%s3736_s2 + $0x98] ss:$12 sps:$4 sm:$0xff]   ;;  %v2820_v35 = vld [vmem:[%s3736_s2 + $0xb0] ss:$12 sps:$4 sm:$0xff]  }
   0xc   :  { %212 = vmatprep.subr.bf16.mxu0 %v3043_v8  ;;  %2623 = vmatpush3.bf16.msra.mxu1 %v2807_v15  ;;  %v3192_v38 = vsub.s32 0, %v64_v37  ;;  %v61_v39 = vld [vmem:[%s3738_s3] sm:$0x7]  ;;  %v3197_v40 = vsub.s32 1, %v64_v37  ;;  %v25_v50 = vld [vmem:[%s3739_s0 + $0x8] sm:$0xff]  ;;  %v3207_v61 = vsub.s32 2, %v64_v37 }
   0xd   :  { %2624 = vmatprep.subr.bf16.mxu1 %v2973_v1  ;;  %v24_v43 = vld [vmem:[%s3739_s0] sm:$0xff]  ;;  %v2828_v37 = vld [vmem:[%s3736_s2 + $0xb0] ss:$12 sps:$4 sm:$0xff]  }
   0xe   :  { %v66_v41 = vrot.slane %v61_v39, %v3192_v38  ;;  %v70_v42 = vrot.slane %v61_v39, %v3197_v40  ;;  %v74_v62 = vrot.slane %v61_v39, %v3207_v61  ;;  %v2827_v36 = vld [vmem:[%s3736_s2 + $0x98] ss:$12 sps:$4 sm:$0xff]   ;;  %v347_v39 = vld [vmem:[%s3738_s3] sm:$0x7] }
   0xf   :  { %213 = vmatpush1.bf16.msra.mxu0 %v3052_v10 }
  0x10   :  { %214 = vmatprep.subr.bf16.mxu0 %v3058_v11  ;;  %2625 = vmatpush3.bf16.msra.mxu1 %v2808_v18  ;;  %v26_v18 = vld [vmem:[%s3739_s0 + $0x10] sm:$0xff] }
  0x11   :  { %2626 = vmatprep.subr.bf16.mxu1 %v2973_v1 }
  0x13   :  { %215 = vmatpush1.bf16.msra.mxu0 %v3067_v13 }
  0x14   :  { %216 = vmatprep.subr.bf16.mxu0 %v3073_v14  ;;  %2627 = vmatpush3.bf16.msra.mxu1 %v2809_v21 }
  0x15   :  { %2628 = vmatprep.subr.bf16.mxu1 %v2973_v1 }
  0x17   :  { %217 = vmatpush1.bf16.msra.mxu0 %v3083_v16 }
  0x18   :  { %218 = vmatprep.subr.bf16.mxu0 %v3089_v17  ;;  %2629 = vmatpush3.bf16.msra.mxu1 %v2810_v24 }
  0x19   :  { %2630 = vmatprep.subr.bf16.mxu1 %v2973_v1 }
  0x1b   :  { %219 = vmatpush1.bf16.msra.mxu0 %v3098_v19 }
  0x1c   :  { %220 = vmatprep.subr.bf16.mxu0 %v3104_v20  ;;  %2631 = vmatpush3.bf16.msra.mxu1 %v2811_v26 }
  0x1d   :  { %2632 = vmatprep.subr.bf16.mxu1 %v2973_v1 }
  0x1f   :  { %221 = vmatpush1.bf16.msra.mxu0 %v3114_v22 }
  0x20   :  { %492 = vmatprep.subr.bf16.mxu0 %v3004_v0  ;;  %2633 = vmatpush3.bf16.msra.mxu1 %v2812_v27 }
  0x21   :  { %2638 = vmatprep.subr.bf16.mxu1 %v2973_v1 }
  0x22   :  { %239 = vmatmul.mubr.bf16.vlgmr.msra.gmra.mrb[0].mxu0 %v28_v25 }
  0x23   :  { %493 = vmatpush1.bf16.msra.mxu0 %v3011_v3  ;;  %524 = vmatprep.mubr.bf16.mxu0 %v2974_v2 }
  0x24   :  { %494 = vmatprep.subr.bf16.mxu0 %v3019_v4  ;;  %2635 = vmatmul.mubr.bf16.vlgmr.msra.gmra.mrb[0].mxu1 %v28_v25 }
  0x25   :  { %2654 = vmatprep.mubr.msk.bf16.mxu1 %vm2975_vm0, %v2973_v1  ;;  %2639 = vmatpush3.bf16.msra.mxu1 %v2813_v28 }
  0x26   :  { %2640 = vmatprep.subr.bf16.mxu1 %v2973_v1 }
  0x27   :  { %495 = vmatpush1.bf16.msra.mxu0 %v3025_v5 }
  0x28   :  { %496 = vmatprep.subr.bf16.mxu0 %v3031_v6 }
  0x29   :  { %2641 = vmatpush3.bf16.msra.mxu1 %v2814_v29 }
  0x2a   :  { %2642 = vmatprep.subr.bf16.mxu1 %v2973_v1 }
  0x2b   :  { %497 = vmatpush1.bf16.msra.mxu0 %v3037_v7 }
  0x2c   :  { %498 = vmatprep.subr.bf16.mxu0 %v3043_v8 }
  0x2d   :  { %2643 = vmatpush3.bf16.msra.mxu1 %v2815_v30 }
  0x2e   :  { %2644 = vmatprep.subr.bf16.mxu1 %v2973_v1 }
  0x2f   :  { %499 = vmatpush1.bf16.msra.mxu0 %v3052_v10 }
  0x30   :  { %500 = vmatprep.subr.bf16.mxu0 %v3058_v11 }
  0x31   :  { %2645 = vmatpush3.bf16.msra.mxu1 %v2816_v31 }
  0x32   :  { %2646 = vmatprep.subr.bf16.mxu1 %v2973_v1 }
  0x33   :  { %501 = vmatpush1.bf16.msra.mxu0 %v3067_v13 }
  0x34   :  { %502 = vmatprep.subr.bf16.mxu0 %v3073_v14 }
  0x35   :  { %2647 = vmatpush3.bf16.msra.mxu1 %v2817_v32  ;;  %v2822_v32 = vld [vmem:[%s3736_s2 + $0x20] ss:$12 sps:$4 sm:$0xff]  }
  0x36   :  { %2648 = vmatprep.subr.bf16.mxu1 %v2973_v1 }
  0x37   :  { %503 = vmatpush1.bf16.msra.mxu0 %v3083_v16 }
  0x38   :  { %504 = vmatprep.subr.bf16.mxu0 %v3089_v17 }
  0x39   :  { %2649 = vmatpush3.bf16.msra.mxu1 %v2818_v33  ;;  %v2823_v33 = vld [vmem:[%s3736_s2 + $0x38] ss:$12 sps:$4 sm:$0xff]  }
  0x3a   :  { %2650 = vmatprep.subr.bf16.mxu1 %v2973_v1 }
  0x3b   :  { %505 = vmatpush1.bf16.msra.mxu0 %v3098_v19 }
  0x3c   :  { %506 = vmatprep.subr.bf16.mxu0 %v3104_v20 }
  0x3d   :  { %2651 = vmatpush3.bf16.msra.mxu1 %v2819_v34  ;;  %v2825_v34 = vld [vmem:[%s3736_s2 + $0x68] ss:$12 sps:$4 sm:$0xff]  }
  0x3e   :  { %2652 = vmatprep.subr.bf16.mxu1 %v2973_v1 }
  0x3f   :  { %507 = vmatpush1.bf16.msra.mxu0 %v3114_v22 }
  0x40   :  { %778 = vmatprep.subr.bf16.mxu0 %v3004_v0 }
  0x41   :  { %2653 = vmatpush3.bf16.msra.mxu1 %v2820_v35  ;;  %v2826_v35 = vld [vmem:[%s3736_s2 + $0x80] ss:$12 sps:$4 sm:$0xff]  }
  0x42   :  { %2658 = vmatprep.subr.bf16.mxu1 %v2973_v1 }
  0xf5   :  { %v240_v44 = vpop.f32.mrb[0].mxu0 }
  0xf6   :  { %v241_v45 = vadd.f32 %v240_v44, %v66_v41  ;;  %v242_v46 = vpop.f32.mrb[1].mxu0  ;;  %v352_v41 = vrot.slane %v347_v39, %v3192_v38 }
  0xf7   :  { %v243_v47 = vadd.f32 %v242_v46, %v70_v42  ;;  %v244_v48 = vpop.f32.mrb[2].mxu0  ;;  %v281_v54 = vpop.f32.mrb[0].mxu1  ;;  %v356_v42 = vrot.slane %v347_v39, %v3197_v40 }
  0xf8   :  { %v287_v49 = vadd.f32 %v241_v45, %v24_v43  ;;  %v245_v51 = vpop.f32.mrb[3].mxu0  ;;  %v2636_v56 = vpop.f32.mrb[1].mxu1  ;;  %v282_v12 = vadd.f32 %v281_v54, %v74_v62  ;;  %v2343_v43 = vld [vmem:[%s3739_s0 + $0x18] sm:$0xff] }
  0xf9   :  { %v294_v53 = vadd.f32 %v243_v47, %v25_v50  ;;  %v284_v57 = vpop.f32.mrb[2].mxu1 }
  0xfa   :  { %v2341_v52 = vmul.f32 -1.442695, %v287_v49  ;;  %v2637_v58 = vpop.f32.mrb[3].mxu1 }
  0xfb   :  { %v2342_v55 = vmul.f32 -1.442695, %v294_v53  ;;  %v2344_v53 = vld [vmem:[%s3739_s0 + $0x20] sm:$0xff] }
  0xfc   :  { %2893 = vpow2.f32 %v2341_v52 }
  0xfd   :  { %2895 = vpow2.f32 %v2342_v55 }
 0x106   :  { %v2894_v59 = vpop.eup %2893 }
 0x107   :  { %v291_v60 = vadd.f32 1.0, %v2894_v59  ;;  %v2896_v63 = vpop.eup %2895 }
 0x108   :  { %v298_v9 = vadd.f32 1.0, %v2896_v63  ;;  %v360_v63 = vrot.slane %v347_v39, %v3207_v61 }
 0x109   :  { %2897 = vrcp.f32 %v291_v60 }
 0x10a   :  { %2899 = vrcp.f32 %v298_v9 }
 0x113   :  { %v2898_v15 = vpop.eup %2897 }
 0x114   :  { %v301_v21 = vmul.f32 %v2898_v15, %v282_v12  ;;  %v2900_v25 = vpop.eup %2899 }
 0x115   :  { %v304_v26 = vsub.f32 1.0, %v2900_v25  ;;  %v306_v29 = vmul.f32 %v2900_v25, %v3119_v23  ;;  %v2821_v23 = vld [vmem:[%s3736_s2 + $0x8] ss:$12 sps:$4 sm:$0xff]  }
 0x116   :  { %v302_v24 = vadd.f32 %v301_v21, %v26_v18  ;;  %v2345_v18 = vld [vmem:[%s3739_s0 + $0x28] sm:$0xff] }
 0x118   :  { %2901 = vtanh.f32 %v302_v24 }
 0x122   :  { %v2902_v27 = vpop.eup %2901 }
 0x123   :  { %v305_v28 = vmul.f32 %v2902_v27, %v304_v26 }
 0x125   :  { %v3214_v30 = vadd.f32 %v306_v29, %v305_v28 }
 0x127   :  { %v314_v31 = vpack.c.bf16 %v3214_v30, %v3214_v30 }
 0x129   :  { %525 = vmatmul.mubr.bf16.vlgmr.msra.gmra.mrb[4].mxu0 %v314_v31  ;;  %2655 = vmatmul.mubr.bf16.vlgmr.msra.gmra.mrb[4].mxu1 %v314_v31 }
 0x12a   :  { %779 = vmatpush1.bf16.msra.mxu0 %v3011_v3  ;;  %810 = vmatprep.mubr.bf16.mxu0 %v2974_v2 }
 0x12b   :  { %780 = vmatprep.subr.bf16.mxu0 %v3019_v4  ;;  %2674 = vmatprep.mubr.msk.bf16.mxu1 %vm2975_vm0, %v2973_v1 }
 0x12c   :  { %2659 = vmatpush3.bf16.msra.mxu1 %v2821_v23 }
 0x12d   :  { %2660 = vmatprep.subr.bf16.mxu1 %v2973_v1 }
 0x12e   :  { %781 = vmatpush1.bf16.msra.mxu0 %v3025_v5 }
 0x12f   :  { %782 = vmatprep.subr.bf16.mxu0 %v3031_v6 }
 0x130   :  { %2661 = vmatpush3.bf16.msra.mxu1 %v2822_v32 }
 0x131   :  { %2662 = vmatprep.subr.bf16.mxu1 %v2973_v1 }
 0x132   :  { %783 = vmatpush1.bf16.msra.mxu0 %v3037_v7 }
 0x133   :  { %784 = vmatprep.subr.bf16.mxu0 %v3043_v8 }
 0x134   :  { %2663 = vmatpush3.bf16.msra.mxu1 %v2823_v33 }
 0x135   :  { %2664 = vmatprep.subr.bf16.mxu1 %v2973_v1 }
 0x136   :  { %785 = vmatpush1.bf16.msra.mxu0 %v3052_v10 }
 0x137   :  { %786 = vmatprep.subr.bf16.mxu0 %v3058_v11 }
 0x13a   :  { %787 = vmatpush1.bf16.msra.mxu0 %v3067_v13 }
 0x13b   :  { %788 = vmatprep.subr.bf16.mxu0 %v3073_v14 }
 0x13e   :  { %789 = vmatpush1.bf16.msra.mxu0 %v3083_v16 }
 0x13f   :  { %790 = vmatprep.subr.bf16.mxu0 %v3089_v17 }
 0x142   :  { %791 = vmatpush1.bf16.msra.mxu0 %v3098_v19 }
 0x143   :  { %792 = vmatprep.subr.bf16.mxu0 %v3104_v20 }
 0x146   :  { %793 = vmatpush1.bf16.msra.mxu0 %v3114_v22 }
 0x147   :  { %1064 = vmatprep.subr.bf16.mxu0 %v3004_v0  ;;  %v2824_v0 = vld [vmem:[%s3736_s2 + $0x50] ss:$12 sps:$4 sm:$0xff]  }
 0x148   :  { %2665 = vmatpush3.bf16.msra.mxu1 %v2824_v0 }
 0x149   :  { %2666 = vmatprep.subr.bf16.mxu1 %v2973_v1 }
 0x14c   :  { %2667 = vmatpush3.bf16.msra.mxu1 %v2825_v34 }
 0x14d   :  { %2668 = vmatprep.subr.bf16.mxu1 %v2973_v1 }
 0x150   :  { %2669 = vmatpush3.bf16.msra.mxu1 %v2826_v35 }
 0x151   :  { %2670 = vmatprep.subr.bf16.mxu1 %v2973_v1 }
 0x154   :  { %2671 = vmatpush3.bf16.msra.mxu1 %v2827_v36  ;;  %v2373_v36 = vld [vmem:[%s3739_s0 + $0x38] sm:$0xff] }
 0x155   :  { %2672 = vmatprep.subr.bf16.mxu1 %v2973_v1 }
 0x158   :  { %2673 = vmatpush3.bf16.msra.mxu1 %v2828_v37 }
 0x159   :  { %2678 = vmatprep.subr.bf16.mxu1 %v2973_v1 }
 0x1fc   :  { %v526_v44 = vpop.f32.mrb[4].mxu0  ;;  %v567_v45 = vpop.f32.mrb[4].mxu1 }
 0x1fd   :  { %v527_v46 = vadd.f32 %v526_v44, %v352_v41  ;;  %v528_v47 = vpop.f32.mrb[5].mxu0  ;;  %v2656_v48 = vpop.f32.mrb[5].mxu1  ;;  %v568_v12 = vadd.f32 %v567_v45, %v360_v63  ;;  %v3370_v63 = vld [vmem:[%s3736_s2] ss:$12 sps:$4 sm:$0xff]  }
 0x1fe   :  { %v529_v49 = vadd.f32 %v528_v47, %v356_v42  ;;  %v530_v50 = vpop.f32.mrb[6].mxu0  ;;  %v570_v51 = vpop.f32.mrb[6].mxu1 }
 0x1ff   :  { %v573_v52 = vadd.f32 %v2343_v43, %v527_v46  ;;  %v531_v54 = vpop.f32.mrb[7].mxu0  ;;  %v2657_v55 = vpop.f32.mrb[7].mxu1  ;;  %v2374_v51 = vld [vmem:[%s3739_s0 + $0x40] sm:$0xff] }
 0x200   :  { %v580_v57 = vadd.f32 %v2344_v53, %v529_v49 }
 0x201   :  { %v2370_v56 = vmul.f32 -1.442695, %v573_v52 }
 0x202   :  { %v2371_v58 = vmul.f32 -1.442695, %v580_v57 }
 0x203   :  { %2903 = vpow2.f32 %v2370_v56 }
 0x204   :  { %2905 = vpow2.f32 %v2371_v58 }
 0x20d   :  { %v2904_v59 = vpop.eup %2903 }
 0x20e   :  { %v577_v60 = vadd.f32 1.0, %v2904_v59  ;;  %v2906_v62 = vpop.eup %2905 }
 0x20f   :  { %v584_v9 = vadd.f32 1.0, %v2906_v62  ;;  %v3365_v62 = vld [vmem:[%s3736_s2 + $0x4] ss:$12 sps:$4 sm:$0xff]  }
 0x210   :  { %2907 = vrcp.f32 %v577_v60 }
 0x211   :  { %2909 = vrcp.f32 %v584_v9  ;;  %v2840_v9 = vld [vmem:[%s3736_s2 + $0x8] ss:$12 sps:$4 sm:$0xff]  }
 0x21a   :  { %v2908_v15 = vpop.eup %2907 }
 0x21b   :  { %v587_v21 = vmul.f32 %v2908_v15, %v568_v12  ;;  %v2910_v25 = vpop.eup %2909  ;;  %v3380_v12 = vld [vmem:[%s3736_s2 + $0x1c] ss:$12 sps:$4 sm:$0xff]   ;;  %v3386_v15 = vld [vmem:[%s3736_s2 + $0x18] ss:$12 sps:$4 sm:$0xff]  }
 0x21c   :  { %v590_v26 = vsub.f32 1.0, %v2910_v25  ;;  %v592_v29 = vmul.f32 %v2910_v25, %v3214_v30  ;;  %v2848_v25 = vld [vmem:[%s3736_s2 + $0x38] ss:$12 sps:$4 sm:$0xff]  }
 0x21d   :  { %v588_v24 = vadd.f32 %v2345_v18, %v587_v21  ;;  %v2844_v18 = vld [vmem:[%s3736_s2 + $0x20] ss:$12 sps:$4 sm:$0xff]  }
 0x21e   :  { %v3396_v21 = vld [vmem:[%s3736_s2 + $0x34] ss:$12 sps:$4 sm:$0xff]  }
 0x21f   :  { %2911 = vtanh.f32 %v588_v24  ;;  %v3402_v24 = vld [vmem:[%s3736_s2 + $0x30] ss:$12 sps:$4 sm:$0xff]  }
 0x229   :  { %v2912_v27 = vpop.eup %2911 }
 0x22a   :  { %v591_v28 = vmul.f32 %v2912_v27, %v590_v26  ;;  %v3412_v26 = vld [vmem:[%s3736_s2 + $0x4c] ss:$12 sps:$4 sm:$0xff]   ;;  %v3418_v27 = vld [vmem:[%s3736_s2 + $0x48] ss:$12 sps:$4 sm:$0xff]  }
 0x22c   :  { %v3285_v31 = vadd.f32 %v592_v29, %v591_v28  ;;  %v2852_v28 = vld [vmem:[%s3736_s2 + $0x50] ss:$12 sps:$4 sm:$0xff]  }
 0x22d   :  { %v3428_v29 = vld [vmem:[%s3736_s2 + $0x64] ss:$12 sps:$4 sm:$0xff]  }
 0x22e   :  { %v600_v23 = vpack.c.bf16 %v3285_v31, %v3285_v31 }
 0x230   :  { %811 = vmatmul.mubr.bf16.vlgmr.msra.gmra.mrb[8].mxu0 %v600_v23  ;;  %2675 = vmatmul.mubr.bf16.vlgmr.msra.gmra.mrb[8].mxu1 %v600_v23  ;;  %v2856_v23 = vld [vmem:[%s3736_s2 + $0x68] ss:$12 sps:$4 sm:$0xff]  }
 0x231   :  { %1065 = vmatpush1.bf16.msra.mxu0 %v3011_v3  ;;  %1096 = vmatprep.mubr.bf16.mxu0 %v2974_v2  ;;  %v2829_v3 = vld [vmem:[%s3736_s2 + $0x8] ss:$12 sps:$4 sm:$0xff]  }
 0x232   :  { %1066 = vmatprep.subr.bf16.mxu0 %v3019_v4  ;;  %2694 = vmatprep.mubr.msk.bf16.mxu1 %vm2975_vm0, %v2973_v1  ;;  %v2830_v4 = vld [vmem:[%s3736_s2 + $0x20] ss:$12 sps:$4 sm:$0xff]  }
 0x233   :  { %2679 = vmatpush3.bf16.msra.mxu1 %v2829_v3  ;;  %v3443_v3 = vld [vmem:[%s3736_s2 + $0x7c] ss:$12 sps:$4 sm:$0xff]  }
 0x234   :  { %2680 = vmatprep.subr.bf16.mxu1 %v2973_v1 }
 0x235   :  { %1067 = vmatpush1.bf16.msra.mxu0 %v3025_v5  ;;  %v2831_v5 = vld [vmem:[%s3736_s2 + $0x38] ss:$12 sps:$4 sm:$0xff]  }
 0x236   :  { %1068 = vmatprep.subr.bf16.mxu0 %v3031_v6  ;;  %v2832_v6 = vld [vmem:[%s3736_s2 + $0x50] ss:$12 sps:$4 sm:$0xff]  }
 0x237   :  { %2681 = vmatpush3.bf16.msra.mxu1 %v2830_v4  ;;  %v3449_v4 = vld [vmem:[%s3736_s2 + $0x78] ss:$12 sps:$4 sm:$0xff]  }
 0x238   :  { %2682 = vmatprep.subr.bf16.mxu1 %v2973_v1 }
 0x239   :  { %1069 = vmatpush1.bf16.msra.mxu0 %v3037_v7  ;;  %v2833_v7 = vld [vmem:[%s3736_s2 + $0x68] ss:$12 sps:$4 sm:$0xff]  }
 0x23a   :  { %1070 = vmatprep.subr.bf16.mxu0 %v3043_v8  ;;  %v2834_v8 = vld [vmem:[%s3736_s2 + $0x80] ss:$12 sps:$4 sm:$0xff]  }
 0x23b   :  { %2683 = vmatpush3.bf16.msra.mxu1 %v2831_v5  ;;  %v2860_v5 = vld [vmem:[%s3736_s2 + $0x80] ss:$12 sps:$4 sm:$0xff]  }
 0x23c   :  { %2684 = vmatprep.subr.bf16.mxu1 %v2973_v1 }
 0x23d   :  { %1071 = vmatpush1.bf16.msra.mxu0 %v3052_v10  ;;  %v2835_v10 = vld [vmem:[%s3736_s2 + $0x98] ss:$12 sps:$4 sm:$0xff]  }
 0x23e   :  { %1072 = vmatprep.subr.bf16.mxu0 %v3058_v11  ;;  %v2836_v11 = vld [vmem:[%s3736_s2 + $0xb0] ss:$12 sps:$4 sm:$0xff]  }
 0x23f   :  { %2685 = vmatpush3.bf16.msra.mxu1 %v2832_v6  ;;  %v3459_v6 = vld [vmem:[%s3736_s2 + $0x94] ss:$12 sps:$4 sm:$0xff]  }
 0x240   :  { %2686 = vmatprep.subr.bf16.mxu1 %v2973_v1 }
 0x241   :  { %1073 = vmatpush1.bf16.msra.mxu0 %v3067_v13  ;;  %v633_v13 = vld [vmem:[%s3738_s3] sm:$0x7] }
 0x242   :  { %1074 = vmatprep.subr.bf16.mxu0 %v3073_v14  ;;  %v638_v14 = vrot.slane %v633_v13, %v3192_v38  ;;  %v646_v47 = vrot.slane %v633_v13, %v3207_v61 }
 0x243   :  { %2687 = vmatpush3.bf16.msra.mxu1 %v2833_v7  ;;  %v3465_v7 = vld [vmem:[%s3736_s2 + $0x90] ss:$12 sps:$4 sm:$0xff]  }
 0x244   :  { %2688 = vmatprep.subr.bf16.mxu1 %v2973_v1 }
 0x245   :  { %1075 = vmatpush1.bf16.msra.mxu0 %v3083_v16  ;;  %v642_v16 = vrot.slane %v633_v13, %v3197_v40  ;;  %v2868_v13 = vld [vmem:[%s3736_s2 + $0xb0] ss:$12 sps:$4 sm:$0xff]  }
 0x246   :  { %1076 = vmatprep.subr.bf16.mxu0 %v3089_v17  ;;  %v2372_v17 = vld [vmem:[%s3739_s0 + $0x30] sm:$0xff] }
 0x247   :  { %2689 = vmatpush3.bf16.msra.mxu1 %v2834_v8  ;;  %v2864_v8 = vld [vmem:[%s3736_s2 + $0x98] ss:$12 sps:$4 sm:$0xff]  }
 0x248   :  { %2690 = vmatprep.subr.bf16.mxu1 %v2973_v1 }
 0x249   :  { %1077 = vmatpush1.bf16.msra.mxu0 %v3098_v19 }
 0x24a   :  { %1078 = vmatprep.subr.bf16.mxu0 %v3104_v20 }
 0x24b   :  { %2691 = vmatpush3.bf16.msra.mxu1 %v2835_v10  ;;  %v3475_v10 = vld [vmem:[%s3736_s2 + $0xac] ss:$12 sps:$4 sm:$0xff]  }
 0x24c   :  { %2692 = vmatprep.subr.bf16.mxu1 %v2973_v1 }
 0x24d   :  { %1079 = vmatpush1.bf16.msra.mxu0 %v3114_v22 }
 0x24e   :  { %1350 = vmatprep.subr.bf16.mxu0 %v3365_v62 }
 0x24f   :  { %2693 = vmatpush3.bf16.msra.mxu1 %v2836_v11  ;;  %v3481_v11 = vld [vmem:[%s3736_s2 + $0xa8] ss:$12 sps:$4 sm:$0xff]  }
 0x250   :  { %2698 = vmatprep.subr.bf16.mxu1 %v2973_v1 }
 0x303   :  { %v812_v19 = vpop.f32.mrb[8].mxu0  ;;  %v853_v20 = vpop.f32.mrb[8].mxu1 }
 0x304   :  { %v813_v22 = vadd.f32 %v812_v19, %v638_v14  ;;  %v814_v30 = vpop.f32.mrb[9].mxu0  ;;  %v2676_v32 = vpop.f32.mrb[9].mxu1  ;;  %v854_v49 = vadd.f32 %v853_v20, %v646_v47  ;;  %v919_v14 = vld [vmem:[%s3738_s3] sm:$0x7]  ;;  %v2401_v19 = vld [vmem:[%s3739_s0 + $0x48] sm:$0xff] }
 0x305   :  { %v815_v33 = vadd.f32 %v814_v30, %v642_v16  ;;  %v816_v0 = vpop.f32.mrb[10].mxu0  ;;  %v856_v34 = vpop.f32.mrb[10].mxu1  ;;  %v924_v16 = vrot.slane %v919_v14, %v3192_v38 }
 0x306   :  { %v859_v35 = vadd.f32 %v2372_v17, %v813_v22  ;;  %v817_v37 = vpop.f32.mrb[11].mxu0  ;;  %v2677_v39 = vpop.f32.mrb[11].mxu1  ;;  %v928_v17 = vrot.slane %v919_v14, %v3197_v40 }
 0x307   :  { %v866_v42 = vadd.f32 %v2373_v36, %v815_v33  ;;  %v2402_v37 = vld [vmem:[%s3739_s0 + $0x50] sm:$0xff] }
 0x308   :  { %v2399_v41 = vmul.f32 -1.442695, %v859_v35 }
 0x309   :  { %v2400_v43 = vmul.f32 -1.442695, %v866_v42 }
 0x30a   :  { %2913 = vpow2.f32 %v2399_v41 }
 0x30b   :  { %2915 = vpow2.f32 %v2400_v43 }
 0x314   :  { %v2914_v44 = vpop.eup %2913 }
 0x315   :  { %v863_v45 = vadd.f32 1.0, %v2914_v44  ;;  %v2916_v46 = vpop.eup %2915 }
 0x316   :  { %v870_v48 = vadd.f32 1.0, %v2916_v46 }
 0x317   :  { %2917 = vrcp.f32 %v863_v45 }
 0x318   :  { %2919 = vrcp.f32 %v870_v48  ;;  %v932_v48 = vrot.slane %v919_v14, %v3207_v61  ;;  %v2876_v14 = vld [vmem:[%s3736_s2 + $0xb0] ss:$12 sps:$4 sm:$0xff]  }
 0x321   :  { %v2918_v50 = vpop.eup %2917 }
 0x322   :  { %v873_v52 = vmul.f32 %v2918_v50, %v854_v49  ;;  %v2920_v54 = vpop.eup %2919 }
 0x323   :  { %v876_v55 = vsub.f32 1.0, %v2920_v54  ;;  %v878_v58 = vmul.f32 %v2920_v54, %v3285_v31  ;;  %v3434_v31 = vld [vmem:[%s3736_s2 + $0x60] ss:$12 sps:$4 sm:$0xff]  }
 0x324   :  { %v874_v53 = vadd.f32 %v2374_v51, %v873_v52  ;;  %v2403_v52 = vld [vmem:[%s3739_s0 + $0x58] sm:$0xff] }
 0x326   :  { %2921 = vtanh.f32 %v874_v53 }
 0x330   :  { %v2922_v56 = vpop.eup %2921 }
 0x331   :  { %v877_v57 = vmul.f32 %v2922_v56, %v876_v55 }
 0x333   :  { %v3355_v59 = vadd.f32 %v878_v58, %v877_v57 }
 0x335   :  { %v886_v60 = vpack.c.bf16 %v3355_v59, %v3355_v59 }
 0x337   :  { %1097 = vmatmul.mubr.bf16.vlgmr.msra.gmra.mrb[12].mxu0 %v886_v60  ;;  %2695 = vmatmul.mubr.bf16.vlgmr.msra.gmra.mrb[12].mxu1 %v886_v60 }
 0x338   :  { %1382 = vmatprep.mubr.bf16.mxu0 %v2974_v2  ;;  %2714 = vmatprep.mubr.msk.bf16.mxu1 %vm2975_vm0, %v2973_v1 }
 0x339   :  { %1351 = vmatpush1.bf16.msra.mxu0 %v3370_v63  ;;  %2699 = vmatpush3.bf16.msra.mxu1 %v2840_v9 }
 0x33a   :  { %2700 = vmatprep.subr.bf16.mxu1 %v2973_v1  ;;  %1352 = vmatprep.subr.bf16.mxu0 %v3380_v12 }
 0x33d   :  { %1353 = vmatpush1.bf16.msra.mxu0 %v3386_v15  ;;  %2701 = vmatpush3.bf16.msra.mxu1 %v2844_v18 }
 0x33e   :  { %2702 = vmatprep.subr.bf16.mxu1 %v2973_v1  ;;  %1354 = vmatprep.subr.bf16.mxu0 %v3396_v21 }
 0x341   :  { %1355 = vmatpush1.bf16.msra.mxu0 %v3402_v24  ;;  %2703 = vmatpush3.bf16.msra.mxu1 %v2848_v25  ;;  %v2870_v25 = vld [vmem:[%s3736_s2 + $0x20] ss:$12 sps:$4 sm:$0xff]  }
 0x342   :  { %2704 = vmatprep.subr.bf16.mxu1 %v2973_v1  ;;  %1356 = vmatprep.subr.bf16.mxu0 %v3412_v26 }
 0x345   :  { %1357 = vmatpush1.bf16.msra.mxu0 %v3418_v27  ;;  %2705 = vmatpush3.bf16.msra.mxu1 %v2852_v28  ;;  %v2871_v28 = vld [vmem:[%s3736_s2 + $0x38] ss:$12 sps:$4 sm:$0xff]  }
 0x346   :  { %2706 = vmatprep.subr.bf16.mxu1 %v2973_v1  ;;  %1358 = vmatprep.subr.bf16.mxu0 %v3428_v29 }
 0x349   :  { %1359 = vmatpush1.bf16.msra.mxu0 %v3434_v31  ;;  %2707 = vmatpush3.bf16.msra.mxu1 %v2856_v23  ;;  %v2872_v23 = vld [vmem:[%s3736_s2 + $0x50] ss:$12 sps:$4 sm:$0xff]  }
 0x34a   :  { %1360 = vmatprep.subr.bf16.mxu0 %v3443_v3  ;;  %2708 = vmatprep.subr.bf16.mxu1 %v2973_v1 }
 0x34d   :  { %1361 = vmatpush1.bf16.msra.mxu0 %v3449_v4  ;;  %2709 = vmatpush3.bf16.msra.mxu1 %v2860_v5  ;;  %v2873_v5 = vld [vmem:[%s3736_s2 + $0x68] ss:$12 sps:$4 sm:$0xff]  }
 0x34e   :  { %1362 = vmatprep.subr.bf16.mxu0 %v3459_v6  ;;  %2710 = vmatprep.subr.bf16.mxu1 %v2973_v1 }
 0x351   :  { %1363 = vmatpush1.bf16.msra.mxu0 %v3465_v7  ;;  %2711 = vmatpush3.bf16.msra.mxu1 %v2864_v8  ;;  %v2874_v8 = vld [vmem:[%s3736_s2 + $0x80] ss:$12 sps:$4 sm:$0xff]  }
 0x352   :  { %1364 = vmatprep.subr.bf16.mxu0 %v3475_v10  ;;  %2712 = vmatprep.subr.bf16.mxu1 %v2973_v1 }
 0x355   :  { %1365 = vmatpush1.bf16.msra.mxu0 %v3481_v11  ;;  %2713 = vmatpush3.bf16.msra.mxu1 %v2868_v13  ;;  %v2875_v13 = vld [vmem:[%s3736_s2 + $0x98] ss:$12 sps:$4 sm:$0xff]  }
 0x356   :  { %1636 = vmatprep.subr.bf16.mxu0 %v3365_v62  ;;  %2718 = vmatprep.subr.bf16.mxu1 %v2973_v1 }
 0x40a   :  { %v1098_v20 = vpop.f32.mrb[12].mxu0  ;;  %v1139_v22 = vpop.f32.mrb[12].mxu1 }
 0x40b   :  { %v1099_v30 = vadd.f32 %v1098_v20, %v924_v16  ;;  %v1100_v32 = vpop.f32.mrb[13].mxu0  ;;  %v2696_v33 = vpop.f32.mrb[13].mxu1  ;;  %v1140_v50 = vadd.f32 %v1139_v22, %v932_v48  ;;  %v1205_v16 = vld [vmem:[%s3738_s3] sm:$0x7] }
 0x40c   :  { %v1101_v0 = vadd.f32 %v1100_v32, %v928_v17  ;;  %v1102_v34 = vpop.f32.mrb[14].mxu0  ;;  %v1142_v35 = vpop.f32.mrb[14].mxu1  ;;  %v1210_v17 = vrot.slane %v1205_v16, %v3192_v38  ;;  %v2430_v20 = vld [vmem:[%s3739_s0 + $0x60] sm:$0xff] }
 0x40d   :  { %v1145_v36 = vadd.f32 %v2401_v19, %v1099_v30  ;;  %v1103_v39 = vpop.f32.mrb[15].mxu0  ;;  %v2697_v41 = vpop.f32.mrb[15].mxu1  ;;  %v1214_v19 = vrot.slane %v1205_v16, %v3197_v40 }
 0x40e   :  { %v1152_v43 = vadd.f32 %v2402_v37, %v1101_v0  ;;  %v2431_v39 = vld [vmem:[%s3739_s0 + $0x68] sm:$0xff] }
 0x40f   :  { %v2428_v42 = vmul.f32 -1.442695, %v1145_v36 }
 0x410   :  { %v2429_v44 = vmul.f32 -1.442695, %v1152_v43 }
 0x411   :  { %2923 = vpow2.f32 %v2428_v42 }
 0x412   :  { %2925 = vpow2.f32 %v2429_v44 }
 0x41b   :  { %v2924_v45 = vpop.eup %2923 }
 0x41c   :  { %v1149_v46 = vadd.f32 1.0, %v2924_v45  ;;  %v2926_v47 = vpop.eup %2925 }
 0x41d   :  { %v1156_v49 = vadd.f32 1.0, %v2926_v47 }
 0x41e   :  { %2927 = vrcp.f32 %v1149_v46 }
 0x41f   :  { %2929 = vrcp.f32 %v1156_v49  ;;  %v1218_v49 = vrot.slane %v1205_v16, %v3207_v61  ;;  %v1491_v16 = vld [vmem:[%s3738_s3] sm:$0x7] }
 0x428   :  { %v2928_v51 = vpop.eup %2927 }
 0x429   :  { %v1159_v53 = vmul.f32 %v2928_v51, %v1140_v50  ;;  %v2930_v55 = vpop.eup %2929 }
 0x42a   :  { %v1162_v56 = vsub.f32 1.0, %v2930_v55  ;;  %v1164_v60 = vmul.f32 %v2930_v55, %v3355_v59  ;;  %v2869_v59 = vld [vmem:[%s3736_s2 + $0x8] ss:$12 sps:$4 sm:$0xff]  }
 0x42b   :  { %v1160_v54 = vadd.f32 %v2403_v52, %v1159_v53  ;;  %v2432_v53 = vld [vmem:[%s3739_s0 + $0x70] sm:$0xff] }
 0x42d   :  { %2931 = vtanh.f32 %v1160_v54 }
 0x437   :  { %v2932_v57 = vpop.eup %2931 }
 0x438   :  { %v1163_v58 = vmul.f32 %v2932_v57, %v1162_v56 }
 0x43a   :  { %v3507_v9 = vadd.f32 %v1164_v60, %v1163_v58 }
 0x43c   :  { %v1172_v18 = vpack.c.bf16 %v3507_v9, %v3507_v9 }
 0x43e   :  { %1383 = vmatmul.mubr.bf16.vlgmr.msra.gmra.mrb[16].mxu0 %v1172_v18  ;;  %2715 = vmatmul.mubr.bf16.vlgmr.msra.gmra.mrb[16].mxu1 %v1172_v18 }
 0x43f   :  { %1637 = vmatpush1.bf16.msra.mxu0 %v3370_v63  ;;  %1668 = vmatprep.mubr.bf16.mxu0 %v2974_v2 }
 0x440   :  { %1638 = vmatprep.subr.bf16.mxu0 %v3380_v12  ;;  %2734 = vmatprep.mubr.msk.bf16.mxu1 %vm2975_vm0, %v2973_v1 }
 0x441   :  { %2719 = vmatpush3.bf16.msra.mxu1 %v2869_v59 }
 0x442   :  { %2720 = vmatprep.subr.bf16.mxu1 %v2973_v1 }
 0x443   :  { %1639 = vmatpush1.bf16.msra.mxu0 %v3386_v15 }
 0x444   :  { %1640 = vmatprep.subr.bf16.mxu0 %v3396_v21 }
 0x445   :  { %2721 = vmatpush3.bf16.msra.mxu1 %v2870_v25 }
 0x446   :  { %2722 = vmatprep.subr.bf16.mxu1 %v2973_v1 }
 0x447   :  { %1641 = vmatpush1.bf16.msra.mxu0 %v3402_v24 }
 0x448   :  { %1642 = vmatprep.subr.bf16.mxu0 %v3412_v26 }
 0x449   :  { %2723 = vmatpush3.bf16.msra.mxu1 %v2871_v28  ;;  %v2878_v28 = vld [vmem:[%s3736_s2 + $0x20] ss:$12 sps:$4 sm:$0xff]  }
 0x44a   :  { %2724 = vmatprep.subr.bf16.mxu1 %v2973_v1 }
 0x44b   :  { %1643 = vmatpush1.bf16.msra.mxu0 %v3418_v27 }
 0x44c   :  { %1644 = vmatprep.subr.bf16.mxu0 %v3428_v29 }
 0x44d   :  { %2725 = vmatpush3.bf16.msra.mxu1 %v2872_v23  ;;  %v2879_v23 = vld [vmem:[%s3736_s2 + $0x38] ss:$12 sps:$4 sm:$0xff]  }
 0x44e   :  { %2726 = vmatprep.subr.bf16.mxu1 %v2973_v1 }
 0x44f   :  { %1645 = vmatpush1.bf16.msra.mxu0 %v3434_v31 }
 0x450   :  { %1646 = vmatprep.subr.bf16.mxu0 %v3443_v3 }
 0x451   :  { %2727 = vmatpush3.bf16.msra.mxu1 %v2873_v5  ;;  %v2881_v5 = vld [vmem:[%s3736_s2 + $0x68] ss:$12 sps:$4 sm:$0xff]  }
 0x452   :  { %2728 = vmatprep.subr.bf16.mxu1 %v2973_v1 }
 0x453   :  { %1647 = vmatpush1.bf16.msra.mxu0 %v3449_v4 }
 0x454   :  { %1648 = vmatprep.subr.bf16.mxu0 %v3459_v6 }
 0x455   :  { %2729 = vmatpush3.bf16.msra.mxu1 %v2874_v8  ;;  %v2882_v8 = vld [vmem:[%s3736_s2 + $0x80] ss:$12 sps:$4 sm:$0xff]  }
 0x456   :  { %2730 = vmatprep.subr.bf16.mxu1 %v2973_v1 }
 0x457   :  { %1649 = vmatpush1.bf16.msra.mxu0 %v3465_v7 }
 0x458   :  { %1650 = vmatprep.subr.bf16.mxu0 %v3475_v10 }
 0x459   :  { %2731 = vmatpush3.bf16.msra.mxu1 %v2875_v13  ;;  %v2883_v13 = vld [vmem:[%s3736_s2 + $0x98] ss:$12 sps:$4 sm:$0xff]  }
 0x45a   :  { %2732 = vmatprep.subr.bf16.mxu1 %v2973_v1 }
 0x45b   :  { %1651 = vmatpush1.bf16.msra.mxu0 %v3481_v11 }
 0x45c   :  { %1922 = vmatprep.subr.bf16.mxu0 %v3365_v62 }
 0x45d   :  { %2733 = vmatpush3.bf16.msra.mxu1 %v2876_v14  ;;  %v2884_v14 = vld [vmem:[%s3736_s2 + $0xb0] ss:$12 sps:$4 sm:$0xff]  }
 0x45e   :  { %2738 = vmatprep.subr.bf16.mxu1 %v2973_v1 }
 0x511   :  { %v1384_v22 = vpop.f32.mrb[16].mxu0  ;;  %v1425_v30 = vpop.f32.mrb[16].mxu1 }
 0x512   :  { %v1385_v32 = vadd.f32 %v1384_v22, %v1210_v17  ;;  %v1386_v33 = vpop.f32.mrb[17].mxu0  ;;  %v2716_v0 = vpop.f32.mrb[17].mxu1  ;;  %v1426_v51 = vadd.f32 %v1425_v30, %v1218_v49  ;;  %v1496_v17 = vrot.slane %v1491_v16, %v3192_v38  ;;  %v1504_v49 = vrot.slane %v1491_v16, %v3207_v61 }
 0x513   :  { %v1387_v34 = vadd.f32 %v1386_v33, %v1214_v19  ;;  %v1388_v35 = vpop.f32.mrb[18].mxu0  ;;  %v1428_v36 = vpop.f32.mrb[18].mxu1  ;;  %v1500_v19 = vrot.slane %v1491_v16, %v3197_v40 }
 0x514   :  { %v1431_v37 = vadd.f32 %v2430_v20, %v1385_v32  ;;  %v1389_v41 = vpop.f32.mrb[19].mxu0  ;;  %v2717_v42 = vpop.f32.mrb[19].mxu1  ;;  %v2459_v20 = vld [vmem:[%s3739_s0 + $0x78] sm:$0xff] }
 0x515   :  { %v1438_v44 = vadd.f32 %v2431_v39, %v1387_v34  ;;  %v2460_v39 = vld [vmem:[%s3739_s0 + $0x80] sm:$0xff] }
 0x516   :  { %v2457_v43 = vmul.f32 -1.442695, %v1431_v37 }
 0x517   :  { %v2458_v45 = vmul.f32 -1.442695, %v1438_v44 }
 0x518   :  { %2933 = vpow2.f32 %v2457_v43 }
 0x519   :  { %2935 = vpow2.f32 %v2458_v45 }
 0x522   :  { %v2934_v46 = vpop.eup %2933 }
 0x523   :  { %v1435_v47 = vadd.f32 1.0, %v2934_v46  ;;  %v2936_v48 = vpop.eup %2935 }
 0x524   :  { %v1442_v50 = vadd.f32 1.0, %v2936_v48 }
 0x525   :  { %2937 = vrcp.f32 %v1435_v47 }
 0x526   :  { %2939 = vrcp.f32 %v1442_v50 }
 0x52f   :  { %v2938_v52 = vpop.eup %2937 }
 0x530   :  { %v1445_v54 = vmul.f32 %v2938_v52, %v1426_v51  ;;  %v2940_v56 = vpop.eup %2939 }
 0x531   :  { %v1448_v57 = vsub.f32 1.0, %v2940_v56  ;;  %v1450_v18 = vmul.f32 %v2940_v56, %v3507_v9  ;;  %v2877_v9 = vld [vmem:[%s3736_s2 + $0x8] ss:$12 sps:$4 sm:$0xff]  }
 0x532   :  { %v1446_v55 = vadd.f32 %v2432_v53, %v1445_v54  ;;  %v2461_v53 = vld [vmem:[%s3739_s0 + $0x88] sm:$0xff] }
 0x534   :  { %2941 = vtanh.f32 %v1446_v55 }
 0x53e   :  { %v2942_v58 = vpop.eup %2941 }
 0x53f   :  { %v1449_v60 = vmul.f32 %v2942_v58, %v1448_v57 }
 0x541   :  { %v3578_v59 = vadd.f32 %v1450_v18, %v1449_v60 }
 0x543   :  { %v1458_v25 = vpack.c.bf16 %v3578_v59, %v3578_v59 }
 0x545   :  { %1669 = vmatmul.mubr.bf16.vlgmr.msra.gmra.mrb[20].mxu0 %v1458_v25  ;;  %2735 = vmatmul.mubr.bf16.vlgmr.msra.gmra.mrb[20].mxu1 %v1458_v25 }
 0x546   :  { %1923 = vmatpush1.bf16.msra.mxu0 %v3370_v63  ;;  %1954 = vmatprep.mubr.bf16.mxu0 %v2974_v2 }
 0x547   :  { %1924 = vmatprep.subr.bf16.mxu0 %v3380_v12  ;;  %2754 = vmatprep.mubr.msk.bf16.mxu1 %vm2975_vm0, %v2973_v1 }
 0x548   :  { %2739 = vmatpush3.bf16.msra.mxu1 %v2877_v9 }
 0x549   :  { %2740 = vmatprep.subr.bf16.mxu1 %v2973_v1 }
 0x54a   :  { %1925 = vmatpush1.bf16.msra.mxu0 %v3386_v15 }
 0x54b   :  { %1926 = vmatprep.subr.bf16.mxu0 %v3396_v21 }
 0x54c   :  { %2741 = vmatpush3.bf16.msra.mxu1 %v2878_v28 }
 0x54d   :  { %2742 = vmatprep.subr.bf16.mxu1 %v2973_v1 }
 0x54e   :  { %1927 = vmatpush1.bf16.msra.mxu0 %v3402_v24 }
 0x54f   :  { %1928 = vmatprep.subr.bf16.mxu0 %v3412_v26 }
 0x550   :  { %2743 = vmatpush3.bf16.msra.mxu1 %v2879_v23 }
 0x551   :  { %2744 = vmatprep.subr.bf16.mxu1 %v2973_v1 }
 0x552   :  { %1929 = vmatpush1.bf16.msra.mxu0 %v3418_v27 }
 0x553   :  { %1930 = vmatprep.subr.bf16.mxu0 %v3428_v29 }
 0x556   :  { %1931 = vmatpush1.bf16.msra.mxu0 %v3434_v31 }
 0x557   :  { %1932 = vmatprep.subr.bf16.mxu0 %v3443_v3 }
 0x55a   :  { %1933 = vmatpush1.bf16.msra.mxu0 %v3449_v4 }
 0x55b   :  { %1934 = vmatprep.subr.bf16.mxu0 %v3459_v6 }
 0x55e   :  { %1935 = vmatpush1.bf16.msra.mxu0 %v3465_v7 }
 0x55f   :  { %1936 = vmatprep.subr.bf16.mxu0 %v3475_v10 }
 0x562   :  { %1937 = vmatpush1.bf16.msra.mxu0 %v3481_v11 }
 0x563   :  { %2208 = vmatprep.subr.bf16.mxu0 %v3365_v62  ;;  %v2880_v62 = vld [vmem:[%s3736_s2 + $0x50] ss:$12 sps:$4 sm:$0xff]  }
 0x564   :  { %2745 = vmatpush3.bf16.msra.mxu1 %v2880_v62 }
 0x565   :  { %2746 = vmatprep.subr.bf16.mxu1 %v2973_v1 }
 0x568   :  { %2747 = vmatpush3.bf16.msra.mxu1 %v2881_v5  ;;  %v2489_v5 = vld [vmem:[%s3739_s0 + $0x98] sm:$0xff] }
 0x569   :  { %2748 = vmatprep.subr.bf16.mxu1 %v2973_v1 }
 0x56c   :  { %2749 = vmatpush3.bf16.msra.mxu1 %v2882_v8 }
 0x56d   :  { %2750 = vmatprep.subr.bf16.mxu1 %v2973_v1 }
 0x570   :  { %2751 = vmatpush3.bf16.msra.mxu1 %v2883_v13 }
 0x571   :  { %2752 = vmatprep.subr.bf16.mxu1 %v2973_v1 }
 0x574   :  { %2753 = vmatpush3.bf16.msra.mxu1 %v2884_v14 }
 0x575   :  { %2758 = vmatprep.subr.bf16.mxu1 %v2973_v1 }
 0x618   :  { %v1670_v22 = vpop.f32.mrb[20].mxu0  ;;  %v1711_v30 = vpop.f32.mrb[20].mxu1 }
 0x619   :  { %v1671_v32 = vadd.f32 %v1670_v22, %v1496_v17  ;;  %v1672_v33 = vpop.f32.mrb[21].mxu0  ;;  %v2736_v0 = vpop.f32.mrb[21].mxu1  ;;  %v1712_v51 = vadd.f32 %v1711_v30, %v1504_v49  ;;  %v2517_v49 = vld [vmem:[%s3739_s0 + $0xa8] sm:$0xff] }
 0x61a   :  { %v1673_v34 = vadd.f32 %v1672_v33, %v1500_v19  ;;  %v1674_v35 = vpop.f32.mrb[22].mxu0  ;;  %v1714_v36 = vpop.f32.mrb[22].mxu1 }
 0x61b   :  { %v1717_v37 = vadd.f32 %v2459_v20, %v1671_v32  ;;  %v1675_v41 = vpop.f32.mrb[23].mxu0  ;;  %v2737_v42 = vpop.f32.mrb[23].mxu1 }
 0x61c   :  { %v1724_v44 = vadd.f32 %v2460_v39, %v1673_v34  ;;  %v2490_v34 = vld [vmem:[%s3739_s0 + $0xa0] sm:$0xff] }
 0x61d   :  { %v2486_v43 = vmul.f32 -1.442695, %v1717_v37 }
 0x61e   :  { %v2487_v45 = vmul.f32 -1.442695, %v1724_v44 }
 0x61f   :  { %2943 = vpow2.f32 %v2486_v43 }
 0x620   :  { %2945 = vpow2.f32 %v2487_v45 }
 0x629   :  { %v2944_v46 = vpop.eup %2943 }
 0x62a   :  { %v1721_v47 = vadd.f32 1.0, %v2944_v46  ;;  %v2946_v48 = vpop.eup %2945  ;;  %v2063_v46 = vld [vmem:[%s3738_s3] sm:$0x7] }
 0x62b   :  { %v1728_v50 = vadd.f32 1.0, %v2946_v48  ;;  %v2072_v48 = vrot.slane %v2063_v46, %v3197_v40 }
 0x62c   :  { %2947 = vrcp.f32 %v1721_v47  ;;  %v2068_v47 = vrot.slane %v2063_v46, %v3192_v38 }
 0x62d   :  { %2949 = vrcp.f32 %v1728_v50 }
 0x636   :  { %v2948_v52 = vpop.eup %2947 }
 0x637   :  { %v1731_v54 = vmul.f32 %v2948_v52, %v1712_v51  ;;  %v2950_v56 = vpop.eup %2949 }
 0x638   :  { %v1734_v57 = vsub.f32 1.0, %v2950_v56  ;;  %v1736_v18 = vmul.f32 %v2950_v56, %v3578_v59 }
 0x639   :  { %v1732_v55 = vadd.f32 %v2461_v53, %v1731_v54 }
 0x63b   :  { %2951 = vtanh.f32 %v1732_v55 }
 0x645   :  { %v2952_v58 = vpop.eup %2951 }
 0x646   :  { %v1735_v60 = vmul.f32 %v2952_v58, %v1734_v57 }
 0x648   :  { %v3649_v25 = vadd.f32 %v1736_v18, %v1735_v60  ;;  %v2518_v60 = vld [vmem:[%s3739_s0 + $0xb0] sm:$0xff] }
 0x64a   :  { %v1744_v9 = vpack.c.bf16 %v3649_v25, %v3649_v25 }
 0x64c   :  { %1955 = vmatmul.mubr.bf16.vlgmr.msra.gmra.mrb[24].mxu0 %v1744_v9  ;;  %2755 = vmatmul.mubr.bf16.vlgmr.msra.gmra.mrb[24].mxu1 %v1744_v9 }
 0x64d   :  { %2209 = vmatpush1.bf16.msra.mxu0 %v3370_v63  ;;  %2240 = vmatprep.mubr.bf16.mxu0 %v2974_v2  ;;  %v2885_v2 = vld [vmem:[%s3736_s2 + $0x8] ss:$12 sps:$4 sm:$0xff]   ;;  %v2886_v63 = vld [vmem:[%s3736_s2 + $0x20] ss:$12 sps:$4 sm:$0xff]  }
 0x64e   :  { %2210 = vmatprep.subr.bf16.mxu0 %v3380_v12  ;;  %2774 = vmatprep.mubr.msk.bf16.mxu1 %vm2975_vm0, %v2973_v1  ;;  %v2887_v12 = vld [vmem:[%s3736_s2 + $0x38] ss:$12 sps:$4 sm:$0xff]  }
 0x64f   :  { %2759 = vmatpush3.bf16.msra.mxu1 %v2885_v2 }
 0x650   :  { %2760 = vmatprep.subr.bf16.mxu1 %v2973_v1 }
 0x651   :  { %2211 = vmatpush1.bf16.msra.mxu0 %v3386_v15  ;;  %v2888_v15 = vld [vmem:[%s3736_s2 + $0x50] ss:$12 sps:$4 sm:$0xff]  }
 0x652   :  { %2212 = vmatprep.subr.bf16.mxu0 %v3396_v21  ;;  %v2889_v21 = vld [vmem:[%s3736_s2 + $0x68] ss:$12 sps:$4 sm:$0xff]  }
 0x653   :  { %2761 = vmatpush3.bf16.msra.mxu1 %v2886_v63 }
 0x654   :  { %2762 = vmatprep.subr.bf16.mxu1 %v2973_v1 }
 0x655   :  { %2213 = vmatpush1.bf16.msra.mxu0 %v3402_v24  ;;  %v2890_v24 = vld [vmem:[%s3736_s2 + $0x80] ss:$12 sps:$4 sm:$0xff]  }
 0x656   :  { %2214 = vmatprep.subr.bf16.mxu0 %v3412_v26  ;;  %v2891_v26 = vld [vmem:[%s3736_s2 + $0x98] ss:$12 sps:$4 sm:$0xff]  }
 0x657   :  { %2763 = vmatpush3.bf16.msra.mxu1 %v2887_v12 }
 0x658   :  { %2764 = vmatprep.subr.bf16.mxu1 %v2973_v1 }
 0x659   :  { %2215 = vmatpush1.bf16.msra.mxu0 %v3418_v27  ;;  %v2892_v27 = vld [vmem:[%s3736_s2 + $0xb0] ss:$12 sps:$4 sm:$0xff]  }
 0x65a   :  { %2216 = vmatprep.subr.bf16.mxu0 %v3428_v29  ;;  %v1777_v29 = vld [vmem:[%s3738_s3] sm:$0x7] }
 0x65b   :  { %2765 = vmatpush3.bf16.msra.mxu1 %v2888_v15  ;;  %v1790_v30 = vrot.slane %v1777_v29, %v3207_v61  ;;  %v2076_v15 = vrot.slane %v2063_v46, %v3207_v61 }
 0x65c   :  { %2766 = vmatprep.subr.bf16.mxu1 %v2973_v1 }
 0x65d   :  { %2217 = vmatpush1.bf16.msra.mxu0 %v3434_v31  ;;  %v1782_v31 = vrot.slane %v1777_v29, %v3192_v38 }
 0x65e   :  { %2218 = vmatprep.subr.bf16.mxu0 %v3443_v3  ;;  %v1786_v3 = vrot.slane %v1777_v29, %v3197_v40 }
 0x65f   :  { %2767 = vmatpush3.bf16.msra.mxu1 %v2889_v21 }
 0x660   :  { %2768 = vmatprep.subr.bf16.mxu1 %v2973_v1 }
 0x661   :  { %2219 = vmatpush1.bf16.msra.mxu0 %v3449_v4  ;;  %v2488_v4 = vld [vmem:[%s3739_s0 + $0x90] sm:$0xff] }
 0x662   :  { %2220 = vmatprep.subr.bf16.mxu0 %v3459_v6 }
 0x663   :  { %2769 = vmatpush3.bf16.msra.mxu1 %v2890_v24 }
 0x664   :  { %2770 = vmatprep.subr.bf16.mxu1 %v2973_v1 }
 0x665   :  { %2221 = vmatpush1.bf16.msra.mxu0 %v3465_v7 }
 0x666   :  { %2222 = vmatprep.subr.bf16.mxu0 %v3475_v10 }
 0x667   :  { %2771 = vmatpush3.bf16.msra.mxu1 %v2891_v26 }
 0x668   :  { %2772 = vmatprep.subr.bf16.mxu1 %v2973_v1 }
 0x669   :  { %2223 = vmatpush1.bf16.msra.mxu0 %v3481_v11 }
 0x66b   :  { %2773 = vmatpush3.bf16.msra.mxu1 %v2892_v27  ;;  %v2519_v27 = vld [vmem:[%s3739_s0 + $0xb8] sm:$0xff] }
 0x71f   :  { %v1956_v6 = vpop.f32.mrb[24].mxu0  ;;  %v1997_v7 = vpop.f32.mrb[24].mxu1 }
 0x720   :  { %v1957_v10 = vadd.f32 %v1956_v6, %v1782_v31  ;;  %v1958_v11 = vpop.f32.mrb[25].mxu0  ;;  %v2756_v59 = vpop.f32.mrb[25].mxu1  ;;  %v1998_v33 = vadd.f32 %v1997_v7, %v1790_v30 }
 0x721   :  { %v1959_v28 = vadd.f32 %v1958_v11, %v1786_v3  ;;  %v1960_v1 = vpop.f32.mrb[26].mxu0  ;;  %v2000_v23 = vpop.f32.mrb[26].mxu1 }
 0x722   :  { %v2003_v62 = vadd.f32 %v2488_v4, %v1957_v10  ;;  %v1961_v8 = vpop.f32.mrb[27].mxu0  ;;  %v2757_v13 = vpop.f32.mrb[27].mxu1 }
 0x723   :  { %v2010_v16 = vadd.f32 %v2489_v5, %v1959_v28 }
 0x724   :  { %v2515_v14 = vmul.f32 -1.442695, %v2003_v62 }
 0x725   :  { %v2516_v17 = vmul.f32 -1.442695, %v2010_v16 }
 0x726   :  { %2953 = vpow2.f32 %v2515_v14 }
 0x727   :  { %2955 = vpow2.f32 %v2516_v17 }
 0x730   :  { %v2954_v19 = vpop.eup %2953 }
 0x731   :  { %v2007_v20 = vadd.f32 1.0, %v2954_v19  ;;  %v2956_v22 = vpop.eup %2955 }
 0x732   :  { %v2014_v32 = vadd.f32 1.0, %v2956_v22 }
 0x733   :  { %2957 = vrcp.f32 %v2007_v20 }
 0x734   :  { %2959 = vrcp.f32 %v2014_v32 }
 0x73d   :  { %v2958_v0 = vpop.eup %2957 }
 0x73e   :  { %v2017_v35 = vmul.f32 %v2958_v0, %v1998_v33  ;;  %v2960_v37 = vpop.eup %2959 }
 0x73f   :  { %v2020_v39 = vsub.f32 1.0, %v2960_v37  ;;  %v2022_v43 = vmul.f32 %v2960_v37, %v3649_v25 }
 0x740   :  { %v2018_v36 = vadd.f32 %v2490_v34, %v2017_v35 }
 0x742   :  { %2961 = vtanh.f32 %v2018_v36 }
 0x74c   :  { %v2962_v41 = vpop.eup %2961 }
 0x74d   :  { %v2021_v42 = vmul.f32 %v2962_v41, %v2020_v39 }
 0x74f   :  { %v2023_v44 = vadd.f32 %v2022_v43, %v2021_v42 }
 0x751   :  { %v2030_v45 = vpack.c.bf16 %v2023_v44, %v2023_v44 }
 0x753   :  { %2241 = vmatmul.mubr.bf16.vlgmr.msra.gmra.mrb[28].mxu0 %v2030_v45  ;;  %2775 = vmatmul.mubr.bf16.vlgmr.msra.gmra.mrb[28].mxu1 %v2030_v45 }
 0x826   :  { %v2242_v50 = vpop.f32.mrb[28].mxu0  ;;  %v2283_v51 = vpop.f32.mrb[28].mxu1 }
 0x827   :  { %v2243_v52 = vadd.f32 %v2242_v50, %v2068_v47  ;;  %v2244_v53 = vpop.f32.mrb[29].mxu0  ;;  %v2776_v54 = vpop.f32.mrb[29].mxu1  ;;  %v2284_v24 = vadd.f32 %v2283_v51, %v2076_v15 }
 0x828   :  { %v2245_v55 = vadd.f32 %v2244_v53, %v2072_v48  ;;  %v2246_v56 = vpop.f32.mrb[30].mxu0  ;;  %v2286_v57 = vpop.f32.mrb[30].mxu1 }
 0x829   :  { %v2289_v58 = vadd.f32 %v2517_v49, %v2243_v52  ;;  %v2247_v38 = vpop.f32.mrb[31].mxu0  ;;  %v2777_v18 = vpop.f32.mrb[31].mxu1 }
 0x82a   :  { %v2296_v25 = vadd.f32 %v2518_v60, %v2245_v55 }
 0x82b   :  { %v2544_v40 = vmul.f32 -1.442695, %v2289_v58 }
 0x82c   :  { %v2545_v9 = vmul.f32 -1.442695, %v2296_v25 }
 0x82d   :  { %2963 = vpow2.f32 %v2544_v40 }
 0x82e   :  { %2965 = vpow2.f32 %v2545_v9 }
 0x837   :  { %v2964_v2 = vpop.eup %2963 }
 0x838   :  { %v2293_v63 = vadd.f32 1.0, %v2964_v2  ;;  %v2966_v12 = vpop.eup %2965 }
 0x839   :  { %v2300_v21 = vadd.f32 1.0, %v2966_v12 }
 0x83a   :  { %2967 = vrcp.f32 %v2293_v63 }
 0x83b   :  { %2969 = vrcp.f32 %v2300_v21 }
 0x844   :  { %v2968_v26 = vpop.eup %2967 }
 0x845   :  { %v2303_v29 = vmul.f32 %v2968_v26, %v2284_v24  ;;  %v2970_v3 = vpop.eup %2969 }
 0x846   :  { %v2306_v4 = vsub.f32 1.0, %v2970_v3  ;;  %v2308_v10 = vmul.f32 %v2970_v3, %v2023_v44 }
 0x847   :  { %v2304_v31 = vadd.f32 %v2519_v27, %v2303_v29 }
 0x849   :  { %2971 = vtanh.f32 %v2304_v31 }
 0x853   :  { %v2972_v6 = vpop.eup %2971 }
 0x854   :  { %v2307_v7 = vmul.f32 %v2972_v6, %v2306_v4 }
 0x856   :  { %v2309_v11 = vadd.f32 %v2308_v10, %v2307_v7 }
 0x858   :  { %2312 = vst [vmem:[%s3740_s4] sm:$0xff] %v2309_v11 }

// kernel: encoder_decoder_forward.8
= control target key start
LH: loop header
LB: loop body
LE: loop exit
PB: predicated region body
PF: predicated region fallthrough
CT: control target
= control target key end

     0   :  { %v3009_v1 = vmov 0.0   ;;  %v3010_v2 = vmov 0   ;;  %vm3011_vm0 = vmmov 0   ;;  %v65_v36 = vlaneseq  ;;  %s3801_s2 = inlined_call_operand.vmem [shape: bf16[128,384], index: 2, kind: input, shape index: {}]   ;;  %s3802_s1 = inlined_call_operand.vmem [shape: f32[8,128], index: 1, kind: input, shape index: {}]   ;;  %s3803_s3 = inlined_call_operand.vmem [shape: f32[1,384], index: 3, kind: input, shape index: {}]   ;;  %s3804_s0 = inlined_call_operand.vmem [shape: f32[8,8,384], index: 0, kind: input, shape index: {}]   ;;  %s3805_s4 = inlined_call_operand.vmem [shape: bf16[8,8,128], index: 4, kind: output, shape index: {0}]   ;;  %s3806_s5 = inlined_call_operand.vmem [shape: f32[8,128], index: 5, kind: output, shape index: {1}]  }
   0x1   :  { %v3045_v0 = vld [vmem:[%s3801_s2 + $0x4] ss:$12 sps:$4 sm:$0xff]   ;;  %2654 = vmatprep.subr.bf16.mxu1 %v3009_v1  ;;  %240 = vmatprep.mubr.bf16.mxu0 %v3010_v2  ;;  %v3052_v3 = vld [vmem:[%s3801_s2] ss:$12 sps:$4 sm:$0xff]   ;;  %v3060_v4 = vld [vmem:[%s3801_s2 + $0x1c] ss:$12 sps:$4 sm:$0xff]  }
   0x2   :  { %2670 = vmatprep.mubr.msk.bf16.mxu1 %vm3011_vm0, %v3009_v1  ;;  %208 = vmatprep.subr.bf16.mxu0 %v3045_v0  ;;  %v3066_v5 = vld [vmem:[%s3801_s2 + $0x18] ss:$12 sps:$4 sm:$0xff]   ;;  %v3072_v6 = vld [vmem:[%s3801_s2 + $0x34] ss:$12 sps:$4 sm:$0xff]   ;;  %v3078_v7 = vld [vmem:[%s3801_s2 + $0x30] ss:$12 sps:$4 sm:$0xff]  }
   0x3   :  { %209 = vmatpush1.bf16.msra.mxu0 %v3052_v3  ;;  %v3084_v8 = vld [vmem:[%s3801_s2 + $0x4c] ss:$12 sps:$4 sm:$0xff]   ;;  %v2838_v9 = vld [vmem:[%s3801_s2 + $0x8] ss:$12 sps:$4 sm:$0xff]   ;;  %v3099_v11 = vld [vmem:[%s3801_s2 + $0x64] ss:$12 sps:$4 sm:$0xff]  }
   0x4   :  { %210 = vmatprep.subr.bf16.mxu0 %v3060_v4  ;;  %v3093_v10 = vld [vmem:[%s3801_s2 + $0x48] ss:$12 sps:$4 sm:$0xff]   ;;  %2655 = vmatpush3.bf16.msra.mxu1 %v2838_v9  ;;  %v2842_v12 = vld [vmem:[%s3801_s2 + $0x20] ss:$12 sps:$4 sm:$0xff]   ;;  %v2843_v15 = vld [vmem:[%s3801_s2 + $0x38] ss:$12 sps:$4 sm:$0xff]  }
   0x5   :  { %2656 = vmatprep.subr.bf16.mxu1 %v3009_v1  ;;  %v3108_v13 = vld [vmem:[%s3801_s2 + $0x60] ss:$12 sps:$4 sm:$0xff]   ;;  %v3114_v14 = vld [vmem:[%s3801_s2 + $0x7c] ss:$12 sps:$4 sm:$0xff]   ;;  %v3124_v16 = vld [vmem:[%s3801_s2 + $0x78] ss:$12 sps:$4 sm:$0xff]  }
   0x6   :  { %v3130_v17 = vld [vmem:[%s3801_s2 + $0x94] ss:$12 sps:$4 sm:$0xff]   ;;  %v2844_v18 = vld [vmem:[%s3801_s2 + $0x50] ss:$12 sps:$4 sm:$0xff]   ;;  %v3145_v20 = vld [vmem:[%s3801_s2 + $0xac] ss:$12 sps:$4 sm:$0xff]  }
   0x7   :  { %211 = vmatpush1.bf16.msra.mxu0 %v3066_v5  ;;  %v3139_v19 = vld [vmem:[%s3801_s2 + $0x90] ss:$12 sps:$4 sm:$0xff]   ;;  %v2845_v21 = vld [vmem:[%s3801_s2 + $0x68] ss:$12 sps:$4 sm:$0xff]   ;;  %v3160_v23 = vld [vmem:[%s3802_s1] sm:$0xff]  ;;  %v66_v37 = vshrl.u32 %v65_v36, 7 }
   0x8   :  { %212 = vmatprep.subr.bf16.mxu0 %v3072_v6  ;;  %2657 = vmatpush3.bf16.msra.mxu1 %v2842_v12  ;;  %v3155_v22 = vld [vmem:[%s3801_s2 + $0xa8] ss:$12 sps:$4 sm:$0xff]   ;;  %v2846_v24 = vld [vmem:[%s3801_s2 + $0x80] ss:$12 sps:$4 sm:$0xff]   ;;  %v30_v25 = vpack.c.bf16 %v3160_v23, %v3160_v23  ;;  %v2847_v26 = vld [vmem:[%s3801_s2 + $0x98] ss:$12 sps:$4 sm:$0xff]  }
   0x9   :  { %2658 = vmatprep.subr.bf16.mxu1 %v3009_v1  ;;  %v2848_v27 = vld [vmem:[%s3801_s2 + $0xb0] ss:$12 sps:$4 sm:$0xff]   ;;  %v2849_v28 = vld [vmem:[%s3801_s2 + $0x8] ss:$12 sps:$4 sm:$0xff]   ;;  %v2850_v29 = vld [vmem:[%s3801_s2 + $0x20] ss:$12 sps:$4 sm:$0xff]  }
   0xa   :  { %v2851_v30 = vld [vmem:[%s3801_s2 + $0x38] ss:$12 sps:$4 sm:$0xff]   ;;  %v2852_v31 = vld [vmem:[%s3801_s2 + $0x50] ss:$12 sps:$4 sm:$0xff]   ;;  %v2853_v32 = vld [vmem:[%s3801_s2 + $0x68] ss:$12 sps:$4 sm:$0xff]  }
   0xb   :  { %213 = vmatpush1.bf16.msra.mxu0 %v3078_v7  ;;  %v2854_v33 = vld [vmem:[%s3801_s2 + $0x80] ss:$12 sps:$4 sm:$0xff]   ;;  %v2855_v34 = vld [vmem:[%s3801_s2 + $0x98] ss:$12 sps:$4 sm:$0xff]   ;;  %v2856_v35 = vld [vmem:[%s3801_s2 + $0xb0] ss:$12 sps:$4 sm:$0xff]  }
   0xc   :  { %214 = vmatprep.subr.bf16.mxu0 %v3084_v8  ;;  %2659 = vmatpush3.bf16.msra.mxu1 %v2843_v15  ;;  %v3233_v38 = vsub.s32 0, %v66_v37  ;;  %v63_v39 = vld [vmem:[%s3803_s3] sm:$0x7]  ;;  %v3238_v40 = vsub.s32 1, %v66_v37  ;;  %v27_v50 = vld [vmem:[%s3804_s0 + $0x8] sm:$0xff]  ;;  %v3248_v61 = vsub.s32 2, %v66_v37 }
   0xd   :  { %2660 = vmatprep.subr.bf16.mxu1 %v3009_v1  ;;  %v26_v43 = vld [vmem:[%s3804_s0] sm:$0xff]  ;;  %v2864_v37 = vld [vmem:[%s3801_s2 + $0xb0] ss:$12 sps:$4 sm:$0xff]  }
   0xe   :  { %v68_v41 = vrot.slane %v63_v39, %v3233_v38  ;;  %v72_v42 = vrot.slane %v63_v39, %v3238_v40  ;;  %v76_v62 = vrot.slane %v63_v39, %v3248_v61  ;;  %v2863_v36 = vld [vmem:[%s3801_s2 + $0x98] ss:$12 sps:$4 sm:$0xff]   ;;  %v351_v39 = vld [vmem:[%s3803_s3] sm:$0x7] }
   0xf   :  { %215 = vmatpush1.bf16.msra.mxu0 %v3093_v10 }
  0x10   :  { %216 = vmatprep.subr.bf16.mxu0 %v3099_v11  ;;  %2661 = vmatpush3.bf16.msra.mxu1 %v2844_v18  ;;  %v28_v18 = vld [vmem:[%s3804_s0 + $0x10] sm:$0xff] }
  0x11   :  { %2662 = vmatprep.subr.bf16.mxu1 %v3009_v1 }
  0x13   :  { %217 = vmatpush1.bf16.msra.mxu0 %v3108_v13 }
  0x14   :  { %218 = vmatprep.subr.bf16.mxu0 %v3114_v14  ;;  %2663 = vmatpush3.bf16.msra.mxu1 %v2845_v21 }
  0x15   :  { %2664 = vmatprep.subr.bf16.mxu1 %v3009_v1 }
  0x17   :  { %219 = vmatpush1.bf16.msra.mxu0 %v3124_v16 }
  0x18   :  { %220 = vmatprep.subr.bf16.mxu0 %v3130_v17  ;;  %2665 = vmatpush3.bf16.msra.mxu1 %v2846_v24 }
  0x19   :  { %2666 = vmatprep.subr.bf16.mxu1 %v3009_v1 }
  0x1b   :  { %221 = vmatpush1.bf16.msra.mxu0 %v3139_v19 }
  0x1c   :  { %222 = vmatprep.subr.bf16.mxu0 %v3145_v20  ;;  %2667 = vmatpush3.bf16.msra.mxu1 %v2847_v26 }
  0x1d   :  { %2668 = vmatprep.subr.bf16.mxu1 %v3009_v1 }
  0x1f   :  { %223 = vmatpush1.bf16.msra.mxu0 %v3155_v22 }
  0x20   :  { %496 = vmatprep.subr.bf16.mxu0 %v3045_v0  ;;  %2669 = vmatpush3.bf16.msra.mxu1 %v2848_v27 }
  0x21   :  { %2674 = vmatprep.subr.bf16.mxu1 %v3009_v1 }
  0x22   :  { %241 = vmatmul.mubr.bf16.vlgmr.msra.gmra.mrb[0].mxu0 %v30_v25 }
  0x23   :  { %497 = vmatpush1.bf16.msra.mxu0 %v3052_v3  ;;  %528 = vmatprep.mubr.bf16.mxu0 %v3010_v2 }
  0x24   :  { %498 = vmatprep.subr.bf16.mxu0 %v3060_v4  ;;  %2671 = vmatmul.mubr.bf16.vlgmr.msra.gmra.mrb[0].mxu1 %v30_v25 }
  0x25   :  { %2690 = vmatprep.mubr.msk.bf16.mxu1 %vm3011_vm0, %v3009_v1  ;;  %2675 = vmatpush3.bf16.msra.mxu1 %v2849_v28 }
  0x26   :  { %2676 = vmatprep.subr.bf16.mxu1 %v3009_v1 }
  0x27   :  { %499 = vmatpush1.bf16.msra.mxu0 %v3066_v5 }
  0x28   :  { %500 = vmatprep.subr.bf16.mxu0 %v3072_v6 }
  0x29   :  { %2677 = vmatpush3.bf16.msra.mxu1 %v2850_v29 }
  0x2a   :  { %2678 = vmatprep.subr.bf16.mxu1 %v3009_v1 }
  0x2b   :  { %501 = vmatpush1.bf16.msra.mxu0 %v3078_v7 }
  0x2c   :  { %502 = vmatprep.subr.bf16.mxu0 %v3084_v8 }
  0x2d   :  { %2679 = vmatpush3.bf16.msra.mxu1 %v2851_v30 }
  0x2e   :  { %2680 = vmatprep.subr.bf16.mxu1 %v3009_v1 }
  0x2f   :  { %503 = vmatpush1.bf16.msra.mxu0 %v3093_v10 }
  0x30   :  { %504 = vmatprep.subr.bf16.mxu0 %v3099_v11 }
  0x31   :  { %2681 = vmatpush3.bf16.msra.mxu1 %v2852_v31 }
  0x32   :  { %2682 = vmatprep.subr.bf16.mxu1 %v3009_v1 }
  0x33   :  { %505 = vmatpush1.bf16.msra.mxu0 %v3108_v13 }
  0x34   :  { %506 = vmatprep.subr.bf16.mxu0 %v3114_v14 }
  0x35   :  { %2683 = vmatpush3.bf16.msra.mxu1 %v2853_v32  ;;  %v2858_v32 = vld [vmem:[%s3801_s2 + $0x20] ss:$12 sps:$4 sm:$0xff]  }
  0x36   :  { %2684 = vmatprep.subr.bf16.mxu1 %v3009_v1 }
  0x37   :  { %507 = vmatpush1.bf16.msra.mxu0 %v3124_v16 }
  0x38   :  { %508 = vmatprep.subr.bf16.mxu0 %v3130_v17 }
  0x39   :  { %2685 = vmatpush3.bf16.msra.mxu1 %v2854_v33  ;;  %v2859_v33 = vld [vmem:[%s3801_s2 + $0x38] ss:$12 sps:$4 sm:$0xff]  }
  0x3a   :  { %2686 = vmatprep.subr.bf16.mxu1 %v3009_v1 }
  0x3b   :  { %509 = vmatpush1.bf16.msra.mxu0 %v3139_v19 }
  0x3c   :  { %510 = vmatprep.subr.bf16.mxu0 %v3145_v20 }
  0x3d   :  { %2687 = vmatpush3.bf16.msra.mxu1 %v2855_v34  ;;  %v2861_v34 = vld [vmem:[%s3801_s2 + $0x68] ss:$12 sps:$4 sm:$0xff]  }
  0x3e   :  { %2688 = vmatprep.subr.bf16.mxu1 %v3009_v1 }
  0x3f   :  { %511 = vmatpush1.bf16.msra.mxu0 %v3155_v22 }
  0x40   :  { %785 = vmatprep.subr.bf16.mxu0 %v3045_v0 }
  0x41   :  { %2689 = vmatpush3.bf16.msra.mxu1 %v2856_v35  ;;  %v2862_v35 = vld [vmem:[%s3801_s2 + $0x80] ss:$12 sps:$4 sm:$0xff]  }
  0x42   :  { %2694 = vmatprep.subr.bf16.mxu1 %v3009_v1 }
  0xf5   :  { %v242_v44 = vpop.f32.mrb[0].mxu0 }
  0xf6   :  { %v243_v45 = vadd.f32 %v242_v44, %v68_v41  ;;  %v244_v46 = vpop.f32.mrb[1].mxu0  ;;  %v356_v41 = vrot.slane %v351_v39, %v3233_v38 }
  0xf7   :  { %v245_v47 = vadd.f32 %v244_v46, %v72_v42  ;;  %v246_v48 = vpop.f32.mrb[2].mxu0  ;;  %v283_v54 = vpop.f32.mrb[0].mxu1  ;;  %v360_v42 = vrot.slane %v351_v39, %v3238_v40 }
  0xf8   :  { %v289_v49 = vadd.f32 %v243_v45, %v26_v43  ;;  %v247_v51 = vpop.f32.mrb[3].mxu0  ;;  %v2672_v56 = vpop.f32.mrb[1].mxu1  ;;  %v284_v12 = vadd.f32 %v283_v54, %v76_v62  ;;  %v2372_v43 = vld [vmem:[%s3804_s0 + $0x18] sm:$0xff] }
  0xf9   :  { %v296_v53 = vadd.f32 %v245_v47, %v27_v50  ;;  %v286_v57 = vpop.f32.mrb[2].mxu1 }
  0xfa   :  { %v2370_v52 = vmul.f32 -1.442695, %v289_v49  ;;  %v2673_v58 = vpop.f32.mrb[3].mxu1 }
  0xfb   :  { %v2371_v55 = vmul.f32 -1.442695, %v296_v53  ;;  %v2373_v53 = vld [vmem:[%s3804_s0 + $0x20] sm:$0xff] }
  0xfc   :  { %2929 = vpow2.f32 %v2370_v52 }
  0xfd   :  { %2931 = vpow2.f32 %v2371_v55 }
 0x106   :  { %v2930_v59 = vpop.eup %2929 }
 0x107   :  { %v293_v60 = vadd.f32 1.0, %v2930_v59  ;;  %v2932_v63 = vpop.eup %2931 }
 0x108   :  { %v300_v9 = vadd.f32 1.0, %v2932_v63  ;;  %v364_v63 = vrot.slane %v351_v39, %v3248_v61 }
 0x109   :  { %2933 = vrcp.f32 %v293_v60 }
 0x10a   :  { %2935 = vrcp.f32 %v300_v9 }
 0x113   :  { %v2934_v15 = vpop.eup %2933 }
 0x114   :  { %v303_v21 = vmul.f32 %v2934_v15, %v284_v12  ;;  %v2936_v25 = vpop.eup %2935 }
 0x115   :  { %v306_v26 = vsub.f32 1.0, %v2936_v25  ;;  %v308_v29 = vmul.f32 %v2936_v25, %v3160_v23  ;;  %v2857_v23 = vld [vmem:[%s3801_s2 + $0x8] ss:$12 sps:$4 sm:$0xff]  }
 0x116   :  { %v304_v24 = vadd.f32 %v303_v21, %v28_v18  ;;  %v2374_v18 = vld [vmem:[%s3804_s0 + $0x28] sm:$0xff] }
 0x118   :  { %2937 = vtanh.f32 %v304_v24 }
 0x122   :  { %v2938_v27 = vpop.eup %2937 }
 0x123   :  { %v307_v28 = vmul.f32 %v2938_v27, %v306_v26 }
 0x125   :  { %v3255_v30 = vadd.f32 %v308_v29, %v307_v28 }
 0x127   :  { %v311_v31 = vpack.c.bf16 %v3255_v30, %v3255_v30 }
 0x129   :  { %312 = vst [vmem:[%s3805_s4] sm:$0xf] %v311_v31  ;;  %529 = vmatmul.mubr.bf16.vlgmr.msra.gmra.mrb[4].mxu0 %v311_v31  ;;  %2691 = vmatmul.mubr.bf16.vlgmr.msra.gmra.mrb[4].mxu1 %v311_v31 }
 0x12a   :  { %786 = vmatpush1.bf16.msra.mxu0 %v3052_v3  ;;  %817 = vmatprep.mubr.bf16.mxu0 %v3010_v2 }
 0x12b   :  { %787 = vmatprep.subr.bf16.mxu0 %v3060_v4  ;;  %2710 = vmatprep.mubr.msk.bf16.mxu1 %vm3011_vm0, %v3009_v1 }
 0x12c   :  { %2695 = vmatpush3.bf16.msra.mxu1 %v2857_v23 }
 0x12d   :  { %2696 = vmatprep.subr.bf16.mxu1 %v3009_v1 }
 0x12e   :  { %788 = vmatpush1.bf16.msra.mxu0 %v3066_v5 }
 0x12f   :  { %789 = vmatprep.subr.bf16.mxu0 %v3072_v6 }
 0x130   :  { %2697 = vmatpush3.bf16.msra.mxu1 %v2858_v32 }
 0x131   :  { %2698 = vmatprep.subr.bf16.mxu1 %v3009_v1 }
 0x132   :  { %790 = vmatpush1.bf16.msra.mxu0 %v3078_v7 }
 0x133   :  { %791 = vmatprep.subr.bf16.mxu0 %v3084_v8 }
 0x134   :  { %2699 = vmatpush3.bf16.msra.mxu1 %v2859_v33 }
 0x135   :  { %2700 = vmatprep.subr.bf16.mxu1 %v3009_v1 }
 0x136   :  { %792 = vmatpush1.bf16.msra.mxu0 %v3093_v10 }
 0x137   :  { %793 = vmatprep.subr.bf16.mxu0 %v3099_v11 }
 0x13a   :  { %794 = vmatpush1.bf16.msra.mxu0 %v3108_v13 }
 0x13b   :  { %795 = vmatprep.subr.bf16.mxu0 %v3114_v14 }
 0x13e   :  { %796 = vmatpush1.bf16.msra.mxu0 %v3124_v16 }
 0x13f   :  { %797 = vmatprep.subr.bf16.mxu0 %v3130_v17 }
 0x142   :  { %798 = vmatpush1.bf16.msra.mxu0 %v3139_v19 }
 0x143   :  { %799 = vmatprep.subr.bf16.mxu0 %v3145_v20 }
 0x146   :  { %800 = vmatpush1.bf16.msra.mxu0 %v3155_v22 }
 0x147   :  { %1074 = vmatprep.subr.bf16.mxu0 %v3045_v0  ;;  %v2860_v0 = vld [vmem:[%s3801_s2 + $0x50] ss:$12 sps:$4 sm:$0xff]  }
 0x148   :  { %2701 = vmatpush3.bf16.msra.mxu1 %v2860_v0 }
 0x149   :  { %2702 = vmatprep.subr.bf16.mxu1 %v3009_v1 }
 0x14c   :  { %2703 = vmatpush3.bf16.msra.mxu1 %v2861_v34 }
 0x14d   :  { %2704 = vmatprep.subr.bf16.mxu1 %v3009_v1 }
 0x150   :  { %2705 = vmatpush3.bf16.msra.mxu1 %v2862_v35 }
 0x151   :  { %2706 = vmatprep.subr.bf16.mxu1 %v3009_v1 }
 0x154   :  { %2707 = vmatpush3.bf16.msra.mxu1 %v2863_v36  ;;  %v2403_v36 = vld [vmem:[%s3804_s0 + $0x38] sm:$0xff] }
 0x155   :  { %2708 = vmatprep.subr.bf16.mxu1 %v3009_v1 }
 0x158   :  { %2709 = vmatpush3.bf16.msra.mxu1 %v2864_v37 }
 0x159   :  { %2714 = vmatprep.subr.bf16.mxu1 %v3009_v1 }
 0x1fc   :  { %v530_v44 = vpop.f32.mrb[4].mxu0  ;;  %v571_v45 = vpop.f32.mrb[4].mxu1 }
 0x1fd   :  { %v531_v46 = vadd.f32 %v530_v44, %v356_v41  ;;  %v532_v47 = vpop.f32.mrb[5].mxu0  ;;  %v2692_v48 = vpop.f32.mrb[5].mxu1  ;;  %v572_v12 = vadd.f32 %v571_v45, %v364_v63  ;;  %v3420_v63 = vld [vmem:[%s3801_s2] ss:$12 sps:$4 sm:$0xff]  }
 0x1fe   :  { %v533_v49 = vadd.f32 %v532_v47, %v360_v42  ;;  %v534_v50 = vpop.f32.mrb[6].mxu0  ;;  %v574_v51 = vpop.f32.mrb[6].mxu1 }
 0x1ff   :  { %v577_v52 = vadd.f32 %v2372_v43, %v531_v46  ;;  %v535_v54 = vpop.f32.mrb[7].mxu0  ;;  %v2693_v55 = vpop.f32.mrb[7].mxu1  ;;  %v2404_v51 = vld [vmem:[%s3804_s0 + $0x40] sm:$0xff] }
 0x200   :  { %v584_v57 = vadd.f32 %v2373_v53, %v533_v49 }
 0x201   :  { %v2399_v56 = vmul.f32 -1.442695, %v577_v52 }
 0x202   :  { %v2400_v58 = vmul.f32 -1.442695, %v584_v57 }
 0x203   :  { %2939 = vpow2.f32 %v2399_v56 }
 0x204   :  { %2941 = vpow2.f32 %v2400_v58 }
 0x20d   :  { %v2940_v59 = vpop.eup %2939 }
 0x20e   :  { %v581_v60 = vadd.f32 1.0, %v2940_v59  ;;  %v2942_v62 = vpop.eup %2941 }
 0x20f   :  { %v588_v9 = vadd.f32 1.0, %v2942_v62  ;;  %v3415_v62 = vld [vmem:[%s3801_s2 + $0x4] ss:$12 sps:$4 sm:$0xff]  }
 0x210   :  { %2943 = vrcp.f32 %v581_v60 }
 0x211   :  { %2945 = vrcp.f32 %v588_v9  ;;  %v2876_v9 = vld [vmem:[%s3801_s2 + $0x8] ss:$12 sps:$4 sm:$0xff]  }
 0x21a   :  { %v2944_v15 = vpop.eup %2943 }
 0x21b   :  { %v591_v21 = vmul.f32 %v2944_v15, %v572_v12  ;;  %v2946_v25 = vpop.eup %2945  ;;  %v3430_v12 = vld [vmem:[%s3801_s2 + $0x1c] ss:$12 sps:$4 sm:$0xff]   ;;  %v3436_v15 = vld [vmem:[%s3801_s2 + $0x18] ss:$12 sps:$4 sm:$0xff]  }
 0x21c   :  { %v594_v26 = vsub.f32 1.0, %v2946_v25  ;;  %v596_v29 = vmul.f32 %v2946_v25, %v3255_v30  ;;  %v2884_v25 = vld [vmem:[%s3801_s2 + $0x38] ss:$12 sps:$4 sm:$0xff]  }
 0x21d   :  { %v592_v24 = vadd.f32 %v2374_v18, %v591_v21  ;;  %v2880_v18 = vld [vmem:[%s3801_s2 + $0x20] ss:$12 sps:$4 sm:$0xff]  }
 0x21e   :  { %v3446_v21 = vld [vmem:[%s3801_s2 + $0x34] ss:$12 sps:$4 sm:$0xff]  }
 0x21f   :  { %2947 = vtanh.f32 %v592_v24  ;;  %v3452_v24 = vld [vmem:[%s3801_s2 + $0x30] ss:$12 sps:$4 sm:$0xff]  }
 0x229   :  { %v2948_v27 = vpop.eup %2947 }
 0x22a   :  { %v595_v28 = vmul.f32 %v2948_v27, %v594_v26  ;;  %v3462_v26 = vld [vmem:[%s3801_s2 + $0x4c] ss:$12 sps:$4 sm:$0xff]   ;;  %v3468_v27 = vld [vmem:[%s3801_s2 + $0x48] ss:$12 sps:$4 sm:$0xff]  }
 0x22c   :  { %v3329_v31 = vadd.f32 %v596_v29, %v595_v28  ;;  %v2888_v28 = vld [vmem:[%s3801_s2 + $0x50] ss:$12 sps:$4 sm:$0xff]  }
 0x22d   :  { %v3478_v29 = vld [vmem:[%s3801_s2 + $0x64] ss:$12 sps:$4 sm:$0xff]  }
 0x22e   :  { %v599_v23 = vpack.c.bf16 %v3329_v31, %v3329_v31 }
 0x230   :  { %2401 = vst [vmem:[%s3805_s4 + $0x4] sm:$0xf] %v599_v23  ;;  %818 = vmatmul.mubr.bf16.vlgmr.msra.gmra.mrb[8].mxu0 %v599_v23  ;;  %2711 = vmatmul.mubr.bf16.vlgmr.msra.gmra.mrb[8].mxu1 %v599_v23  ;;  %v2892_v23 = vld [vmem:[%s3801_s2 + $0x68] ss:$12 sps:$4 sm:$0xff]  }
 0x231   :  { %1075 = vmatpush1.bf16.msra.mxu0 %v3052_v3  ;;  %1106 = vmatprep.mubr.bf16.mxu0 %v3010_v2  ;;  %v2865_v3 = vld [vmem:[%s3801_s2 + $0x8] ss:$12 sps:$4 sm:$0xff]  }
 0x232   :  { %1076 = vmatprep.subr.bf16.mxu0 %v3060_v4  ;;  %2730 = vmatprep.mubr.msk.bf16.mxu1 %vm3011_vm0, %v3009_v1  ;;  %v2866_v4 = vld [vmem:[%s3801_s2 + $0x20] ss:$12 sps:$4 sm:$0xff]  }
 0x233   :  { %2715 = vmatpush3.bf16.msra.mxu1 %v2865_v3  ;;  %v3493_v3 = vld [vmem:[%s3801_s2 + $0x7c] ss:$12 sps:$4 sm:$0xff]  }
 0x234   :  { %2716 = vmatprep.subr.bf16.mxu1 %v3009_v1 }
 0x235   :  { %1077 = vmatpush1.bf16.msra.mxu0 %v3066_v5  ;;  %v2867_v5 = vld [vmem:[%s3801_s2 + $0x38] ss:$12 sps:$4 sm:$0xff]  }
 0x236   :  { %1078 = vmatprep.subr.bf16.mxu0 %v3072_v6  ;;  %v2868_v6 = vld [vmem:[%s3801_s2 + $0x50] ss:$12 sps:$4 sm:$0xff]  }
 0x237   :  { %2717 = vmatpush3.bf16.msra.mxu1 %v2866_v4  ;;  %v3499_v4 = vld [vmem:[%s3801_s2 + $0x78] ss:$12 sps:$4 sm:$0xff]  }
 0x238   :  { %2718 = vmatprep.subr.bf16.mxu1 %v3009_v1 }
 0x239   :  { %1079 = vmatpush1.bf16.msra.mxu0 %v3078_v7  ;;  %v2869_v7 = vld [vmem:[%s3801_s2 + $0x68] ss:$12 sps:$4 sm:$0xff]  }
 0x23a   :  { %1080 = vmatprep.subr.bf16.mxu0 %v3084_v8  ;;  %v2870_v8 = vld [vmem:[%s3801_s2 + $0x80] ss:$12 sps:$4 sm:$0xff]  }
 0x23b   :  { %2719 = vmatpush3.bf16.msra.mxu1 %v2867_v5  ;;  %v2896_v5 = vld [vmem:[%s3801_s2 + $0x80] ss:$12 sps:$4 sm:$0xff]  }
 0x23c   :  { %2720 = vmatprep.subr.bf16.mxu1 %v3009_v1 }
 0x23d   :  { %1081 = vmatpush1.bf16.msra.mxu0 %v3093_v10  ;;  %v2871_v10 = vld [vmem:[%s3801_s2 + $0x98] ss:$12 sps:$4 sm:$0xff]  }
 0x23e   :  { %1082 = vmatprep.subr.bf16.mxu0 %v3099_v11  ;;  %v2872_v11 = vld [vmem:[%s3801_s2 + $0xb0] ss:$12 sps:$4 sm:$0xff]  }
 0x23f   :  { %2721 = vmatpush3.bf16.msra.mxu1 %v2868_v6  ;;  %v3509_v6 = vld [vmem:[%s3801_s2 + $0x94] ss:$12 sps:$4 sm:$0xff]  }
 0x240   :  { %2722 = vmatprep.subr.bf16.mxu1 %v3009_v1 }
 0x241   :  { %1083 = vmatpush1.bf16.msra.mxu0 %v3108_v13  ;;  %v640_v13 = vld [vmem:[%s3803_s3] sm:$0x7] }
 0x242   :  { %1084 = vmatprep.subr.bf16.mxu0 %v3114_v14  ;;  %v645_v14 = vrot.slane %v640_v13, %v3233_v38  ;;  %v653_v47 = vrot.slane %v640_v13, %v3248_v61 }
 0x243   :  { %2723 = vmatpush3.bf16.msra.mxu1 %v2869_v7  ;;  %v3515_v7 = vld [vmem:[%s3801_s2 + $0x90] ss:$12 sps:$4 sm:$0xff]  }
 0x244   :  { %2724 = vmatprep.subr.bf16.mxu1 %v3009_v1 }
 0x245   :  { %1085 = vmatpush1.bf16.msra.mxu0 %v3124_v16  ;;  %v649_v16 = vrot.slane %v640_v13, %v3238_v40  ;;  %v2904_v13 = vld [vmem:[%s3801_s2 + $0xb0] ss:$12 sps:$4 sm:$0xff]  }
 0x246   :  { %1086 = vmatprep.subr.bf16.mxu0 %v3130_v17  ;;  %v2402_v17 = vld [vmem:[%s3804_s0 + $0x30] sm:$0xff] }
 0x247   :  { %2725 = vmatpush3.bf16.msra.mxu1 %v2870_v8  ;;  %v2900_v8 = vld [vmem:[%s3801_s2 + $0x98] ss:$12 sps:$4 sm:$0xff]  }
 0x248   :  { %2726 = vmatprep.subr.bf16.mxu1 %v3009_v1 }
 0x249   :  { %1087 = vmatpush1.bf16.msra.mxu0 %v3139_v19 }
 0x24a   :  { %1088 = vmatprep.subr.bf16.mxu0 %v3145_v20 }
 0x24b   :  { %2727 = vmatpush3.bf16.msra.mxu1 %v2871_v10  ;;  %v3525_v10 = vld [vmem:[%s3801_s2 + $0xac] ss:$12 sps:$4 sm:$0xff]  }
 0x24c   :  { %2728 = vmatprep.subr.bf16.mxu1 %v3009_v1 }
 0x24d   :  { %1089 = vmatpush1.bf16.msra.mxu0 %v3155_v22 }
 0x24e   :  { %1363 = vmatprep.subr.bf16.mxu0 %v3415_v62 }
 0x24f   :  { %2729 = vmatpush3.bf16.msra.mxu1 %v2872_v11  ;;  %v3531_v11 = vld [vmem:[%s3801_s2 + $0xa8] ss:$12 sps:$4 sm:$0xff]  }
 0x250   :  { %2734 = vmatprep.subr.bf16.mxu1 %v3009_v1 }
 0x303   :  { %v819_v19 = vpop.f32.mrb[8].mxu0  ;;  %v860_v20 = vpop.f32.mrb[8].mxu1 }
 0x304   :  { %v820_v22 = vadd.f32 %v819_v19, %v645_v14  ;;  %v821_v30 = vpop.f32.mrb[9].mxu0  ;;  %v2712_v32 = vpop.f32.mrb[9].mxu1  ;;  %v861_v49 = vadd.f32 %v860_v20, %v653_v47  ;;  %v929_v14 = vld [vmem:[%s3803_s3] sm:$0x7]  ;;  %v2432_v19 = vld [vmem:[%s3804_s0 + $0x48] sm:$0xff] }
 0x305   :  { %v822_v33 = vadd.f32 %v821_v30, %v649_v16  ;;  %v823_v0 = vpop.f32.mrb[10].mxu0  ;;  %v863_v34 = vpop.f32.mrb[10].mxu1  ;;  %v934_v16 = vrot.slane %v929_v14, %v3233_v38 }
 0x306   :  { %v866_v35 = vadd.f32 %v2402_v17, %v820_v22  ;;  %v824_v37 = vpop.f32.mrb[11].mxu0  ;;  %v2713_v39 = vpop.f32.mrb[11].mxu1  ;;  %v938_v17 = vrot.slane %v929_v14, %v3238_v40 }
 0x307   :  { %v873_v42 = vadd.f32 %v2403_v36, %v822_v33  ;;  %v2433_v37 = vld [vmem:[%s3804_s0 + $0x50] sm:$0xff] }
 0x308   :  { %v2429_v41 = vmul.f32 -1.442695, %v866_v35 }
 0x309   :  { %v2430_v43 = vmul.f32 -1.442695, %v873_v42 }
 0x30a   :  { %2949 = vpow2.f32 %v2429_v41 }
 0x30b   :  { %2951 = vpow2.f32 %v2430_v43 }
 0x314   :  { %v2950_v44 = vpop.eup %2949 }
 0x315   :  { %v870_v45 = vadd.f32 1.0, %v2950_v44  ;;  %v2952_v46 = vpop.eup %2951 }
 0x316   :  { %v877_v48 = vadd.f32 1.0, %v2952_v46 }
 0x317   :  { %2953 = vrcp.f32 %v870_v45 }
 0x318   :  { %2955 = vrcp.f32 %v877_v48  ;;  %v942_v48 = vrot.slane %v929_v14, %v3248_v61  ;;  %v2912_v14 = vld [vmem:[%s3801_s2 + $0xb0] ss:$12 sps:$4 sm:$0xff]  }
 0x321   :  { %v2954_v50 = vpop.eup %2953 }
 0x322   :  { %v880_v52 = vmul.f32 %v2954_v50, %v861_v49  ;;  %v2956_v54 = vpop.eup %2955 }
 0x323   :  { %v883_v55 = vsub.f32 1.0, %v2956_v54  ;;  %v885_v58 = vmul.f32 %v2956_v54, %v3329_v31  ;;  %v3484_v31 = vld [vmem:[%s3801_s2 + $0x60] ss:$12 sps:$4 sm:$0xff]  }
 0x324   :  { %v881_v53 = vadd.f32 %v2404_v51, %v880_v52  ;;  %v2434_v52 = vld [vmem:[%s3804_s0 + $0x58] sm:$0xff] }
 0x326   :  { %2957 = vtanh.f32 %v881_v53 }
 0x330   :  { %v2958_v56 = vpop.eup %2957 }
 0x331   :  { %v884_v57 = vmul.f32 %v2958_v56, %v883_v55 }
 0x333   :  { %v3402_v59 = vadd.f32 %v885_v58, %v884_v57 }
 0x335   :  { %v888_v60 = vpack.c.bf16 %v3402_v59, %v3402_v59 }
 0x337   :  { %2431 = vst [vmem:[%s3805_s4 + $0x8] sm:$0xf] %v888_v60  ;;  %1107 = vmatmul.mubr.bf16.vlgmr.msra.gmra.mrb[12].mxu0 %v888_v60  ;;  %2731 = vmatmul.mubr.bf16.vlgmr.msra.gmra.mrb[12].mxu1 %v888_v60 }
 0x338   :  { %1395 = vmatprep.mubr.bf16.mxu0 %v3010_v2  ;;  %2750 = vmatprep.mubr.msk.bf16.mxu1 %vm3011_vm0, %v3009_v1 }
 0x339   :  { %1364 = vmatpush1.bf16.msra.mxu0 %v3420_v63  ;;  %2735 = vmatpush3.bf16.msra.mxu1 %v2876_v9 }
 0x33a   :  { %2736 = vmatprep.subr.bf16.mxu1 %v3009_v1  ;;  %1365 = vmatprep.subr.bf16.mxu0 %v3430_v12 }
 0x33d   :  { %1366 = vmatpush1.bf16.msra.mxu0 %v3436_v15  ;;  %2737 = vmatpush3.bf16.msra.mxu1 %v2880_v18 }
 0x33e   :  { %2738 = vmatprep.subr.bf16.mxu1 %v3009_v1  ;;  %1367 = vmatprep.subr.bf16.mxu0 %v3446_v21 }
 0x341   :  { %1368 = vmatpush1.bf16.msra.mxu0 %v3452_v24  ;;  %2739 = vmatpush3.bf16.msra.mxu1 %v2884_v25  ;;  %v2906_v25 = vld [vmem:[%s3801_s2 + $0x20] ss:$12 sps:$4 sm:$0xff]  }
 0x342   :  { %2740 = vmatprep.subr.bf16.mxu1 %v3009_v1  ;;  %1369 = vmatprep.subr.bf16.mxu0 %v3462_v26 }
 0x345   :  { %1370 = vmatpush1.bf16.msra.mxu0 %v3468_v27  ;;  %2741 = vmatpush3.bf16.msra.mxu1 %v2888_v28  ;;  %v2907_v28 = vld [vmem:[%s3801_s2 + $0x38] ss:$12 sps:$4 sm:$0xff]  }
 0x346   :  { %2742 = vmatprep.subr.bf16.mxu1 %v3009_v1  ;;  %1371 = vmatprep.subr.bf16.mxu0 %v3478_v29 }
 0x349   :  { %1372 = vmatpush1.bf16.msra.mxu0 %v3484_v31  ;;  %2743 = vmatpush3.bf16.msra.mxu1 %v2892_v23  ;;  %v2908_v23 = vld [vmem:[%s3801_s2 + $0x50] ss:$12 sps:$4 sm:$0xff]  }
 0x34a   :  { %1373 = vmatprep.subr.bf16.mxu0 %v3493_v3  ;;  %2744 = vmatprep.subr.bf16.mxu1 %v3009_v1 }
 0x34d   :  { %1374 = vmatpush1.bf16.msra.mxu0 %v3499_v4  ;;  %2745 = vmatpush3.bf16.msra.mxu1 %v2896_v5  ;;  %v2909_v5 = vld [vmem:[%s3801_s2 + $0x68] ss:$12 sps:$4 sm:$0xff]  }
 0x34e   :  { %1375 = vmatprep.subr.bf16.mxu0 %v3509_v6  ;;  %2746 = vmatprep.subr.bf16.mxu1 %v3009_v1 }
 0x351   :  { %1376 = vmatpush1.bf16.msra.mxu0 %v3515_v7  ;;  %2747 = vmatpush3.bf16.msra.mxu1 %v2900_v8  ;;  %v2910_v8 = vld [vmem:[%s3801_s2 + $0x80] ss:$12 sps:$4 sm:$0xff]  }
 0x352   :  { %1377 = vmatprep.subr.bf16.mxu0 %v3525_v10  ;;  %2748 = vmatprep.subr.bf16.mxu1 %v3009_v1 }
 0x355   :  { %1378 = vmatpush1.bf16.msra.mxu0 %v3531_v11  ;;  %2749 = vmatpush3.bf16.msra.mxu1 %v2904_v13  ;;  %v2911_v13 = vld [vmem:[%s3801_s2 + $0x98] ss:$12 sps:$4 sm:$0xff]  }
 0x356   :  { %1652 = vmatprep.subr.bf16.mxu0 %v3415_v62  ;;  %2754 = vmatprep.subr.bf16.mxu1 %v3009_v1 }
 0x40a   :  { %v1108_v20 = vpop.f32.mrb[12].mxu0  ;;  %v1149_v22 = vpop.f32.mrb[12].mxu1 }
 0x40b   :  { %v1109_v30 = vadd.f32 %v1108_v20, %v934_v16  ;;  %v1110_v32 = vpop.f32.mrb[13].mxu0  ;;  %v2732_v33 = vpop.f32.mrb[13].mxu1  ;;  %v1150_v50 = vadd.f32 %v1149_v22, %v942_v48  ;;  %v1218_v16 = vld [vmem:[%s3803_s3] sm:$0x7] }
 0x40c   :  { %v1111_v0 = vadd.f32 %v1110_v32, %v938_v17  ;;  %v1112_v34 = vpop.f32.mrb[14].mxu0  ;;  %v1152_v35 = vpop.f32.mrb[14].mxu1  ;;  %v1223_v17 = vrot.slane %v1218_v16, %v3233_v38  ;;  %v2462_v20 = vld [vmem:[%s3804_s0 + $0x60] sm:$0xff] }
 0x40d   :  { %v1155_v36 = vadd.f32 %v2432_v19, %v1109_v30  ;;  %v1113_v39 = vpop.f32.mrb[15].mxu0  ;;  %v2733_v41 = vpop.f32.mrb[15].mxu1  ;;  %v1227_v19 = vrot.slane %v1218_v16, %v3238_v40 }
 0x40e   :  { %v1162_v43 = vadd.f32 %v2433_v37, %v1111_v0  ;;  %v2463_v39 = vld [vmem:[%s3804_s0 + $0x68] sm:$0xff] }
 0x40f   :  { %v2459_v42 = vmul.f32 -1.442695, %v1155_v36 }
 0x410   :  { %v2460_v44 = vmul.f32 -1.442695, %v1162_v43 }
 0x411   :  { %2959 = vpow2.f32 %v2459_v42 }
 0x412   :  { %2961 = vpow2.f32 %v2460_v44 }
 0x41b   :  { %v2960_v45 = vpop.eup %2959 }
 0x41c   :  { %v1159_v46 = vadd.f32 1.0, %v2960_v45  ;;  %v2962_v47 = vpop.eup %2961 }
 0x41d   :  { %v1166_v49 = vadd.f32 1.0, %v2962_v47 }
 0x41e   :  { %2963 = vrcp.f32 %v1159_v46 }
 0x41f   :  { %2965 = vrcp.f32 %v1166_v49  ;;  %v1231_v49 = vrot.slane %v1218_v16, %v3248_v61  ;;  %v1507_v16 = vld [vmem:[%s3803_s3] sm:$0x7] }
 0x428   :  { %v2964_v51 = vpop.eup %2963 }
 0x429   :  { %v1169_v53 = vmul.f32 %v2964_v51, %v1150_v50  ;;  %v2966_v55 = vpop.eup %2965 }
 0x42a   :  { %v1172_v56 = vsub.f32 1.0, %v2966_v55  ;;  %v1174_v60 = vmul.f32 %v2966_v55, %v3402_v59  ;;  %v2905_v59 = vld [vmem:[%s3801_s2 + $0x8] ss:$12 sps:$4 sm:$0xff]  }
 0x42b   :  { %v1170_v54 = vadd.f32 %v2434_v52, %v1169_v53  ;;  %v2464_v53 = vld [vmem:[%s3804_s0 + $0x70] sm:$0xff] }
 0x42d   :  { %2967 = vtanh.f32 %v1170_v54 }
 0x437   :  { %v2968_v57 = vpop.eup %2967 }
 0x438   :  { %v1173_v58 = vmul.f32 %v2968_v57, %v1172_v56 }
 0x43a   :  { %v3557_v9 = vadd.f32 %v1174_v60, %v1173_v58 }
 0x43c   :  { %v1177_v18 = vpack.c.bf16 %v3557_v9, %v3557_v9 }
 0x43e   :  { %2461 = vst [vmem:[%s3805_s4 + $0xc] sm:$0xf] %v1177_v18  ;;  %1396 = vmatmul.mubr.bf16.vlgmr.msra.gmra.mrb[16].mxu0 %v1177_v18  ;;  %2751 = vmatmul.mubr.bf16.vlgmr.msra.gmra.mrb[16].mxu1 %v1177_v18 }
 0x43f   :  { %1653 = vmatpush1.bf16.msra.mxu0 %v3420_v63  ;;  %1684 = vmatprep.mubr.bf16.mxu0 %v3010_v2 }
 0x440   :  { %1654 = vmatprep.subr.bf16.mxu0 %v3430_v12  ;;  %2770 = vmatprep.mubr.msk.bf16.mxu1 %vm3011_vm0, %v3009_v1 }
 0x441   :  { %2755 = vmatpush3.bf16.msra.mxu1 %v2905_v59 }
 0x442   :  { %2756 = vmatprep.subr.bf16.mxu1 %v3009_v1 }
 0x443   :  { %1655 = vmatpush1.bf16.msra.mxu0 %v3436_v15 }
 0x444   :  { %1656 = vmatprep.subr.bf16.mxu0 %v3446_v21 }
 0x445   :  { %2757 = vmatpush3.bf16.msra.mxu1 %v2906_v25 }
 0x446   :  { %2758 = vmatprep.subr.bf16.mxu1 %v3009_v1 }
 0x447   :  { %1657 = vmatpush1.bf16.msra.mxu0 %v3452_v24 }
 0x448   :  { %1658 = vmatprep.subr.bf16.mxu0 %v3462_v26 }
 0x449   :  { %2759 = vmatpush3.bf16.msra.mxu1 %v2907_v28  ;;  %v2914_v28 = vld [vmem:[%s3801_s2 + $0x20] ss:$12 sps:$4 sm:$0xff]  }
 0x44a   :  { %2760 = vmatprep.subr.bf16.mxu1 %v3009_v1 }
 0x44b   :  { %1659 = vmatpush1.bf16.msra.mxu0 %v3468_v27 }
 0x44c   :  { %1660 = vmatprep.subr.bf16.mxu0 %v3478_v29 }
 0x44d   :  { %2761 = vmatpush3.bf16.msra.mxu1 %v2908_v23  ;;  %v2915_v23 = vld [vmem:[%s3801_s2 + $0x38] ss:$12 sps:$4 sm:$0xff]  }
 0x44e   :  { %2762 = vmatprep.subr.bf16.mxu1 %v3009_v1 }
 0x44f   :  { %1661 = vmatpush1.bf16.msra.mxu0 %v3484_v31 }
 0x450   :  { %1662 = vmatprep.subr.bf16.mxu0 %v3493_v3 }
 0x451   :  { %2763 = vmatpush3.bf16.msra.mxu1 %v2909_v5  ;;  %v2917_v5 = vld [vmem:[%s3801_s2 + $0x68] ss:$12 sps:$4 sm:$0xff]  }
 0x452   :  { %2764 = vmatprep.subr.bf16.mxu1 %v3009_v1 }
 0x453   :  { %1663 = vmatpush1.bf16.msra.mxu0 %v3499_v4 }
 0x454   :  { %1664 = vmatprep.subr.bf16.mxu0 %v3509_v6 }
 0x455   :  { %2765 = vmatpush3.bf16.msra.mxu1 %v2910_v8  ;;  %v2918_v8 = vld [vmem:[%s3801_s2 + $0x80] ss:$12 sps:$4 sm:$0xff]  }
 0x456   :  { %2766 = vmatprep.subr.bf16.mxu1 %v3009_v1 }
 0x457   :  { %1665 = vmatpush1.bf16.msra.mxu0 %v3515_v7 }
 0x458   :  { %1666 = vmatprep.subr.bf16.mxu0 %v3525_v10 }
 0x459   :  { %2767 = vmatpush3.bf16.msra.mxu1 %v2911_v13  ;;  %v2919_v13 = vld [vmem:[%s3801_s2 + $0x98] ss:$12 sps:$4 sm:$0xff]  }
 0x45a   :  { %2768 = vmatprep.subr.bf16.mxu1 %v3009_v1 }
 0x45b   :  { %1667 = vmatpush1.bf16.msra.mxu0 %v3531_v11 }
 0x45c   :  { %1941 = vmatprep.subr.bf16.mxu0 %v3415_v62 }
 0x45d   :  { %2769 = vmatpush3.bf16.msra.mxu1 %v2912_v14  ;;  %v2920_v14 = vld [vmem:[%s3801_s2 + $0xb0] ss:$12 sps:$4 sm:$0xff]  }
 0x45e   :  { %2774 = vmatprep.subr.bf16.mxu1 %v3009_v1 }
 0x511   :  { %v1397_v22 = vpop.f32.mrb[16].mxu0  ;;  %v1438_v30 = vpop.f32.mrb[16].mxu1 }
 0x512   :  { %v1398_v32 = vadd.f32 %v1397_v22, %v1223_v17  ;;  %v1399_v33 = vpop.f32.mrb[17].mxu0  ;;  %v2752_v0 = vpop.f32.mrb[17].mxu1  ;;  %v1439_v51 = vadd.f32 %v1438_v30, %v1231_v49  ;;  %v1512_v17 = vrot.slane %v1507_v16, %v3233_v38  ;;  %v1520_v49 = vrot.slane %v1507_v16, %v3248_v61 }
 0x513   :  { %v1400_v34 = vadd.f32 %v1399_v33, %v1227_v19  ;;  %v1401_v35 = vpop.f32.mrb[18].mxu0  ;;  %v1441_v36 = vpop.f32.mrb[18].mxu1  ;;  %v1516_v19 = vrot.slane %v1507_v16, %v3238_v40 }
 0x514   :  { %v1444_v37 = vadd.f32 %v2462_v20, %v1398_v32  ;;  %v1402_v41 = vpop.f32.mrb[19].mxu0  ;;  %v2753_v42 = vpop.f32.mrb[19].mxu1  ;;  %v2492_v20 = vld [vmem:[%s3804_s0 + $0x78] sm:$0xff] }
 0x515   :  { %v1451_v44 = vadd.f32 %v2463_v39, %v1400_v34  ;;  %v2493_v39 = vld [vmem:[%s3804_s0 + $0x80] sm:$0xff] }
 0x516   :  { %v2489_v43 = vmul.f32 -1.442695, %v1444_v37 }
 0x517   :  { %v2490_v45 = vmul.f32 -1.442695, %v1451_v44 }
 0x518   :  { %2969 = vpow2.f32 %v2489_v43 }
 0x519   :  { %2971 = vpow2.f32 %v2490_v45 }
 0x522   :  { %v2970_v46 = vpop.eup %2969 }
 0x523   :  { %v1448_v47 = vadd.f32 1.0, %v2970_v46  ;;  %v2972_v48 = vpop.eup %2971 }
 0x524   :  { %v1455_v50 = vadd.f32 1.0, %v2972_v48 }
 0x525   :  { %2973 = vrcp.f32 %v1448_v47 }
 0x526   :  { %2975 = vrcp.f32 %v1455_v50 }
 0x52f   :  { %v2974_v52 = vpop.eup %2973 }
 0x530   :  { %v1458_v54 = vmul.f32 %v2974_v52, %v1439_v51  ;;  %v2976_v56 = vpop.eup %2975 }
 0x531   :  { %v1461_v57 = vsub.f32 1.0, %v2976_v56  ;;  %v1463_v18 = vmul.f32 %v2976_v56, %v3557_v9  ;;  %v2913_v9 = vld [vmem:[%s3801_s2 + $0x8] ss:$12 sps:$4 sm:$0xff]  }
 0x532   :  { %v1459_v55 = vadd.f32 %v2464_v53, %v1458_v54  ;;  %v2494_v53 = vld [vmem:[%s3804_s0 + $0x88] sm:$0xff] }
 0x534   :  { %2977 = vtanh.f32 %v1459_v55 }
 0x53e   :  { %v2978_v58 = vpop.eup %2977 }
 0x53f   :  { %v1462_v60 = vmul.f32 %v2978_v58, %v1461_v57 }
 0x541   :  { %v3631_v59 = vadd.f32 %v1463_v18, %v1462_v60 }
 0x543   :  { %v1466_v25 = vpack.c.bf16 %v3631_v59, %v3631_v59 }
 0x545   :  { %2491 = vst [vmem:[%s3805_s4 + $0x10] sm:$0xf] %v1466_v25  ;;  %1685 = vmatmul.mubr.bf16.vlgmr.msra.gmra.mrb[20].mxu0 %v1466_v25  ;;  %2771 = vmatmul.mubr.bf16.vlgmr.msra.gmra.mrb[20].mxu1 %v1466_v25 }
 0x546   :  { %1942 = vmatpush1.bf16.msra.mxu0 %v3420_v63  ;;  %1973 = vmatprep.mubr.bf16.mxu0 %v3010_v2 }
 0x547   :  { %1943 = vmatprep.subr.bf16.mxu0 %v3430_v12  ;;  %2790 = vmatprep.mubr.msk.bf16.mxu1 %vm3011_vm0, %v3009_v1 }
 0x548   :  { %2775 = vmatpush3.bf16.msra.mxu1 %v2913_v9 }
 0x549   :  { %2776 = vmatprep.subr.bf16.mxu1 %v3009_v1 }
 0x54a   :  { %1944 = vmatpush1.bf16.msra.mxu0 %v3436_v15 }
 0x54b   :  { %1945 = vmatprep.subr.bf16.mxu0 %v3446_v21 }
 0x54c   :  { %2777 = vmatpush3.bf16.msra.mxu1 %v2914_v28 }
 0x54d   :  { %2778 = vmatprep.subr.bf16.mxu1 %v3009_v1 }
 0x54e   :  { %1946 = vmatpush1.bf16.msra.mxu0 %v3452_v24 }
 0x54f   :  { %1947 = vmatprep.subr.bf16.mxu0 %v3462_v26 }
 0x550   :  { %2779 = vmatpush3.bf16.msra.mxu1 %v2915_v23 }
 0x551   :  { %2780 = vmatprep.subr.bf16.mxu1 %v3009_v1 }
 0x552   :  { %1948 = vmatpush1.bf16.msra.mxu0 %v3468_v27 }
 0x553   :  { %1949 = vmatprep.subr.bf16.mxu0 %v3478_v29 }
 0x556   :  { %1950 = vmatpush1.bf16.msra.mxu0 %v3484_v31 }
 0x557   :  { %1951 = vmatprep.subr.bf16.mxu0 %v3493_v3 }
 0x55a   :  { %1952 = vmatpush1.bf16.msra.mxu0 %v3499_v4 }
 0x55b   :  { %1953 = vmatprep.subr.bf16.mxu0 %v3509_v6 }
 0x55e   :  { %1954 = vmatpush1.bf16.msra.mxu0 %v3515_v7 }
 0x55f   :  { %1955 = vmatprep.subr.bf16.mxu0 %v3525_v10 }
 0x562   :  { %1956 = vmatpush1.bf16.msra.mxu0 %v3531_v11 }
 0x563   :  { %2230 = vmatprep.subr.bf16.mxu0 %v3415_v62  ;;  %v2916_v62 = vld [vmem:[%s3801_s2 + $0x50] ss:$12 sps:$4 sm:$0xff]  }
 0x564   :  { %2781 = vmatpush3.bf16.msra.mxu1 %v2916_v62 }
 0x565   :  { %2782 = vmatprep.subr.bf16.mxu1 %v3009_v1 }
 0x568   :  { %2783 = vmatpush3.bf16.msra.mxu1 %v2917_v5  ;;  %v2523_v5 = vld [vmem:[%s3804_s0 + $0x98] sm:$0xff] }
 0x569   :  { %2784 = vmatprep.subr.bf16.mxu1 %v3009_v1 }
 0x56c   :  { %2785 = vmatpush3.bf16.msra.mxu1 %v2918_v8 }
 0x56d   :  { %2786 = vmatprep.subr.bf16.mxu1 %v3009_v1 }
 0x570   :  { %2787 = vmatpush3.bf16.msra.mxu1 %v2919_v13 }
 0x571   :  { %2788 = vmatprep.subr.bf16.mxu1 %v3009_v1 }
 0x574   :  { %2789 = vmatpush3.bf16.msra.mxu1 %v2920_v14 }
 0x575   :  { %2794 = vmatprep.subr.bf16.mxu1 %v3009_v1 }
 0x618   :  { %v1686_v22 = vpop.f32.mrb[20].mxu0  ;;  %v1727_v30 = vpop.f32.mrb[20].mxu1 }
 0x619   :  { %v1687_v32 = vadd.f32 %v1686_v22, %v1512_v17  ;;  %v1688_v33 = vpop.f32.mrb[21].mxu0  ;;  %v2772_v0 = vpop.f32.mrb[21].mxu1  ;;  %v1728_v51 = vadd.f32 %v1727_v30, %v1520_v49  ;;  %v2552_v49 = vld [vmem:[%s3804_s0 + $0xa8] sm:$0xff] }
 0x61a   :  { %v1689_v34 = vadd.f32 %v1688_v33, %v1516_v19  ;;  %v1690_v35 = vpop.f32.mrb[22].mxu0  ;;  %v1730_v36 = vpop.f32.mrb[22].mxu1 }
 0x61b   :  { %v1733_v37 = vadd.f32 %v2492_v20, %v1687_v32  ;;  %v1691_v41 = vpop.f32.mrb[23].mxu0  ;;  %v2773_v42 = vpop.f32.mrb[23].mxu1 }
 0x61c   :  { %v1740_v44 = vadd.f32 %v2493_v39, %v1689_v34  ;;  %v2524_v34 = vld [vmem:[%s3804_s0 + $0xa0] sm:$0xff] }
 0x61d   :  { %v2519_v43 = vmul.f32 -1.442695, %v1733_v37 }
 0x61e   :  { %v2520_v45 = vmul.f32 -1.442695, %v1740_v44 }
 0x61f   :  { %2979 = vpow2.f32 %v2519_v43 }
 0x620   :  { %2981 = vpow2.f32 %v2520_v45 }
 0x629   :  { %v2980_v46 = vpop.eup %2979 }
 0x62a   :  { %v1737_v47 = vadd.f32 1.0, %v2980_v46  ;;  %v2982_v48 = vpop.eup %2981  ;;  %v2085_v46 = vld [vmem:[%s3803_s3] sm:$0x7] }
 0x62b   :  { %v1744_v50 = vadd.f32 1.0, %v2982_v48  ;;  %v2094_v48 = vrot.slane %v2085_v46, %v3238_v40 }
 0x62c   :  { %2983 = vrcp.f32 %v1737_v47  ;;  %v2090_v47 = vrot.slane %v2085_v46, %v3233_v38 }
 0x62d   :  { %2985 = vrcp.f32 %v1744_v50 }
 0x636   :  { %v2984_v52 = vpop.eup %2983 }
 0x637   :  { %v1747_v54 = vmul.f32 %v2984_v52, %v1728_v51  ;;  %v2986_v56 = vpop.eup %2985 }
 0x638   :  { %v1750_v57 = vsub.f32 1.0, %v2986_v56  ;;  %v1752_v18 = vmul.f32 %v2986_v56, %v3631_v59 }
 0x639   :  { %v1748_v55 = vadd.f32 %v2494_v53, %v1747_v54 }
 0x63b   :  { %2987 = vtanh.f32 %v1748_v55 }
 0x645   :  { %v2988_v58 = vpop.eup %2987 }
 0x646   :  { %v1751_v60 = vmul.f32 %v2988_v58, %v1750_v57 }
 0x648   :  { %v3705_v25 = vadd.f32 %v1752_v18, %v1751_v60  ;;  %v2553_v60 = vld [vmem:[%s3804_s0 + $0xb0] sm:$0xff] }
 0x64a   :  { %v1755_v9 = vpack.c.bf16 %v3705_v25, %v3705_v25 }
 0x64c   :  { %2521 = vst [vmem:[%s3805_s4 + $0x14] sm:$0xf] %v1755_v9  ;;  %1974 = vmatmul.mubr.bf16.vlgmr.msra.gmra.mrb[24].mxu0 %v1755_v9  ;;  %2791 = vmatmul.mubr.bf16.vlgmr.msra.gmra.mrb[24].mxu1 %v1755_v9 }
 0x64d   :  { %2231 = vmatpush1.bf16.msra.mxu0 %v3420_v63  ;;  %2262 = vmatprep.mubr.bf16.mxu0 %v3010_v2  ;;  %v2921_v2 = vld [vmem:[%s3801_s2 + $0x8] ss:$12 sps:$4 sm:$0xff]   ;;  %v2922_v63 = vld [vmem:[%s3801_s2 + $0x20] ss:$12 sps:$4 sm:$0xff]  }
 0x64e   :  { %2232 = vmatprep.subr.bf16.mxu0 %v3430_v12  ;;  %2810 = vmatprep.mubr.msk.bf16.mxu1 %vm3011_vm0, %v3009_v1  ;;  %v2923_v12 = vld [vmem:[%s3801_s2 + $0x38] ss:$12 sps:$4 sm:$0xff]  }
 0x64f   :  { %2795 = vmatpush3.bf16.msra.mxu1 %v2921_v2 }
 0x650   :  { %2796 = vmatprep.subr.bf16.mxu1 %v3009_v1 }
 0x651   :  { %2233 = vmatpush1.bf16.msra.mxu0 %v3436_v15  ;;  %v2924_v15 = vld [vmem:[%s3801_s2 + $0x50] ss:$12 sps:$4 sm:$0xff]  }
 0x652   :  { %2234 = vmatprep.subr.bf16.mxu0 %v3446_v21  ;;  %v2925_v21 = vld [vmem:[%s3801_s2 + $0x68] ss:$12 sps:$4 sm:$0xff]  }
 0x653   :  { %2797 = vmatpush3.bf16.msra.mxu1 %v2922_v63 }
 0x654   :  { %2798 = vmatprep.subr.bf16.mxu1 %v3009_v1 }
 0x655   :  { %2235 = vmatpush1.bf16.msra.mxu0 %v3452_v24  ;;  %v2926_v24 = vld [vmem:[%s3801_s2 + $0x80] ss:$12 sps:$4 sm:$0xff]  }
 0x656   :  { %2236 = vmatprep.subr.bf16.mxu0 %v3462_v26  ;;  %v2927_v26 = vld [vmem:[%s3801_s2 + $0x98] ss:$12 sps:$4 sm:$0xff]  }
 0x657   :  { %2799 = vmatpush3.bf16.msra.mxu1 %v2923_v12 }
 0x658   :  { %2800 = vmatprep.subr.bf16.mxu1 %v3009_v1 }
 0x659   :  { %2237 = vmatpush1.bf16.msra.mxu0 %v3468_v27  ;;  %v2928_v27 = vld [vmem:[%s3801_s2 + $0xb0] ss:$12 sps:$4 sm:$0xff]  }
 0x65a   :  { %2238 = vmatprep.subr.bf16.mxu0 %v3478_v29  ;;  %v1796_v29 = vld [vmem:[%s3803_s3] sm:$0x7] }
 0x65b   :  { %2801 = vmatpush3.bf16.msra.mxu1 %v2924_v15  ;;  %v1809_v30 = vrot.slane %v1796_v29, %v3248_v61  ;;  %v2098_v15 = vrot.slane %v2085_v46, %v3248_v61 }
 0x65c   :  { %2802 = vmatprep.subr.bf16.mxu1 %v3009_v1 }
 0x65d   :  { %2239 = vmatpush1.bf16.msra.mxu0 %v3484_v31  ;;  %v1801_v31 = vrot.slane %v1796_v29, %v3233_v38 }
 0x65e   :  { %2240 = vmatprep.subr.bf16.mxu0 %v3493_v3  ;;  %v1805_v3 = vrot.slane %v1796_v29, %v3238_v40 }
 0x65f   :  { %2803 = vmatpush3.bf16.msra.mxu1 %v2925_v21 }
 0x660   :  { %2804 = vmatprep.subr.bf16.mxu1 %v3009_v1 }
 0x661   :  { %2241 = vmatpush1.bf16.msra.mxu0 %v3499_v4  ;;  %v2522_v4 = vld [vmem:[%s3804_s0 + $0x90] sm:$0xff] }
 0x662   :  { %2242 = vmatprep.subr.bf16.mxu0 %v3509_v6 }
 0x663   :  { %2805 = vmatpush3.bf16.msra.mxu1 %v2926_v24 }
 0x664   :  { %2806 = vmatprep.subr.bf16.mxu1 %v3009_v1 }
 0x665   :  { %2243 = vmatpush1.bf16.msra.mxu0 %v3515_v7 }
 0x666   :  { %2244 = vmatprep.subr.bf16.mxu0 %v3525_v10 }
 0x667   :  { %2807 = vmatpush3.bf16.msra.mxu1 %v2927_v26 }
 0x668   :  { %2808 = vmatprep.subr.bf16.mxu1 %v3009_v1 }
 0x669   :  { %2245 = vmatpush1.bf16.msra.mxu0 %v3531_v11 }
 0x66b   :  { %2809 = vmatpush3.bf16.msra.mxu1 %v2928_v27  ;;  %v2554_v27 = vld [vmem:[%s3804_s0 + $0xb8] sm:$0xff] }
 0x71f   :  { %v1975_v6 = vpop.f32.mrb[24].mxu0  ;;  %v2016_v7 = vpop.f32.mrb[24].mxu1 }
 0x720   :  { %v1976_v10 = vadd.f32 %v1975_v6, %v1801_v31  ;;  %v1977_v11 = vpop.f32.mrb[25].mxu0  ;;  %v2792_v59 = vpop.f32.mrb[25].mxu1  ;;  %v2017_v33 = vadd.f32 %v2016_v7, %v1809_v30 }
 0x721   :  { %v1978_v28 = vadd.f32 %v1977_v11, %v1805_v3  ;;  %v1979_v1 = vpop.f32.mrb[26].mxu0  ;;  %v2019_v23 = vpop.f32.mrb[26].mxu1 }
 0x722   :  { %v2022_v62 = vadd.f32 %v2522_v4, %v1976_v10  ;;  %v1980_v8 = vpop.f32.mrb[27].mxu0  ;;  %v2793_v13 = vpop.f32.mrb[27].mxu1 }
 0x723   :  { %v2029_v16 = vadd.f32 %v2523_v5, %v1978_v28 }
 0x724   :  { %v2549_v14 = vmul.f32 -1.442695, %v2022_v62 }
 0x725   :  { %v2550_v17 = vmul.f32 -1.442695, %v2029_v16 }
 0x726   :  { %2989 = vpow2.f32 %v2549_v14 }
 0x727   :  { %2991 = vpow2.f32 %v2550_v17 }
 0x730   :  { %v2990_v19 = vpop.eup %2989 }
 0x731   :  { %v2026_v20 = vadd.f32 1.0, %v2990_v19  ;;  %v2992_v22 = vpop.eup %2991 }
 0x732   :  { %v2033_v32 = vadd.f32 1.0, %v2992_v22 }
 0x733   :  { %2993 = vrcp.f32 %v2026_v20 }
 0x734   :  { %2995 = vrcp.f32 %v2033_v32 }
 0x73d   :  { %v2994_v0 = vpop.eup %2993 }
 0x73e   :  { %v2036_v35 = vmul.f32 %v2994_v0, %v2017_v33  ;;  %v2996_v37 = vpop.eup %2995 }
 0x73f   :  { %v2039_v39 = vsub.f32 1.0, %v2996_v37  ;;  %v2041_v43 = vmul.f32 %v2996_v37, %v3705_v25 }
 0x740   :  { %v2037_v36 = vadd.f32 %v2524_v34, %v2036_v35 }
 0x742   :  { %2997 = vtanh.f32 %v2037_v36 }
 0x74c   :  { %v2998_v41 = vpop.eup %2997 }
 0x74d   :  { %v2040_v42 = vmul.f32 %v2998_v41, %v2039_v39 }
 0x74f   :  { %v2042_v44 = vadd.f32 %v2041_v43, %v2040_v42 }
 0x751   :  { %v2044_v45 = vpack.c.bf16 %v2042_v44, %v2042_v44 }
 0x753   :  { %2551 = vst [vmem:[%s3805_s4 + $0x18] sm:$0xf] %v2044_v45  ;;  %2263 = vmatmul.mubr.bf16.vlgmr.msra.gmra.mrb[28].mxu0 %v2044_v45  ;;  %2811 = vmatmul.mubr.bf16.vlgmr.msra.gmra.mrb[28].mxu1 %v2044_v45 }
 0x826   :  { %v2264_v50 = vpop.f32.mrb[28].mxu0  ;;  %v2305_v51 = vpop.f32.mrb[28].mxu1 }
 0x827   :  { %v2265_v52 = vadd.f32 %v2264_v50, %v2090_v47  ;;  %v2266_v53 = vpop.f32.mrb[29].mxu0  ;;  %v2812_v54 = vpop.f32.mrb[29].mxu1  ;;  %v2306_v24 = vadd.f32 %v2305_v51, %v2098_v15 }
 0x828   :  { %v2267_v55 = vadd.f32 %v2266_v53, %v2094_v48  ;;  %v2268_v56 = vpop.f32.mrb[30].mxu0  ;;  %v2308_v57 = vpop.f32.mrb[30].mxu1 }
 0x829   :  { %v2311_v58 = vadd.f32 %v2552_v49, %v2265_v52  ;;  %v2269_v38 = vpop.f32.mrb[31].mxu0  ;;  %v2813_v18 = vpop.f32.mrb[31].mxu1 }
 0x82a   :  { %v2318_v25 = vadd.f32 %v2553_v60, %v2267_v55 }
 0x82b   :  { %v2579_v40 = vmul.f32 -1.442695, %v2311_v58 }
 0x82c   :  { %v2580_v9 = vmul.f32 -1.442695, %v2318_v25 }
 0x82d   :  { %2999 = vpow2.f32 %v2579_v40 }
 0x82e   :  { %3001 = vpow2.f32 %v2580_v9 }
 0x837   :  { %v3000_v2 = vpop.eup %2999 }
 0x838   :  { %v2315_v63 = vadd.f32 1.0, %v3000_v2  ;;  %v3002_v12 = vpop.eup %3001 }
 0x839   :  { %v2322_v21 = vadd.f32 1.0, %v3002_v12 }
 0x83a   :  { %3003 = vrcp.f32 %v2315_v63 }
 0x83b   :  { %3005 = vrcp.f32 %v2322_v21 }
 0x844   :  { %v3004_v26 = vpop.eup %3003 }
 0x845   :  { %v2325_v29 = vmul.f32 %v3004_v26, %v2306_v24  ;;  %v3006_v3 = vpop.eup %3005 }
 0x846   :  { %v2328_v4 = vsub.f32 1.0, %v3006_v3  ;;  %v2330_v10 = vmul.f32 %v3006_v3, %v2042_v44 }
 0x847   :  { %v2326_v31 = vadd.f32 %v2554_v27, %v2325_v29 }
 0x849   :  { %3007 = vtanh.f32 %v2326_v31 }
 0x853   :  { %v3008_v6 = vpop.eup %3007 }
 0x854   :  { %v2329_v7 = vmul.f32 %v3008_v6, %v2328_v4 }
 0x856   :  { %v2331_v11 = vadd.f32 %v2330_v10, %v2329_v7 }
 0x858   :  { %v2333_v59 = vpack.c.bf16 %v2331_v11, %v2331_v11  ;;  %2337 = vst [vmem:[%s3806_s5] sm:$0xff] %v2331_v11 }
 0x85a   :  { %2581 = vst [vmem:[%s3805_s4 + $0x1c] sm:$0xf] %v2333_v59 }

</bundles_post_ra>
